<compile_context>
chip_gen: v6e
topology: v6e:2x2x1
jax: 0.10.0
libtpu: 0.0.40
codegen_flags: <defaults>
</compile_context>

<pallas_src>
import math

import jax
import jax.numpy as jnp
from jax.experimental import pallas as pl
from jax.experimental.pallas import tpu as pltpu

VMEM_LIMIT_BYTES = 32 * 1024 * 1024  # explicit scoped-VMEM budget (fits v7x)
ROW_TILE_CAP = 256                   # 256-row blocks (multiple of 8)


def _round_up(x, m):
    return ((x + m - 1) // m) * m


def _choose_tiling(M, cap=ROW_TILE_CAP):
    """Pick a row tile TM (multiple of 8, <= cap) and padded row count Mp."""
    if M <= cap:
        tm = _round_up(max(M, 8), 8)
        return tm, tm
    for tm in range(cap, 7, -8):
        if M % tm == 0:
            return tm, M
    return cap, _round_up(M, cap)


def _pad_rows(a, Mp):
    M = a.shape[0]
    if Mp == M:
        return a
    return jnp.pad(a, ((0, Mp - M),) + ((0, 0),) * (a.ndim - 1))


# ----------------------------------------------------------------------------
# Pallas kernel 1: tiled matmul + bias (used by every projection conv)
#   a:(M,K) bf16, w:(K,Np) bf16, b:(1,Np) f32 -> (M,Np) f32, Np % 128 == 0
# ----------------------------------------------------------------------------
def _matmul_bias_kernel(a_ref, w_ref, b_ref, o_ref):
    o_ref[...] = (
        jnp.dot(a_ref[...], w_ref[...], preferred_element_type=jnp.float32)
        + b_ref[...]
    )


def pallas_matmul_bias(a, w, b):
    M, K = a.shape
    Np = w.shape[1]
    TM, Mp = _choose_tiling(M)
    a = _pad_rows(a, Mp)
    out = pl.pallas_call(
        _matmul_bias_kernel,
        out_shape=jax.ShapeDtypeStruct((Mp, Np), jnp.float32),
        grid=(Mp // TM,),
        in_specs=[
            pl.BlockSpec((TM, K), lambda i: (i, 0)),
            pl.BlockSpec((K, Np), lambda i: (0, 0)),
            pl.BlockSpec((1, Np), lambda i: (0, 0)),
        ],
        out_specs=pl.BlockSpec((TM, Np), lambda i: (i, 0)),
        compiler_params=pltpu.CompilerParams(
            dimension_semantics=("parallel",),
            vmem_limit_bytes=VMEM_LIMIT_BYTES),
    )(a, w, b)
    return out[:M] if Mp != M else out


# ----------------------------------------------------------------------------
# Pallas kernel 2: ConvGRU gate pass
#   gates = patches @ Wg + bg ; r,z = sigmoid ; emit (r*h) bf16 and z f32
# ----------------------------------------------------------------------------
def _sigmoid(x):
    return 1.0 / (1.0 + jnp.exp(-x))


def _make_gate_kernel(Hd):
    def kernel(p_ref, hh_ref, wg_ref, bg_ref, rh_ref, z_ref):
        gates = jnp.dot(p_ref[...], wg_ref[...],
                        preferred_element_type=jnp.float32) + bg_ref[...]
        r = _sigmoid(gates[:, :Hd])
        z = _sigmoid(gates[:, Hd:2 * Hd])
        rh_ref[...] = (r * hh_ref[...]).astype(rh_ref.dtype)
        z_ref[...] = z
    return kernel


def pallas_gate(patches, hh2d, wg, bg, Hd):
    M, K = patches.shape
    Np = wg.shape[1]
    TM, Mp = _choose_tiling(M)
    patches = _pad_rows(patches, Mp)
    hh2d = _pad_rows(hh2d, Mp)
    rh, z = pl.pallas_call(
        _make_gate_kernel(Hd),
        out_shape=(jax.ShapeDtypeStruct((Mp, Hd), jnp.bfloat16),
                   jax.ShapeDtypeStruct((Mp, Hd), jnp.float32)),
        grid=(Mp // TM,),
        in_specs=[
            pl.BlockSpec((TM, K), lambda i: (i, 0)),
            pl.BlockSpec((TM, Hd), lambda i: (i, 0)),
            pl.BlockSpec((K, Np), lambda i: (0, 0)),
            pl.BlockSpec((1, Np), lambda i: (0, 0)),
        ],
        out_specs=(pl.BlockSpec((TM, Hd), lambda i: (i, 0)),
                   pl.BlockSpec((TM, Hd), lambda i: (i, 0))),
        compiler_params=pltpu.CompilerParams(
            dimension_semantics=("parallel",),
            vmem_limit_bytes=VMEM_LIMIT_BYTES),
    )(patches, hh2d, wg, bg)
    if Mp != M:
        rh, z = rh[:M], z[:M]
    return rh, z


# ----------------------------------------------------------------------------
# Pallas kernel 3: ConvGRU candidate + apical modulation + blend
#   cand = patches @ Wc_xb + rh_patches @ Wc_h + bc
#   n    = tanh(cand * (1 + apical_mult) + apical_add)
#   h'   = (1-z)*n + z*h
# ----------------------------------------------------------------------------
def _make_cand_blend_kernel(Hd):
    def kernel(p_ref, rhp_ref, h_ref, z_ref, am_ref, aa_ref,
               wcxb_ref, wch_ref, bc_ref, o_ref):
        cand = jnp.dot(p_ref[...], wcxb_ref[...],
                       preferred_element_type=jnp.float32)
        cand = cand + jnp.dot(rhp_ref[...], wch_ref[...],
                              preferred_element_type=jnp.float32)
        cand = cand[:, :Hd] + bc_ref[:, :Hd]
        n = jnp.tanh(cand * (1.0 + am_ref[...]) + aa_ref[...])
        z = z_ref[...]
        o_ref[...] = (1.0 - z) * n + z * h_ref[...]
    return kernel


def pallas_cand_blend(patches, rhp, h2d, z2d, am2d, aa2d, wcxb, wch, bc, Hd):
    M, K = patches.shape
    Kh = rhp.shape[1]
    Np = wcxb.shape[1]
    TM, Mp = _choose_tiling(M)
    patches = _pad_rows(patches, Mp)
    rhp = _pad_rows(rhp, Mp)
    h2d = _pad_rows(h2d, Mp)
    z2d = _pad_rows(z2d, Mp)
    am2d = _pad_rows(am2d, Mp)
    aa2d = _pad_rows(aa2d, Mp)
    out = pl.pallas_call(
        _make_cand_blend_kernel(Hd),
        out_shape=jax.ShapeDtypeStruct((Mp, Hd), jnp.float32),
        grid=(Mp // TM,),
        in_specs=[
            pl.BlockSpec((TM, K), lambda i: (i, 0)),
            pl.BlockSpec((TM, Kh), lambda i: (i, 0)),
            pl.BlockSpec((TM, Hd), lambda i: (i, 0)),
            pl.BlockSpec((TM, Hd), lambda i: (i, 0)),
            pl.BlockSpec((TM, Hd), lambda i: (i, 0)),
            pl.BlockSpec((TM, Hd), lambda i: (i, 0)),
            pl.BlockSpec((K, Np), lambda i: (0, 0)),
            pl.BlockSpec((Kh, Np), lambda i: (0, 0)),
            pl.BlockSpec((1, Np), lambda i: (0, 0)),
        ],
        out_specs=pl.BlockSpec((TM, Hd), lambda i: (i, 0)),
        compiler_params=pltpu.CompilerParams(
            dimension_semantics=("parallel",),
            vmem_limit_bytes=VMEM_LIMIT_BYTES),
    )(patches, rhp, h2d, z2d, am2d, aa2d, wcxb, wch, bc)
    return out[:M] if Mp != M else out


# ----------------------------------------------------------------------------
# im2col (runs inside jit, on bf16 inputs) + conv wrappers
# ----------------------------------------------------------------------------
def _im2col(x, kh, kw, stride, padding):
    """x:(B,C,H,W) -> patches (B*Ho*Wo, kh*kw*C); column = tap*C + c."""
    B, C, H, W = x.shape
    sh, sw = stride
    ph, pw = padding
    xp = jnp.pad(x, ((0, 0), (0, 0), (ph, ph), (pw, pw)))
    Ho = (H + 2 * ph - kh) // sh + 1
    Wo = (W + 2 * pw - kw) // sw + 1
    cols = []
    for di in range(kh):
        for dj in range(kw):
            sl = xp[:, :, di: di + sh * (Ho - 1) + 1: sh,
                          dj: dj + sw * (Wo - 1) + 1: sw]      # (B,C,Ho,Wo)
            cols.append(sl.transpose(0, 2, 3, 1).reshape(B * Ho * Wo, C))
    return jnp.concatenate(cols, axis=1), Ho, Wo


def _nchw_to_rows(x):
    B, C, H, W = x.shape
    return x.transpose(0, 2, 3, 1).reshape(B * H * W, C)


def _rows_to_nchw(x2d, B, H, W, C):
    return x2d.reshape(B, H, W, C).transpose(0, 3, 1, 2)


def conv2d_apply(x, pw_, meta):
    B = x.shape[0]
    patches, Ho, Wo = _im2col(x.astype(jnp.bfloat16), meta["kh"], meta["kw"],
                              meta["stride"], meta["padding"])
    out = pallas_matmul_bias(patches, pw_["w"], pw_["b"])
    out = out[:, : meta["cout"]]
    return out.reshape(B, Ho, Wo, meta["cout"]).transpose(0, 3, 1, 2)


def conv_transpose2d_apply(x, pw_, meta):
    """PyTorch ConvTranspose2d with kernel_size == stride, padding 0."""
    B, Cin, H, W = x.shape
    sh, sw = meta["stride"]
    cout = meta["cout"]
    a = x.transpose(0, 2, 3, 1).reshape(B * H * W, Cin).astype(jnp.bfloat16)
    out = pallas_matmul_bias(a, pw_["w"], pw_["b"])
    out = out[:, : cout * sh * sw]
    out = (out.reshape(B, H, W, cout, sh, sw)
              .transpose(0, 3, 1, 4, 2, 5)
              .reshape(B, cout, H * sh, W * sw))
    return out


def apply_proj(pw_, meta, x):
    if meta["kind"] == "conv":
        return conv2d_apply(x, pw_, meta)
    return conv_transpose2d_apply(x, pw_, meta)


# ----------------------------------------------------------------------------
# Deterministic parameter init (PyTorch Conv2d-style uniform bounds) + packing
# ----------------------------------------------------------------------------
def init_conv(key, cout, cin, kh, kw):
    k1, k2 = jax.random.split(key)
    bound = 1.0 / math.sqrt(max(cin * kh * kw, 1))
    w = jax.random.uniform(k1, (cout, cin, kh, kw), jnp.float32, -bound, bound)
    b = jax.random.uniform(k2, (cout,), jnp.float32, -bound, bound)
    return w, b


def init_conv_transpose(key, cin, cout, kh, kw):
    k1, k2 = jax.random.split(key)
    bound = 1.0 / math.sqrt(max(cin * kh * kw, 1))
    w = jax.random.uniform(k1, (cin, cout, kh, kw), jnp.float32, -bound, bound)
    b = jax.random.uniform(k2, (cout,), jnp.float32, -bound, bound)
    return w, b


def prep_conv(w, b):
    """Pack Conv2d weight: (kh*kw*Cin, Np) bf16, Np % 128 == 0 (lane-dense N)."""
    cout, cin, kh, kw = w.shape
    wmat = w.transpose(2, 3, 1, 0).reshape(kh * kw * cin, cout)
    np_ = _round_up(cout, 128)
    wmat = jnp.pad(wmat, ((0, 0), (0, np_ - cout))).astype(jnp.bfloat16)
    bp = jnp.pad(b, (0, np_ - cout)).reshape(1, np_).astype(jnp.float32)
    return {"w": wmat, "b": bp}


def prep_conv_transpose(w, b):
    cin, cout, sh, sw = w.shape
    n = cout * sh * sw
    wmat = w.reshape(cin, n)
    np_ = _round_up(n, 128)
    wmat = jnp.pad(wmat, ((0, 0), (0, np_ - n))).astype(jnp.bfloat16)
    brep = jnp.pad(jnp.repeat(b, sh * sw), (0, np_ - n)).reshape(1, np_)
    return {"w": wmat, "b": brep.astype(jnp.float32)}


# ----------------------------------------------------------------------------
# Minimal Graph / Node (dependencies of the PyTorch module, rebuilt here)
# ----------------------------------------------------------------------------
class Node:
    def __init__(self, input_size, input_dim, hidden_dim, kernel_size,
                 basal_topdown_dim, apical_topdown_dim,
                 in_nodes_indices, out_nodes_indices):
        self.input_size = input_size
        self.input_dim = input_dim
        self.hidden_dim = hidden_dim
        self.kernel_size = kernel_size
        self.basal_topdown_dim = basal_topdown_dim
        self.apical_topdown_dim = apical_topdown_dim
        self.in_nodes_indices = in_nodes_indices
        self.out_nodes_indices = out_nodes_indices


class Graph:
    def __init__(self, nodes, input_indices, output_indices):
        self.nodes = nodes
        self.num_node = len(nodes)
        self.input_indices = input_indices
        self.output_indices = output_indices
        self.bias = True
        self.dtype = jnp.float32


def calc_stride_padding(input_sz, output_sz, kernel_sz):
    stride = [math.ceil((i - k) / (o - 1))
              for i, o, k in zip(input_sz, output_sz, kernel_sz)]
    padding = [math.ceil(((o - 1) * s + k - i) / 2)
               for i, o, k, s in zip(input_sz, output_sz, kernel_sz, stride)]
    return stride, padding


# ----------------------------------------------------------------------------
# Architecture (JAX/Pallas port of the PyTorch module's forward semantics)
# ----------------------------------------------------------------------------
class ArchitectureJAX:
    def __init__(self, graph, input_sizes, input_dims, key,
                 topdown=True, rep=1, proj_hidden_dim=32):
        self.graph = graph
        self.rep = rep
        self.topdown = topdown
        self.proj_hidden_dim = proj_hidden_dim
        keys = iter(jax.random.split(key, 256))

        # ConvGRU cells (basal/apical top-down reconstruction)
        cells = []
        self.cell_meta = []
        for n in graph.nodes:
            D, Hd = n.input_dim, n.hidden_dim
            Bd, A = n.basal_topdown_dim, n.apical_topdown_dim
            assert A == Hd, "apical dims gate the candidate elementwise"
            kh, kw = n.kernel_size
            assert kh % 2 == 1 and kw % 2 == 1, "cell conv must be 'same'"
            Ctot = D + Hd + Bd
            K1 = kh * kw * Ctot
            wg, bg = init_conv(next(keys), 2 * Hd, Ctot, kh, kw)
            wc, bc = init_conv(next(keys), Hd, Ctot, kh, kw)
            Npg = _round_up(2 * Hd, 128)
            Npc = _round_up(Hd, 128)
            wg_mat = wg.transpose(2, 3, 1, 0).reshape(K1, 2 * Hd)
            wg_mat = jnp.pad(wg_mat, ((0, 0), (0, Npg - 2 * Hd))).astype(jnp.bfloat16)
            bg_p = jnp.pad(bg, (0, Npg - 2 * Hd)).reshape(1, Npg).astype(jnp.float32)
            # candidate conv split: x/basal taps (hh rows zeroed) + recurrent taps
            wc_xb = wc.at[:, D:D + Hd, :, :].set(0.0)
            wcxb_mat = wc_xb.transpose(2, 3, 1, 0).reshape(K1, Hd)
            wcxb_mat = jnp.pad(wcxb_mat, ((0, 0), (0, Npc - Hd))).astype(jnp.bfloat16)
            wch_mat = (wc.transpose(2, 3, 1, 0)[:, :, D:D + Hd, :]
                         .reshape(kh * kw * Hd, Hd))
            wch_mat = jnp.pad(wch_mat, ((0, 0), (0, Npc - Hd))).astype(jnp.bfloat16)
            bc_p = jnp.pad(bc, (0, Npc - Hd)).reshape(1, Npc).astype(jnp.float32)
            cells.append({"wg": wg_mat, "bg": bg_p, "wcxb": wcxb_mat,
                          "wch": wch_mat, "bc": bc_p})
            self.cell_meta.append({"D": D, "Hd": Hd, "Bd": Bd, "Ctot": Ctot,
                                   "kh": kh, "kw": kw,
                                   "pad": (kh // 2, kw // 2),
                                   "size": tuple(n.input_size)})

        # bottom-up projections (weights pre-packed, lane-dense N)
        bottomup_p = []
        self.bottomup_meta = []
        for end_node in range(graph.num_node):
            per_p, per_m = [], []
            num_inputs = len(graph.nodes[end_node].in_nodes_indices)
            kh, kw = graph.nodes[end_node].kernel_size
            if end_node in graph.input_indices:
                stride, padding = calc_stride_padding(
                    input_sizes[end_node], graph.nodes[end_node].input_size,
                    graph.nodes[end_node].kernel_size)
                num_inputs += 1
                w, b = init_conv(next(keys), proj_hidden_dim,
                                 input_dims[end_node], kh, kw)
                per_p.append(prep_conv(w, b))
                per_m.append({"kind": "conv", "kh": kh, "kw": kw,
                              "stride": tuple(stride), "padding": tuple(padding),
                              "cout": proj_hidden_dim})
            for start_node in graph.nodes[end_node].in_nodes_indices:
                stride, padding = calc_stride_padding(
                    graph.nodes[start_node].input_size,
                    graph.nodes[end_node].input_size,
                    graph.nodes[end_node].kernel_size)
                w, b = init_conv(next(keys), proj_hidden_dim,
                                 graph.nodes[start_node].hidden_dim, kh, kw)
                per_p.append(prep_conv(w, b))
                per_m.append({"kind": "conv", "kh": kh, "kw": kw,
                              "stride": tuple(stride), "padding": tuple(padding),
                              "cout": proj_hidden_dim})
            w, b = init_conv(next(keys), graph.nodes[end_node].input_dim,
                             proj_hidden_dim * num_inputs, 3, 3)
            per_p.append(prep_conv(w, b))
            per_m.append({"kind": "conv", "kh": 3, "kw": 3, "stride": (1, 1),
                          "padding": (1, 1),
                          "cout": graph.nodes[end_node].input_dim})
            bottomup_p.append(per_p)
            self.bottomup_meta.append(per_m)

        # top-down projections
        topdown_p = []
        self.topdown_meta = []
        for end_node in range(graph.num_node):
            per_p, per_m = [], []
            num_inputs = len(graph.nodes[end_node].out_nodes_indices)
            for start_node in graph.nodes[end_node].out_nodes_indices:
                bottom_size = graph.nodes[end_node].input_size
                top_size = graph.nodes[start_node].input_size
                if top_size[0] * top_size[1] < bottom_size[0] * bottom_size[1]:
                    stride = [o // i for o, i in zip(bottom_size, top_size)]
                    w, b = init_conv_transpose(
                        next(keys), graph.nodes[start_node].hidden_dim,
                        proj_hidden_dim, stride[0], stride[1])
                    per_p.append(prep_conv_transpose(w, b))
                    per_m.append({"kind": "convT", "stride": tuple(stride),
                                  "cout": proj_hidden_dim})
                else:
                    stride, padding = calc_stride_padding(
                        top_size, bottom_size, graph.nodes[start_node].kernel_size)
                    kh, kw = graph.nodes[end_node].kernel_size
                    w, b = init_conv(next(keys), proj_hidden_dim,
                                     graph.nodes[start_node].hidden_dim, kh, kw)
                    per_p.append(prep_conv(w, b))
                    per_m.append({"kind": "conv", "kh": kh, "kw": kw,
                                  "stride": tuple(stride),
                                  "padding": tuple(padding),
                                  "cout": proj_hidden_dim})
            ncfg = graph.nodes[end_node]
            topdown_end_dim = (ncfg.input_dim + ncfg.hidden_dim +
                               ncfg.basal_topdown_dim + 2 * ncfg.apical_topdown_dim)
            if num_inputs > 0:
                w, b = init_conv(next(keys), topdown_end_dim,
                                 proj_hidden_dim * num_inputs, 3, 3)
                per_p.append(prep_conv(w, b))
                per_m.append({"kind": "conv", "kh": 3, "kw": 3, "stride": (1, 1),
                              "padding": (1, 1), "cout": topdown_end_dim})
            else:
                per_p.append(None)   # never used (no out nodes)
                per_m.append(None)
            topdown_p.append(per_p)
            self.topdown_meta.append(per_m)

        self.params = {"cells": cells, "bottomup": bottomup_p,
                       "topdown": topdown_p}
        self._forward_jit = jax.jit(self._forward_impl)

    # ------------------------------------------------------------------
    def _init_hidden(self, batch_size):
        hs = []
        for m in self.cell_meta:
            H, W = m["size"]
            hs.append(jnp.zeros((batch_size, m["Hd"], H, W), jnp.float32))
        return hs

    def _cell_step(self, node, cparams, bottomup, h, topdown):
        m = self.cell_meta[node]
        D, Hd, Bd = m["D"], m["Hd"], m["Bd"]
        B, _, H, W = h.shape
        Mrows = B * H * W
        if topdown is None:
            x = bottomup
            hh = h
            basal = jnp.zeros((B, Bd, H, W), jnp.float32)
            am2d = jnp.zeros((Mrows, Hd), jnp.float32)
            aa2d = jnp.zeros((Mrows, Hd), jnp.float32)
        else:
            x = bottomup + topdown[:, :D]
            hh = h + topdown[:, D:D + Hd]
            basal = topdown[:, D + Hd:D + Hd + Bd]
            am = topdown[:, D + Hd + Bd:D + Hd + Bd + Hd]
            aa = topdown[:, D + Hd + Bd + Hd:D + Hd + Bd + 2 * Hd]
            am2d = _nchw_to_rows(am)
            aa2d = _nchw_to_rows(aa)
        # bf16 BEFORE im2col so the materialized patch matrix is half-size.
        comb = jnp.concatenate([x, hh, basal], axis=1).astype(jnp.bfloat16)
        patches, _, _ = _im2col(comb, m["kh"], m["kw"], (1, 1), m["pad"])
        hh2d = _nchw_to_rows(hh)
        rh2d, z2d = pallas_gate(patches, hh2d, cparams["wg"], cparams["bg"], Hd)
        rh_img = _rows_to_nchw(rh2d, B, H, W, Hd)            # (B,Hd,H,W) bf16
        rhp, _, _ = _im2col(rh_img, m["kh"], m["kw"], (1, 1), m["pad"])
        h2d = _nchw_to_rows(h)
        hnew = pallas_cand_blend(patches, rhp, h2d, z2d, am2d, aa2d,
                                 cparams["wcxb"], cparams["wch"],
                                 cparams["bc"], Hd)
        return _rows_to_nchw(hnew, B, H, W, Hd)

    # ------------------------------------------------------------------
    def _forward_impl(self, params, all_inputs):
        if not isinstance(all_inputs, (list, tuple)):
            all_inputs = [all_inputs]
        seq_len = max(i.shape[1] for i in all_inputs)
        process_time = seq_len + self.graph.num_node - 1
        batch_size = all_inputs[0].shape[0]

        hidden_states = self._init_hidden(batch_size)
        hidden_states_prev = self._init_hidden(batch_size)
        active_nodes = list(self.graph.input_indices)

        for rep in range(self.rep):
            for t in range(process_time):
                for node in active_nodes:
                    bottomup = []
                    input_num = 0
                    projs = params["bottomup"][node]
                    metas = self.bottomup_meta[node]
                    if node in self.graph.input_indices and t < seq_len:
                        inp = all_inputs[self.graph.input_indices.index(node)]
                        bottomup.append(apply_proj(projs[input_num],
                                                   metas[input_num], inp[:, t]))
                        input_num += 1
                    elif node in self.graph.input_indices:
                        inp = all_inputs[self.graph.input_indices.index(node)]
                        bottomup.append(apply_proj(projs[input_num],
                                                   metas[input_num],
                                                   jnp.zeros_like(inp[:, 0])))
                        input_num += 1
                    for bottomup_node in self.graph.nodes[node].in_nodes_indices:
                        bottomup.append(apply_proj(projs[input_num],
                                                   metas[input_num],
                                                   hidden_states_prev[bottomup_node]))
                        input_num += 1
                    if not bottomup:
                        continue
                    bottomup = jnp.concatenate(bottomup, axis=1)
                    bottomup = apply_proj(projs[-1], metas[-1], bottomup)

                    td_projs = params["topdown"][node]
                    td_metas = self.topdown_meta[node]
                    if (self.topdown and (rep != 0 or t != 0)
                            and len(self.graph.nodes[node].out_nodes_indices) != 0):
                        topdown = []
                        for i, topdown_node in enumerate(
                                self.graph.nodes[node].out_nodes_indices):
                            topdown.append(apply_proj(td_projs[i], td_metas[i],
                                                      hidden_states_prev[topdown_node]))
                        topdown = apply_proj(td_projs[-1], td_metas[-1],
                                             jnp.concatenate(topdown, axis=1))
                    else:
                        topdown = None

                    h = self._cell_step(node, params["cells"][node],
                                        bottomup, hidden_states[node], topdown)
                    # TODO(synk): dropout treated as eval-mode identity.
                    hidden_states[node] = h

                old_nodes = active_nodes
                active_nodes = []
                for prev_node in old_nodes:
                    for next_node in self.graph.nodes[prev_node].out_nodes_indices:
                        if next_node not in active_nodes:
                            active_nodes.append(next_node)
                for inp_idx, seq in enumerate(all_inputs):
                    if t + 1 < seq.shape[1]:
                        active_nodes.append(self.graph.input_indices[inp_idx])
                # NOTE: replicates the PyTorch list aliasing (prev == current).
                hidden_states_prev = hidden_states

        return [hidden_states[i] for i in self.graph.output_indices]

    def forward(self, all_inputs):
        return self._forward_jit(self.params, all_inputs)


# ----------------------------------------------------------------------------
# Main
# ----------------------------------------------------------------------------
def build_graph():
    node0 = Node(input_size=(16, 16), input_dim=4, hidden_dim=8, kernel_size=(3, 3),
                 basal_topdown_dim=4, apical_topdown_dim=8,
                 in_nodes_indices=[], out_nodes_indices=[1])
    node1 = Node(input_size=(8, 8), input_dim=8, hidden_dim=8, kernel_size=(3, 3),
                 basal_topdown_dim=0, apical_topdown_dim=8,
                 in_nodes_indices=[0], out_nodes_indices=[])
    return Graph([node0, node1], input_indices=[0], output_indices=[1])


if __name__ == "__main__":
    key = jax.random.PRNGKey(0)
    k_inp, k_param = jax.random.split(key)

    B, T, C, H, W = 2, 3, 4, 16, 16
    x = jax.random.normal(k_inp, (B, T, C, H, W), jnp.float32)

    graph = build_graph()
    arch = ArchitectureJAX(graph,
                           input_sizes=[(16, 16), (0, 0)],
                           input_dims=[4, 0],
                           key=k_param,
                           topdown=True, rep=1, proj_hidden_dim=32)

    outs = arch.forward(x)
    out = jax.block_until_ready(outs[0])
    assert out.shape == (B, 8, 8, 8), out.shape
    assert bool(jnp.all(jnp.isfinite(out)))
    print("KERNEL_OK")
</pallas_src>

<mosaic_0001>
module attributes {stable_mosaic.version = 11 : i64} {
  func.func @_matmul_bias_kernel(%arg0: i32, %arg1: memref<256x36xbf16, #tpu.memory_space<vmem>>, %arg2: memref<36x128xbf16, #tpu.memory_space<vmem>>, %arg3: memref<1x128xf32, #tpu.memory_space<vmem>>, %arg4: memref<256x128xf32, #tpu.memory_space<vmem>>) attributes {dimension_semantics = [#tpu.dimension_semantics<parallel>], iteration_bounds = array<i64: 2>, scalar_prefetch = 0 : i64, scratch_operands = 0 : i64, tpu.core_type = #tpu.core_type<tc>, window_params = [{transform_indices = @transform_0, window_bounds = array<i64: 256, 36>}, {pipeline_mode = #tpu.pipeline_mode<synchronous>, transform_indices = @transform_1, window_bounds = array<i64: 36, 128>}, {pipeline_mode = #tpu.pipeline_mode<synchronous>, transform_indices = @transform_2, window_bounds = array<i64: 1, 128>}, {transform_indices = @transform_3, window_bounds = array<i64: 256, 128>}]} {
    %c0 = arith.constant 0 : index
    %c0_0 = arith.constant 0 : index
    %0 = vector.load %arg1[%c0, %c0_0] : memref<256x36xbf16, #tpu.memory_space<vmem>>, vector<256x36xbf16>
    %c0_1 = arith.constant 0 : index
    %c0_2 = arith.constant 0 : index
    %1 = vector.load %arg2[%c0_1, %c0_2] : memref<36x128xbf16, #tpu.memory_space<vmem>>, vector<36x128xbf16>
    %cst = arith.constant dense<0.000000e+00> : vector<256x128xf32>
    %2 = tpu.matmul %0, %1, %cst {dimension_numbers = #tpu.dot_dimension_numbers<[1], [0], [0], [1], [0, 0, 1, 1], [], []>} : vector<256x36xbf16>, vector<36x128xbf16>, vector<256x128xf32> -> vector<256x128xf32>
    %c0_3 = arith.constant 0 : index
    %c0_4 = arith.constant 0 : index
    %3 = vector.load %arg3[%c0_3, %c0_4] : memref<1x128xf32, #tpu.memory_space<vmem>>, vector<1x128xf32>
    %4 = vector.broadcast %3 : vector<1x128xf32> to vector<256x128xf32>
    %5 = arith.addf %2, %4 : vector<256x128xf32>
    %c0_5 = arith.constant 0 : index
    %c0_6 = arith.constant 0 : index
    %6 = vector.load %arg4[%c0_5, %c0_6] : memref<256x128xf32, #tpu.memory_space<vmem>>, vector<256x128xf32>
    tpu.vector_store %arg4[%c0_5, %c0_6], %5 {strides = array<i32>} : memref<256x128xf32, #tpu.memory_space<vmem>>, vector<256x128xf32>,
    return
  }
  func.func @transform_0(%arg0: i32) -> (i32, i32) {
    %c0_i32 = arith.constant 0 : i32
    %c0_i32_0 = arith.constant 0 : i32
    return %arg0, %c0_i32 : i32, i32
  }
  func.func @transform_1(%arg0: i32) -> (i32, i32) {
    %c0_i32 = arith.constant 0 : i32
    %c0_i32_0 = arith.constant 0 : i32
    %c0_i32_1 = arith.constant 0 : i32
    return %c0_i32, %c0_i32_0 : i32, i32
  }
  func.func @transform_2(%arg0: i32) -> (i32, i32) {
    %c0_i32 = arith.constant 0 : i32
    %c0_i32_0 = arith.constant 0 : i32
    %c0_i32_1 = arith.constant 0 : i32
    return %c0_i32, %c0_i32_0 : i32, i32
  }
  func.func @transform_3(%arg0: i32) -> (i32, i32) {
    %c0_i32 = arith.constant 0 : i32
    %c0_i32_0 = arith.constant 0 : i32
    return %arg0, %c0_i32 : i32, i32
  }
}

module attributes {stable_mosaic.version = 11 : i64} {
  func.func @_matmul_bias_kernel(%arg0: i32, %arg1: memref<256x288xbf16, #tpu.memory_space<vmem>>, %arg2: memref<288x128xbf16, #tpu.memory_space<vmem>>, %arg3: memref<1x128xf32, #tpu.memory_space<vmem>>, %arg4: memref<256x128xf32, #tpu.memory_space<vmem>>) attributes {dimension_semantics = [#tpu.dimension_semantics<parallel>], iteration_bounds = array<i64: 2>, scalar_prefetch = 0 : i64, scratch_operands = 0 : i64, tpu.core_type = #tpu.core_type<tc>, window_params = [{transform_indices = @transform_0, window_bounds = array<i64: 256, 288>}, {pipeline_mode = #tpu.pipeline_mode<synchronous>, transform_indices = @transform_1, window_bounds = array<i64: 288, 128>}, {pipeline_mode = #tpu.pipeline_mode<synchronous>, transform_indices = @transform_2, window_bounds = array<i64: 1, 128>}, {transform_indices = @transform_3, window_bounds = array<i64: 256, 128>}]} {
    %c0 = arith.constant 0 : index
    %c0_0 = arith.constant 0 : index
    %0 = vector.load %arg1[%c0, %c0_0] : memref<256x288xbf16, #tpu.memory_space<vmem>>, vector<256x288xbf16>
    %c0_1 = arith.constant 0 : index
    %c0_2 = arith.constant 0 : index
    %1 = vector.load %arg2[%c0_1, %c0_2] : memref<288x128xbf16, #tpu.memory_space<vmem>>, vector<288x128xbf16>
    %cst = arith.constant dense<0.000000e+00> : vector<256x128xf32>
    %2 = tpu.matmul %0, %1, %cst {dimension_numbers = #tpu.dot_dimension_numbers<[1], [0], [0], [1], [0, 0, 1, 1], [], []>} : vector<256x288xbf16>, vector<288x128xbf16>, vector<256x128xf32> -> vector<256x128xf32>
    %c0_3 = arith.constant 0 : index
    %c0_4 = arith.constant 0 : index
    %3 = vector.load %arg3[%c0_3, %c0_4] : memref<1x128xf32, #tpu.memory_space<vmem>>, vector<1x128xf32>
    %4 = vector.broadcast %3 : vector<1x128xf32> to vector<256x128xf32>
    %5 = arith.addf %2, %4 : vector<256x128xf32>
    %c0_5 = arith.constant 0 : index
    %c0_6 = arith.constant 0 : index
    %6 = vector.load %arg4[%c0_5, %c0_6] : memref<256x128xf32, #tpu.memory_space<vmem>>, vector<256x128xf32>
    tpu.vector_store %arg4[%c0_5, %c0_6], %5 {strides = array<i32>} : memref<256x128xf32, #tpu.memory_space<vmem>>, vector<256x128xf32>,
    return
  }
  func.func @transform_0(%arg0: i32) -> (i32, i32) {
    %c0_i32 = arith.constant 0 : i32
    %c0_i32_0 = arith.constant 0 : i32
    return %arg0, %c0_i32 : i32, i32
  }
  func.func @transform_1(%arg0: i32) -> (i32, i32) {
    %c0_i32 = arith.constant 0 : i32
    %c0_i32_0 = arith.constant 0 : i32
    %c0_i32_1 = arith.constant 0 : i32
    return %c0_i32, %c0_i32_0 : i32, i32
  }
  func.func @transform_2(%arg0: i32) -> (i32, i32) {
    %c0_i32 = arith.constant 0 : i32
    %c0_i32_0 = arith.constant 0 : i32
    %c0_i32_1 = arith.constant 0 : i32
    return %c0_i32, %c0_i32_0 : i32, i32
  }
  func.func @transform_3(%arg0: i32) -> (i32, i32) {
    %c0_i32 = arith.constant 0 : i32
    %c0_i32_0 = arith.constant 0 : i32
    return %arg0, %c0_i32 : i32, i32
  }
}

module attributes {stable_mosaic.version = 11 : i64} {
  func.func @kernel(%arg0: i32, %arg1: memref<256x144xbf16, #tpu.memory_space<vmem>>, %arg2: memref<256x8xf32, #tpu.memory_space<vmem>>, %arg3: memref<144x128xbf16, #tpu.memory_space<vmem>>, %arg4: memref<1x128xf32, #tpu.memory_space<vmem>>, %arg5: memref<256x8xbf16, #tpu.memory_space<vmem>>, %arg6: memref<256x8xf32, #tpu.memory_space<vmem>>) attributes {dimension_semantics = [#tpu.dimension_semantics<parallel>], iteration_bounds = array<i64: 2>, scalar_prefetch = 0 : i64, scratch_operands = 0 : i64, tpu.core_type = #tpu.core_type<tc>, window_params = [{transform_indices = @transform_0, window_bounds = array<i64: 256, 144>}, {transform_indices = @transform_1, window_bounds = array<i64: 256, 8>}, {pipeline_mode = #tpu.pipeline_mode<synchronous>, transform_indices = @transform_2, window_bounds = array<i64: 144, 128>}, {pipeline_mode = #tpu.pipeline_mode<synchronous>, transform_indices = @transform_3, window_bounds = array<i64: 1, 128>}, {transform_indices = @transform_4, window_bounds = array<i64: 256, 8>}, {transform_indices = @transform_5, window_bounds = array<i64: 256, 8>}]} {
    %c0 = arith.constant 0 : index
    %c0_0 = arith.constant 0 : index
    %0 = vector.load %arg1[%c0, %c0_0] : memref<256x144xbf16, #tpu.memory_space<vmem>>, vector<256x144xbf16>
    %c0_1 = arith.constant 0 : index
    %c0_2 = arith.constant 0 : index
    %1 = vector.load %arg3[%c0_1, %c0_2] : memref<144x128xbf16, #tpu.memory_space<vmem>>, vector<144x128xbf16>
    %cst = arith.constant dense<0.000000e+00> : vector<256x128xf32>
    %2 = tpu.matmul %0, %1, %cst {dimension_numbers = #tpu.dot_dimension_numbers<[1], [0], [0], [1], [0, 0, 1, 1], [], []>} : vector<256x144xbf16>, vector<144x128xbf16>, vector<256x128xf32> -> vector<256x128xf32>
    %c0_3 = arith.constant 0 : index
    %c0_4 = arith.constant 0 : index
    %3 = vector.load %arg4[%c0_3, %c0_4] : memref<1x128xf32, #tpu.memory_space<vmem>>, vector<1x128xf32>
    %4 = vector.broadcast %3 : vector<1x128xf32> to vector<256x128xf32>
    %5 = arith.addf %2, %4 : vector<256x128xf32>
    %6 = vector.extract_strided_slice %5 {offsets = [0, 0], sizes = [256, 8], strides = [1, 1]} : vector<256x128xf32> to vector<256x8xf32>
    %cst_5 = arith.constant 0.000000e+00 : f32
    %7 = vector.broadcast %cst_5 : f32 to vector<256x8xf32>
    %8 = arith.subf %7, %6 : vector<256x8xf32>
    %9 = math.exp %8 : vector<256x8xf32>
    %cst_6 = arith.constant 1.000000e+00 : f32
    %10 = vector.broadcast %cst_6 : f32 to vector<256x8xf32>
    %11 = arith.addf %10, %9 : vector<256x8xf32>
    %cst_7 = arith.constant 1.000000e+00 : f32
    %12 = vector.broadcast %cst_7 : f32 to vector<256x8xf32>
    %13 = arith.divf %12, %11 : vector<256x8xf32>
    %14 = vector.extract_strided_slice %5 {offsets = [0, 8], sizes = [256, 8], strides = [1, 1]} : vector<256x128xf32> to vector<256x8xf32>
    %cst_8 = arith.constant 0.000000e+00 : f32
    %15 = vector.broadcast %cst_8 : f32 to vector<256x8xf32>
    %16 = arith.subf %15, %14 : vector<256x8xf32>
    %17 = math.exp %16 : vector<256x8xf32>
    %cst_9 = arith.constant 1.000000e+00 : f32
    %18 = vector.broadcast %cst_9 : f32 to vector<256x8xf32>
    %19 = arith.addf %18, %17 : vector<256x8xf32>
    %cst_10 = arith.constant 1.000000e+00 : f32
    %20 = vector.broadcast %cst_10 : f32 to vector<256x8xf32>
    %21 = arith.divf %20, %19 : vector<256x8xf32>
    %c0_11 = arith.constant 0 : index
    %c0_12 = arith.constant 0 : index
    %22 = vector.load %arg2[%c0_11, %c0_12] : memref<256x8xf32, #tpu.memory_space<vmem>>, vector<256x8xf32>
    %23 = arith.mulf %13, %22 : vector<256x8xf32>
    %24 = arith.truncf %23 : vector<256x8xf32> to vector<256x8xbf16>
    %c0_13 = arith.constant 0 : index
    %c0_14 = arith.constant 0 : index
    %25 = vector.load %arg5[%c0_13, %c0_14] : memref<256x8xbf16, #tpu.memory_space<vmem>>, vector<256x8xbf16>
    tpu.vector_store %arg5[%c0_13, %c0_14], %24 {strides = array<i32>} : memref<256x8xbf16, #tpu.memory_space<vmem>>, vector<256x8xbf16>,
    %c0_15 = arith.constant 0 : index
    %c0_16 = arith.constant 0 : index
    %26 = vector.load %arg6[%c0_15, %c0_16] : memref<256x8xf32, #tpu.memory_space<vmem>>, vector<256x8xf32>
    tpu.vector_store %arg6[%c0_15, %c0_16], %21 {strides = array<i32>} : memref<256x8xf32, #tpu.memory_space<vmem>>, vector<256x8xf32>,
    return
  }
  func.func @transform_0(%arg0: i32) -> (i32, i32) {
    %c0_i32 = arith.constant 0 : i32
    %c0_i32_0 = arith.constant 0 : i32
    return %arg0, %c0_i32 : i32, i32
  }
  func.func @transform_1(%arg0: i32) -> (i32, i32) {
    %c0_i32 = arith.constant 0 : i32
    %c0_i32_0 = arith.constant 0 : i32
    return %arg0, %c0_i32 : i32, i32
  }
  func.func @transform_2(%arg0: i32) -> (i32, i32) {
    %c0_i32 = arith.constant 0 : i32
    %c0_i32_0 = arith.constant 0 : i32
    %c0_i32_1 = arith.constant 0 : i32
    return %c0_i32, %c0_i32_0 : i32, i32
  }
  func.func @transform_3(%arg0: i32) -> (i32, i32) {
    %c0_i32 = arith.constant 0 : i32
    %c0_i32_0 = arith.constant 0 : i32
    %c0_i32_1 = arith.constant 0 : i32
    return %c0_i32, %c0_i32_0 : i32, i32
  }
  func.func @transform_4(%arg0: i32) -> (i32, i32) {
    %c0_i32 = arith.constant 0 : i32
    %c0_i32_0 = arith.constant 0 : i32
    return %arg0, %c0_i32 : i32, i32
  }
  func.func @transform_5(%arg0: i32) -> (i32, i32) {
    %c0_i32 = arith.constant 0 : i32
    %c0_i32_0 = arith.constant 0 : i32
    return %arg0, %c0_i32 : i32, i32
  }
}

module attributes {stable_mosaic.version = 11 : i64} {
  func.func @kernel(%arg0: i32, %arg1: memref<256x144xbf16, #tpu.memory_space<vmem>>, %arg2: memref<256x72xbf16, #tpu.memory_space<vmem>>, %arg3: memref<256x8xf32, #tpu.memory_space<vmem>>, %arg4: memref<256x8xf32, #tpu.memory_space<vmem>>, %arg5: memref<256x8xf32, #tpu.memory_space<vmem>>, %arg6: memref<256x8xf32, #tpu.memory_space<vmem>>, %arg7: memref<144x128xbf16, #tpu.memory_space<vmem>>, %arg8: memref<72x128xbf16, #tpu.memory_space<vmem>>, %arg9: memref<1x128xf32, #tpu.memory_space<vmem>>, %arg10: memref<256x8xf32, #tpu.memory_space<vmem>>) attributes {dimension_semantics = [#tpu.dimension_semantics<parallel>], iteration_bounds = array<i64: 2>, scalar_prefetch = 0 : i64, scratch_operands = 0 : i64, tpu.core_type = #tpu.core_type<tc>, window_params = [{transform_indices = @transform_0, window_bounds = array<i64: 256, 144>}, {transform_indices = @transform_1, window_bounds = array<i64: 256, 72>}, {transform_indices = @transform_2, window_bounds = array<i64: 256, 8>}, {transform_indices = @transform_3, window_bounds = array<i64: 256, 8>}, {transform_indices = @transform_4, window_bounds = array<i64: 256, 8>}, {transform_indices = @transform_5, window_bounds = array<i64: 256, 8>}, {pipeline_mode = #tpu.pipeline_mode<synchronous>, transform_indices = @transform_6, window_bounds = array<i64: 144, 128>}, {pipeline_mode = #tpu.pipeline_mode<synchronous>, transform_indices = @transform_7, window_bounds = array<i64: 72, 128>}, {pipeline_mode = #tpu.pipeline_mode<synchronous>, transform_indices = @transform_8, window_bounds = array<i64: 1, 128>}, {transform_indices = @transform_9, window_bounds = array<i64: 256, 8>}]} {
    %c0 = arith.constant 0 : index
    %c0_0 = arith.constant 0 : index
    %0 = vector.load %arg1[%c0, %c0_0] : memref<256x144xbf16, #tpu.memory_space<vmem>>, vector<256x144xbf16>
    %c0_1 = arith.constant 0 : index
    %c0_2 = arith.constant 0 : index
    %1 = vector.load %arg7[%c0_1, %c0_2] : memref<144x128xbf16, #tpu.memory_space<vmem>>, vector<144x128xbf16>
    %cst = arith.constant dense<0.000000e+00> : vector<256x128xf32>
    %2 = tpu.matmul %0, %1, %cst {dimension_numbers = #tpu.dot_dimension_numbers<[1], [0], [0], [1], [0, 0, 1, 1], [], []>} : vector<256x144xbf16>, vector<144x128xbf16>, vector<256x128xf32> -> vector<256x128xf32>
    %c0_3 = arith.constant 0 : index
    %c0_4 = arith.constant 0 : index
    %3 = vector.load %arg2[%c0_3, %c0_4] : memref<256x72xbf16, #tpu.memory_space<vmem>>, vector<256x72xbf16>
    %c0_5 = arith.constant 0 : index
    %c0_6 = arith.constant 0 : index
    %4 = vector.load %arg8[%c0_5, %c0_6] : memref<72x128xbf16, #tpu.memory_space<vmem>>, vector<72x128xbf16>
    %cst_7 = arith.constant dense<0.000000e+00> : vector<256x128xf32>
    %5 = tpu.matmul %3, %4, %cst_7 {dimension_numbers = #tpu.dot_dimension_numbers<[1], [0], [0], [1], [0, 0, 1, 1], [], []>} : vector<256x72xbf16>, vector<72x128xbf16>, vector<256x128xf32> -> vector<256x128xf32>
    %6 = arith.addf %2, %5 : vector<256x128xf32>
    %7 = vector.extract_strided_slice %6 {offsets = [0, 0], sizes = [256, 8], strides = [1, 1]} : vector<256x128xf32> to vector<256x8xf32>
    %c0_8 = arith.constant 0 : index
    %c0_9 = arith.constant 0 : index
    %8 = vector.load %arg9[%c0_8, %c0_9] : memref<1x128xf32, #tpu.memory_space<vmem>>, vector<1x8xf32>
    %9 = vector.broadcast %8 : vector<1x8xf32> to vector<256x8xf32>
    %10 = arith.addf %7, %9 : vector<256x8xf32>
    %c0_10 = arith.constant 0 : index
    %c0_11 = arith.constant 0 : index
    %11 = vector.load %arg5[%c0_10, %c0_11] : memref<256x8xf32, #tpu.memory_space<vmem>>, vector<256x8xf32>
    %cst_12 = arith.constant 1.000000e+00 : f32
    %12 = vector.broadcast %cst_12 : f32 to vector<256x8xf32>
    %13 = arith.addf %12, %11 : vector<256x8xf32>
    %14 = arith.mulf %10, %13 : vector<256x8xf32>
    %c0_13 = arith.constant 0 : index
    %c0_14 = arith.constant 0 : index
    %15 = vector.load %arg6[%c0_13, %c0_14] : memref<256x8xf32, #tpu.memory_space<vmem>>, vector<256x8xf32>
    %16 = arith.addf %14, %15 : vector<256x8xf32>
    %17 = math.tanh %16 : vector<256x8xf32>
    %c0_15 = arith.constant 0 : index
    %c0_16 = arith.constant 0 : index
    %18 = vector.load %arg4[%c0_15, %c0_16] : memref<256x8xf32, #tpu.memory_space<vmem>>, vector<256x8xf32>
    %cst_17 = arith.constant 1.000000e+00 : f32
    %19 = vector.broadcast %cst_17 : f32 to vector<256x8xf32>
    %20 = arith.subf %19, %18 : vector<256x8xf32>
    %21 = arith.mulf %20, %17 : vector<256x8xf32>
    %c0_18 = arith.constant 0 : index
    %c0_19 = arith.constant 0 : index
    %22 = vector.load %arg3[%c0_18, %c0_19] : memref<256x8xf32, #tpu.memory_space<vmem>>, vector<256x8xf32>
    %23 = arith.mulf %18, %22 : vector<256x8xf32>
    %24 = arith.addf %21, %23 : vector<256x8xf32>
    %c0_20 = arith.constant 0 : index
    %c0_21 = arith.constant 0 : index
    %25 = vector.load %arg10[%c0_20, %c0_21] : memref<256x8xf32, #tpu.memory_space<vmem>>, vector<256x8xf32>
    tpu.vector_store %arg10[%c0_20, %c0_21], %24 {strides = array<i32>} : memref<256x8xf32, #tpu.memory_space<vmem>>, vector<256x8xf32>,
    return
  }
  func.func @transform_0(%arg0: i32) -> (i32, i32) {
    %c0_i32 = arith.constant 0 : i32
    %c0_i32_0 = arith.constant 0 : i32
    return %arg0, %c0_i32 : i32, i32
  }
  func.func @transform_1(%arg0: i32) -> (i32, i32) {
    %c0_i32 = arith.constant 0 : i32
    %c0_i32_0 = arith.constant 0 : i32
    return %arg0, %c0_i32 : i32, i32
  }
  func.func @transform_2(%arg0: i32) -> (i32, i32) {
    %c0_i32 = arith.constant 0 : i32
    %c0_i32_0 = arith.constant 0 : i32
    return %arg0, %c0_i32 : i32, i32
  }
  func.func @transform_3(%arg0: i32) -> (i32, i32) {
    %c0_i32 = arith.constant 0 : i32
    %c0_i32_0 = arith.constant 0 : i32
    return %arg0, %c0_i32 : i32, i32
  }
  func.func @transform_4(%arg0: i32) -> (i32, i32) {
    %c0_i32 = arith.constant 0 : i32
    %c0_i32_0 = arith.constant 0 : i32
    return %arg0, %c0_i32 : i32, i32
  }
  func.func @transform_5(%arg0: i32) -> (i32, i32) {
    %c0_i32 = arith.constant 0 : i32
    %c0_i32_0 = arith.constant 0 : i32
    return %arg0, %c0_i32 : i32, i32
  }
  func.func @transform_6(%arg0: i32) -> (i32, i32) {
    %c0_i32 = arith.constant 0 : i32
    %c0_i32_0 = arith.constant 0 : i32
    %c0_i32_1 = arith.constant 0 : i32
    return %c0_i32, %c0_i32_0 : i32, i32
  }
  func.func @transform_7(%arg0: i32) -> (i32, i32) {
    %c0_i32 = arith.constant 0 : i32
    %c0_i32_0 = arith.constant 0 : i32
    %c0_i32_1 = arith.constant 0 : i32
    return %c0_i32, %c0_i32_0 : i32, i32
  }
  func.func @transform_8(%arg0: i32) -> (i32, i32) {
    %c0_i32 = arith.constant 0 : i32
    %c0_i32_0 = arith.constant 0 : i32
    %c0_i32_1 = arith.constant 0 : i32
    return %c0_i32, %c0_i32_0 : i32, i32
  }
  func.func @transform_9(%arg0: i32) -> (i32, i32) {
    %c0_i32 = arith.constant 0 : i32
    %c0_i32_0 = arith.constant 0 : i32
    return %arg0, %c0_i32 : i32, i32
  }
}

module attributes {stable_mosaic.version = 11 : i64} {
  func.func @_matmul_bias_kernel(%arg0: i32, %arg1: memref<128x72xbf16, #tpu.memory_space<vmem>>, %arg2: memref<72x128xbf16, #tpu.memory_space<vmem>>, %arg3: memref<1x128xf32, #tpu.memory_space<vmem>>, %arg4: memref<128x128xf32, #tpu.memory_space<vmem>>) attributes {dimension_semantics = [#tpu.dimension_semantics<parallel>], iteration_bounds = array<i64: 1>, scalar_prefetch = 0 : i64, scratch_operands = 0 : i64, tpu.core_type = #tpu.core_type<tc>, window_params = [{transform_indices = @transform_0, window_bounds = array<i64: 128, 72>}, {pipeline_mode = #tpu.pipeline_mode<synchronous>, transform_indices = @transform_1, window_bounds = array<i64: 72, 128>}, {pipeline_mode = #tpu.pipeline_mode<synchronous>, transform_indices = @transform_2, window_bounds = array<i64: 1, 128>}, {transform_indices = @transform_3, window_bounds = array<i64: 128, 128>}]} {
    %c0 = arith.constant 0 : index
    %c0_0 = arith.constant 0 : index
    %0 = vector.load %arg1[%c0, %c0_0] : memref<128x72xbf16, #tpu.memory_space<vmem>>, vector<128x72xbf16>
    %c0_1 = arith.constant 0 : index
    %c0_2 = arith.constant 0 : index
    %1 = vector.load %arg2[%c0_1, %c0_2] : memref<72x128xbf16, #tpu.memory_space<vmem>>, vector<72x128xbf16>
    %cst = arith.constant dense<0.000000e+00> : vector<128x128xf32>
    %2 = tpu.matmul %0, %1, %cst {dimension_numbers = #tpu.dot_dimension_numbers<[1], [0], [0], [1], [0, 0, 1, 1], [], []>} : vector<128x72xbf16>, vector<72x128xbf16>, vector<128x128xf32> -> vector<128x128xf32>
    %c0_3 = arith.constant 0 : index
    %c0_4 = arith.constant 0 : index
    %3 = vector.load %arg3[%c0_3, %c0_4] : memref<1x128xf32, #tpu.memory_space<vmem>>, vector<1x128xf32>
    %4 = vector.broadcast %3 : vector<1x128xf32> to vector<128x128xf32>
    %5 = arith.addf %2, %4 : vector<128x128xf32>
    %c0_5 = arith.constant 0 : index
    %c0_6 = arith.constant 0 : index
    %6 = vector.load %arg4[%c0_5, %c0_6] : memref<128x128xf32, #tpu.memory_space<vmem>>, vector<128x128xf32>
    tpu.vector_store %arg4[%c0_5, %c0_6], %5 {strides = array<i32>} : memref<128x128xf32, #tpu.memory_space<vmem>>, vector<128x128xf32>,
    return
  }
  func.func @transform_0(%arg0: i32) -> (i32, i32) {
    %c0_i32 = arith.constant 0 : i32
    %c0_i32_0 = arith.constant 0 : i32
    return %arg0, %c0_i32 : i32, i32
  }
  func.func @transform_1(%arg0: i32) -> (i32, i32) {
    %c0_i32 = arith.constant 0 : i32
    %c0_i32_0 = arith.constant 0 : i32
    %c0_i32_1 = arith.constant 0 : i32
    return %c0_i32, %c0_i32_0 : i32, i32
  }
  func.func @transform_2(%arg0: i32) -> (i32, i32) {
    %c0_i32 = arith.constant 0 : i32
    %c0_i32_0 = arith.constant 0 : i32
    %c0_i32_1 = arith.constant 0 : i32
    return %c0_i32, %c0_i32_0 : i32, i32
  }
  func.func @transform_3(%arg0: i32) -> (i32, i32) {
    %c0_i32 = arith.constant 0 : i32
    %c0_i32_0 = arith.constant 0 : i32
    return %arg0, %c0_i32 : i32, i32
  }
}

module attributes {stable_mosaic.version = 11 : i64} {
  func.func @_matmul_bias_kernel(%arg0: i32, %arg1: memref<128x288xbf16, #tpu.memory_space<vmem>>, %arg2: memref<288x128xbf16, #tpu.memory_space<vmem>>, %arg3: memref<1x128xf32, #tpu.memory_space<vmem>>, %arg4: memref<128x128xf32, #tpu.memory_space<vmem>>) attributes {dimension_semantics = [#tpu.dimension_semantics<parallel>], iteration_bounds = array<i64: 1>, scalar_prefetch = 0 : i64, scratch_operands = 0 : i64, tpu.core_type = #tpu.core_type<tc>, window_params = [{transform_indices = @transform_0, window_bounds = array<i64: 128, 288>}, {pipeline_mode = #tpu.pipeline_mode<synchronous>, transform_indices = @transform_1, window_bounds = array<i64: 288, 128>}, {pipeline_mode = #tpu.pipeline_mode<synchronous>, transform_indices = @transform_2, window_bounds = array<i64: 1, 128>}, {transform_indices = @transform_3, window_bounds = array<i64: 128, 128>}]} {
    %c0 = arith.constant 0 : index
    %c0_0 = arith.constant 0 : index
    %0 = vector.load %arg1[%c0, %c0_0] : memref<128x288xbf16, #tpu.memory_space<vmem>>, vector<128x288xbf16>
    %c0_1 = arith.constant 0 : index
    %c0_2 = arith.constant 0 : index
    %1 = vector.load %arg2[%c0_1, %c0_2] : memref<288x128xbf16, #tpu.memory_space<vmem>>, vector<288x128xbf16>
    %cst = arith.constant dense<0.000000e+00> : vector<128x128xf32>
    %2 = tpu.matmul %0, %1, %cst {dimension_numbers = #tpu.dot_dimension_numbers<[1], [0], [0], [1], [0, 0, 1, 1], [], []>} : vector<128x288xbf16>, vector<288x128xbf16>, vector<128x128xf32> -> vector<128x128xf32>
    %c0_3 = arith.constant 0 : index
    %c0_4 = arith.constant 0 : index
    %3 = vector.load %arg3[%c0_3, %c0_4] : memref<1x128xf32, #tpu.memory_space<vmem>>, vector<1x128xf32>
    %4 = vector.broadcast %3 : vector<1x128xf32> to vector<128x128xf32>
    %5 = arith.addf %2, %4 : vector<128x128xf32>
    %c0_5 = arith.constant 0 : index
    %c0_6 = arith.constant 0 : index
    %6 = vector.load %arg4[%c0_5, %c0_6] : memref<128x128xf32, #tpu.memory_space<vmem>>, vector<128x128xf32>
    tpu.vector_store %arg4[%c0_5, %c0_6], %5 {strides = array<i32>} : memref<128x128xf32, #tpu.memory_space<vmem>>, vector<128x128xf32>,
    return
  }
  func.func @transform_0(%arg0: i32) -> (i32, i32) {
    %c0_i32 = arith.constant 0 : i32
    %c0_i32_0 = arith.constant 0 : i32
    return %arg0, %c0_i32 : i32, i32
  }
  func.func @transform_1(%arg0: i32) -> (i32, i32) {
    %c0_i32 = arith.constant 0 : i32
    %c0_i32_0 = arith.constant 0 : i32
    %c0_i32_1 = arith.constant 0 : i32
    return %c0_i32, %c0_i32_0 : i32, i32
  }
  func.func @transform_2(%arg0: i32) -> (i32, i32) {
    %c0_i32 = arith.constant 0 : i32
    %c0_i32_0 = arith.constant 0 : i32
    %c0_i32_1 = arith.constant 0 : i32
    return %c0_i32, %c0_i32_0 : i32, i32
  }
  func.func @transform_3(%arg0: i32) -> (i32, i32) {
    %c0_i32 = arith.constant 0 : i32
    %c0_i32_0 = arith.constant 0 : i32
    return %arg0, %c0_i32 : i32, i32
  }
}

module attributes {stable_mosaic.version = 11 : i64} {
  func.func @kernel(%arg0: i32, %arg1: memref<128x144xbf16, #tpu.memory_space<vmem>>, %arg2: memref<128x8xf32, #tpu.memory_space<vmem>>, %arg3: memref<144x128xbf16, #tpu.memory_space<vmem>>, %arg4: memref<1x128xf32, #tpu.memory_space<vmem>>, %arg5: memref<128x8xbf16, #tpu.memory_space<vmem>>, %arg6: memref<128x8xf32, #tpu.memory_space<vmem>>) attributes {dimension_semantics = [#tpu.dimension_semantics<parallel>], iteration_bounds = array<i64: 1>, scalar_prefetch = 0 : i64, scratch_operands = 0 : i64, tpu.core_type = #tpu.core_type<tc>, window_params = [{transform_indices = @transform_0, window_bounds = array<i64: 128, 144>}, {transform_indices = @transform_1, window_bounds = array<i64: 128, 8>}, {pipeline_mode = #tpu.pipeline_mode<synchronous>, transform_indices = @transform_2, window_bounds = array<i64: 144, 128>}, {pipeline_mode = #tpu.pipeline_mode<synchronous>, transform_indices = @transform_3, window_bounds = array<i64: 1, 128>}, {transform_indices = @transform_4, window_bounds = array<i64: 128, 8>}, {transform_indices = @transform_5, window_bounds = array<i64: 128, 8>}]} {
    %c0 = arith.constant 0 : index
    %c0_0 = arith.constant 0 : index
    %0 = vector.load %arg1[%c0, %c0_0] : memref<128x144xbf16, #tpu.memory_space<vmem>>, vector<128x144xbf16>
    %c0_1 = arith.constant 0 : index
    %c0_2 = arith.constant 0 : index
    %1 = vector.load %arg3[%c0_1, %c0_2] : memref<144x128xbf16, #tpu.memory_space<vmem>>, vector<144x128xbf16>
    %cst = arith.constant dense<0.000000e+00> : vector<128x128xf32>
    %2 = tpu.matmul %0, %1, %cst {dimension_numbers = #tpu.dot_dimension_numbers<[1], [0], [0], [1], [0, 0, 1, 1], [], []>} : vector<128x144xbf16>, vector<144x128xbf16>, vector<128x128xf32> -> vector<128x128xf32>
    %c0_3 = arith.constant 0 : index
    %c0_4 = arith.constant 0 : index
    %3 = vector.load %arg4[%c0_3, %c0_4] : memref<1x128xf32, #tpu.memory_space<vmem>>, vector<1x128xf32>
    %4 = vector.broadcast %3 : vector<1x128xf32> to vector<128x128xf32>
    %5 = arith.addf %2, %4 : vector<128x128xf32>
    %6 = vector.extract_strided_slice %5 {offsets = [0, 0], sizes = [128, 8], strides = [1, 1]} : vector<128x128xf32> to vector<128x8xf32>
    %cst_5 = arith.constant 0.000000e+00 : f32
    %7 = vector.broadcast %cst_5 : f32 to vector<128x8xf32>
    %8 = arith.subf %7, %6 : vector<128x8xf32>
    %9 = math.exp %8 : vector<128x8xf32>
    %cst_6 = arith.constant 1.000000e+00 : f32
    %10 = vector.broadcast %cst_6 : f32 to vector<128x8xf32>
    %11 = arith.addf %10, %9 : vector<128x8xf32>
    %cst_7 = arith.constant 1.000000e+00 : f32
    %12 = vector.broadcast %cst_7 : f32 to vector<128x8xf32>
    %13 = arith.divf %12, %11 : vector<128x8xf32>
    %14 = vector.extract_strided_slice %5 {offsets = [0, 8], sizes = [128, 8], strides = [1, 1]} : vector<128x128xf32> to vector<128x8xf32>
    %cst_8 = arith.constant 0.000000e+00 : f32
    %15 = vector.broadcast %cst_8 : f32 to vector<128x8xf32>
    %16 = arith.subf %15, %14 : vector<128x8xf32>
    %17 = math.exp %16 : vector<128x8xf32>
    %cst_9 = arith.constant 1.000000e+00 : f32
    %18 = vector.broadcast %cst_9 : f32 to vector<128x8xf32>
    %19 = arith.addf %18, %17 : vector<128x8xf32>
    %cst_10 = arith.constant 1.000000e+00 : f32
    %20 = vector.broadcast %cst_10 : f32 to vector<128x8xf32>
    %21 = arith.divf %20, %19 : vector<128x8xf32>
    %c0_11 = arith.constant 0 : index
    %c0_12 = arith.constant 0 : index
    %22 = vector.load %arg2[%c0_11, %c0_12] : memref<128x8xf32, #tpu.memory_space<vmem>>, vector<128x8xf32>
    %23 = arith.mulf %13, %22 : vector<128x8xf32>
    %24 = arith.truncf %23 : vector<128x8xf32> to vector<128x8xbf16>
    %c0_13 = arith.constant 0 : index
    %c0_14 = arith.constant 0 : index
    %25 = vector.load %arg5[%c0_13, %c0_14] : memref<128x8xbf16, #tpu.memory_space<vmem>>, vector<128x8xbf16>
    tpu.vector_store %arg5[%c0_13, %c0_14], %24 {strides = array<i32>} : memref<128x8xbf16, #tpu.memory_space<vmem>>, vector<128x8xbf16>,
    %c0_15 = arith.constant 0 : index
    %c0_16 = arith.constant 0 : index
    %26 = vector.load %arg6[%c0_15, %c0_16] : memref<128x8xf32, #tpu.memory_space<vmem>>, vector<128x8xf32>
    tpu.vector_store %arg6[%c0_15, %c0_16], %21 {strides = array<i32>} : memref<128x8xf32, #tpu.memory_space<vmem>>, vector<128x8xf32>,
    return
  }
  func.func @transform_0(%arg0: i32) -> (i32, i32) {
    %c0_i32 = arith.constant 0 : i32
    %c0_i32_0 = arith.constant 0 : i32
    return %arg0, %c0_i32 : i32, i32
  }
  func.func @transform_1(%arg0: i32) -> (i32, i32) {
    %c0_i32 = arith.constant 0 : i32
    %c0_i32_0 = arith.constant 0 : i32
    return %arg0, %c0_i32 : i32, i32
  }
  func.func @transform_2(%arg0: i32) -> (i32, i32) {
    %c0_i32 = arith.constant 0 : i32
    %c0_i32_0 = arith.constant 0 : i32
    %c0_i32_1 = arith.constant 0 : i32
    return %c0_i32, %c0_i32_0 : i32, i32
  }
  func.func @transform_3(%arg0: i32) -> (i32, i32) {
    %c0_i32 = arith.constant 0 : i32
    %c0_i32_0 = arith.constant 0 : i32
    %c0_i32_1 = arith.constant 0 : i32
    return %c0_i32, %c0_i32_0 : i32, i32
  }
  func.func @transform_4(%arg0: i32) -> (i32, i32) {
    %c0_i32 = arith.constant 0 : i32
    %c0_i32_0 = arith.constant 0 : i32
    return %arg0, %c0_i32 : i32, i32
  }
  func.func @transform_5(%arg0: i32) -> (i32, i32) {
    %c0_i32 = arith.constant 0 : i32
    %c0_i32_0 = arith.constant 0 : i32
    return %arg0, %c0_i32 : i32, i32
  }
}

module attributes {stable_mosaic.version = 11 : i64} {
  func.func @kernel(%arg0: i32, %arg1: memref<128x144xbf16, #tpu.memory_space<vmem>>, %arg2: memref<128x72xbf16, #tpu.memory_space<vmem>>, %arg3: memref<128x8xf32, #tpu.memory_space<vmem>>, %arg4: memref<128x8xf32, #tpu.memory_space<vmem>>, %arg5: memref<128x8xf32, #tpu.memory_space<vmem>>, %arg6: memref<128x8xf32, #tpu.memory_space<vmem>>, %arg7: memref<144x128xbf16, #tpu.memory_space<vmem>>, %arg8: memref<72x128xbf16, #tpu.memory_space<vmem>>, %arg9: memref<1x128xf32, #tpu.memory_space<vmem>>, %arg10: memref<128x8xf32, #tpu.memory_space<vmem>>) attributes {dimension_semantics = [#tpu.dimension_semantics<parallel>], iteration_bounds = array<i64: 1>, scalar_prefetch = 0 : i64, scratch_operands = 0 : i64, tpu.core_type = #tpu.core_type<tc>, window_params = [{transform_indices = @transform_0, window_bounds = array<i64: 128, 144>}, {transform_indices = @transform_1, window_bounds = array<i64: 128, 72>}, {transform_indices = @transform_2, window_bounds = array<i64: 128, 8>}, {transform_indices = @transform_3, window_bounds = array<i64: 128, 8>}, {transform_indices = @transform_4, window_bounds = array<i64: 128, 8>}, {transform_indices = @transform_5, window_bounds = array<i64: 128, 8>}, {pipeline_mode = #tpu.pipeline_mode<synchronous>, transform_indices = @transform_6, window_bounds = array<i64: 144, 128>}, {pipeline_mode = #tpu.pipeline_mode<synchronous>, transform_indices = @transform_7, window_bounds = array<i64: 72, 128>}, {pipeline_mode = #tpu.pipeline_mode<synchronous>, transform_indices = @transform_8, window_bounds = array<i64: 1, 128>}, {transform_indices = @transform_9, window_bounds = array<i64: 128, 8>}]} {
    %c0 = arith.constant 0 : index
    %c0_0 = arith.constant 0 : index
    %0 = vector.load %arg1[%c0, %c0_0] : memref<128x144xbf16, #tpu.memory_space<vmem>>, vector<128x144xbf16>
    %c0_1 = arith.constant 0 : index
    %c0_2 = arith.constant 0 : index
    %1 = vector.load %arg7[%c0_1, %c0_2] : memref<144x128xbf16, #tpu.memory_space<vmem>>, vector<144x128xbf16>
    %cst = arith.constant dense<0.000000e+00> : vector<128x128xf32>
    %2 = tpu.matmul %0, %1, %cst {dimension_numbers = #tpu.dot_dimension_numbers<[1], [0], [0], [1], [0, 0, 1, 1], [], []>} : vector<128x144xbf16>, vector<144x128xbf16>, vector<128x128xf32> -> vector<128x128xf32>
    %c0_3 = arith.constant 0 : index
    %c0_4 = arith.constant 0 : index
    %3 = vector.load %arg2[%c0_3, %c0_4] : memref<128x72xbf16, #tpu.memory_space<vmem>>, vector<128x72xbf16>
    %c0_5 = arith.constant 0 : index
    %c0_6 = arith.constant 0 : index
    %4 = vector.load %arg8[%c0_5, %c0_6] : memref<72x128xbf16, #tpu.memory_space<vmem>>, vector<72x128xbf16>
    %cst_7 = arith.constant dense<0.000000e+00> : vector<128x128xf32>
    %5 = tpu.matmul %3, %4, %cst_7 {dimension_numbers = #tpu.dot_dimension_numbers<[1], [0], [0], [1], [0, 0, 1, 1], [], []>} : vector<128x72xbf16>, vector<72x128xbf16>, vector<128x128xf32> -> vector<128x128xf32>
    %6 = arith.addf %2, %5 : vector<128x128xf32>
    %7 = vector.extract_strided_slice %6 {offsets = [0, 0], sizes = [128, 8], strides = [1, 1]} : vector<128x128xf32> to vector<128x8xf32>
    %c0_8 = arith.constant 0 : index
    %c0_9 = arith.constant 0 : index
    %8 = vector.load %arg9[%c0_8, %c0_9] : memref<1x128xf32, #tpu.memory_space<vmem>>, vector<1x8xf32>
    %9 = vector.broadcast %8 : vector<1x8xf32> to vector<128x8xf32>
    %10 = arith.addf %7, %9 : vector<128x8xf32>
    %c0_10 = arith.constant 0 : index
    %c0_11 = arith.constant 0 : index
    %11 = vector.load %arg5[%c0_10, %c0_11] : memref<128x8xf32, #tpu.memory_space<vmem>>, vector<128x8xf32>
    %cst_12 = arith.constant 1.000000e+00 : f32
    %12 = vector.broadcast %cst_12 : f32 to vector<128x8xf32>
    %13 = arith.addf %12, %11 : vector<128x8xf32>
    %14 = arith.mulf %10, %13 : vector<128x8xf32>
    %c0_13 = arith.constant 0 : index
    %c0_14 = arith.constant 0 : index
    %15 = vector.load %arg6[%c0_13, %c0_14] : memref<128x8xf32, #tpu.memory_space<vmem>>, vector<128x8xf32>
    %16 = arith.addf %14, %15 : vector<128x8xf32>
    %17 = math.tanh %16 : vector<128x8xf32>
    %c0_15 = arith.constant 0 : index
    %c0_16 = arith.constant 0 : index
    %18 = vector.load %arg4[%c0_15, %c0_16] : memref<128x8xf32, #tpu.memory_space<vmem>>, vector<128x8xf32>
    %cst_17 = arith.constant 1.000000e+00 : f32
    %19 = vector.broadcast %cst_17 : f32 to vector<128x8xf32>
    %20 = arith.subf %19, %18 : vector<128x8xf32>
    %21 = arith.mulf %20, %17 : vector<128x8xf32>
    %c0_18 = arith.constant 0 : index
    %c0_19 = arith.constant 0 : index
    %22 = vector.load %arg3[%c0_18, %c0_19] : memref<128x8xf32, #tpu.memory_space<vmem>>, vector<128x8xf32>
    %23 = arith.mulf %18, %22 : vector<128x8xf32>
    %24 = arith.addf %21, %23 : vector<128x8xf32>
    %c0_20 = arith.constant 0 : index
    %c0_21 = arith.constant 0 : index
    %25 = vector.load %arg10[%c0_20, %c0_21] : memref<128x8xf32, #tpu.memory_space<vmem>>, vector<128x8xf32>
    tpu.vector_store %arg10[%c0_20, %c0_21], %24 {strides = array<i32>} : memref<128x8xf32, #tpu.memory_space<vmem>>, vector<128x8xf32>,
    return
  }
  func.func @transform_0(%arg0: i32) -> (i32, i32) {
    %c0_i32 = arith.constant 0 : i32
    %c0_i32_0 = arith.constant 0 : i32
    return %arg0, %c0_i32 : i32, i32
  }
  func.func @transform_1(%arg0: i32) -> (i32, i32) {
    %c0_i32 = arith.constant 0 : i32
    %c0_i32_0 = arith.constant 0 : i32
    return %arg0, %c0_i32 : i32, i32
  }
  func.func @transform_2(%arg0: i32) -> (i32, i32) {
    %c0_i32 = arith.constant 0 : i32
    %c0_i32_0 = arith.constant 0 : i32
    return %arg0, %c0_i32 : i32, i32
  }
  func.func @transform_3(%arg0: i32) -> (i32, i32) {
    %c0_i32 = arith.constant 0 : i32
    %c0_i32_0 = arith.constant 0 : i32
    return %arg0, %c0_i32 : i32, i32
  }
  func.func @transform_4(%arg0: i32) -> (i32, i32) {
    %c0_i32 = arith.constant 0 : i32
    %c0_i32_0 = arith.constant 0 : i32
    return %arg0, %c0_i32 : i32, i32
  }
  func.func @transform_5(%arg0: i32) -> (i32, i32) {
    %c0_i32 = arith.constant 0 : i32
    %c0_i32_0 = arith.constant 0 : i32
    return %arg0, %c0_i32 : i32, i32
  }
  func.func @transform_6(%arg0: i32) -> (i32, i32) {
    %c0_i32 = arith.constant 0 : i32
    %c0_i32_0 = arith.constant 0 : i32
    %c0_i32_1 = arith.constant 0 : i32
    return %c0_i32, %c0_i32_0 : i32, i32
  }
  func.func @transform_7(%arg0: i32) -> (i32, i32) {
    %c0_i32 = arith.constant 0 : i32
    %c0_i32_0 = arith.constant 0 : i32
    %c0_i32_1 = arith.constant 0 : i32
    return %c0_i32, %c0_i32_0 : i32, i32
  }
  func.func @transform_8(%arg0: i32) -> (i32, i32) {
    %c0_i32 = arith.constant 0 : i32
    %c0_i32_0 = arith.constant 0 : i32
    %c0_i32_1 = arith.constant 0 : i32
    return %c0_i32, %c0_i32_0 : i32, i32
  }
  func.func @transform_9(%arg0: i32) -> (i32, i32) {
    %c0_i32 = arith.constant 0 : i32
    %c0_i32_0 = arith.constant 0 : i32
    return %arg0, %c0_i32 : i32, i32
  }
}

module attributes {stable_mosaic.version = 11 : i64} {
  func.func @_matmul_bias_kernel(%arg0: i32, %arg1: memref<128x8xbf16, #tpu.memory_space<vmem>>, %arg2: memref<8x128xbf16, #tpu.memory_space<vmem>>, %arg3: memref<1x128xf32, #tpu.memory_space<vmem>>, %arg4: memref<128x128xf32, #tpu.memory_space<vmem>>) attributes {dimension_semantics = [#tpu.dimension_semantics<parallel>], iteration_bounds = array<i64: 1>, scalar_prefetch = 0 : i64, scratch_operands = 0 : i64, tpu.core_type = #tpu.core_type<tc>, window_params = [{transform_indices = @transform_0, window_bounds = array<i64: 128, 8>}, {pipeline_mode = #tpu.pipeline_mode<synchronous>, transform_indices = @transform_1, window_bounds = array<i64: 8, 128>}, {pipeline_mode = #tpu.pipeline_mode<synchronous>, transform_indices = @transform_2, window_bounds = array<i64: 1, 128>}, {transform_indices = @transform_3, window_bounds = array<i64: 128, 128>}]} {
    %c0 = arith.constant 0 : index
    %c0_0 = arith.constant 0 : index
    %0 = vector.load %arg1[%c0, %c0_0] : memref<128x8xbf16, #tpu.memory_space<vmem>>, vector<128x8xbf16>
    %c0_1 = arith.constant 0 : index
    %c0_2 = arith.constant 0 : index
    %1 = vector.load %arg2[%c0_1, %c0_2] : memref<8x128xbf16, #tpu.memory_space<vmem>>, vector<8x128xbf16>
    %cst = arith.constant dense<0.000000e+00> : vector<128x128xf32>
    %2 = tpu.matmul %0, %1, %cst {dimension_numbers = #tpu.dot_dimension_numbers<[1], [0], [0], [1], [0, 0, 1, 1], [], []>} : vector<128x8xbf16>, vector<8x128xbf16>, vector<128x128xf32> -> vector<128x128xf32>
    %c0_3 = arith.constant 0 : index
    %c0_4 = arith.constant 0 : index
    %3 = vector.load %arg3[%c0_3, %c0_4] : memref<1x128xf32, #tpu.memory_space<vmem>>, vector<1x128xf32>
    %4 = vector.broadcast %3 : vector<1x128xf32> to vector<128x128xf32>
    %5 = arith.addf %2, %4 : vector<128x128xf32>
    %c0_5 = arith.constant 0 : index
    %c0_6 = arith.constant 0 : index
    %6 = vector.load %arg4[%c0_5, %c0_6] : memref<128x128xf32, #tpu.memory_space<vmem>>, vector<128x128xf32>
    tpu.vector_store %arg4[%c0_5, %c0_6], %5 {strides = array<i32>} : memref<128x128xf32, #tpu.memory_space<vmem>>, vector<128x128xf32>,
    return
  }
  func.func @transform_0(%arg0: i32) -> (i32, i32) {
    %c0_i32 = arith.constant 0 : i32
    %c0_i32_0 = arith.constant 0 : i32
    return %arg0, %c0_i32 : i32, i32
  }
  func.func @transform_1(%arg0: i32) -> (i32, i32) {
    %c0_i32 = arith.constant 0 : i32
    %c0_i32_0 = arith.constant 0 : i32
    %c0_i32_1 = arith.constant 0 : i32
    return %c0_i32, %c0_i32_0 : i32, i32
  }
  func.func @transform_2(%arg0: i32) -> (i32, i32) {
    %c0_i32 = arith.constant 0 : i32
    %c0_i32_0 = arith.constant 0 : i32
    %c0_i32_1 = arith.constant 0 : i32
    return %c0_i32, %c0_i32_0 : i32, i32
  }
  func.func @transform_3(%arg0: i32) -> (i32, i32) {
    %c0_i32 = arith.constant 0 : i32
    %c0_i32_0 = arith.constant 0 : i32
    return %arg0, %c0_i32 : i32, i32
  }
}

</mosaic_0001>

<bundles_post_ra>
// kernel: _forward_impl.28
= control target key start
LH: loop header
LB: loop body
LE: loop exit
PB: predicated region body
PF: predicated region fallthrough
CT: control target
= control target key end

     0   :  { %s783_s12 = smov 0   ;;  %s918_s0 = inlined_call_operand.vmem [shape: bf16[512,36], index: 0, kind: input, shape index: {}]   ;;  %s919_s1 = inlined_call_operand.vmem [shape: bf16[36,128], index: 1, kind: input, shape index: {}]   ;;  %s920_s2 = inlined_call_operand.vmem [shape: f32[1,128], index: 2, kind: input, shape index: {}]   ;;  %s921_s3 = inlined_call_operand.vmem [shape: f32[512,128], index: 3, kind: output, shape index: {}]  }
   0x1 LB: > { %s616_s13 = sadd.s32 4294967295, %s761_s12   ;;  %p620_p0 = scmp.ge.s32.totalorder %s761_s12, 1  ;;  %s761_s12 = sphi %s783_s12, %s13_s12  }
   0x2   : > { %p138_p1 = scmp.lt.s32.totalorder %s761_s12, 3 }
   0x4   : > { %p139_p2 = pnand %p620_p0, %p138_p1 }
   0x5   : > { %s621_s18 = sshll.u32 (!%p139_p2), %s616_s13, 5 }
   0x6   : > { %142 = sbr.rel (%p139_p2) target bundleno = 250 (0xfa), region = 32  ;;  %p163_p3 = scmp.lt.s32.totalorder (!%p139_p2), %s621_s18, 63 }
   0xb   : > { %v736_v0 = vld [vmem:[%s919_s1 + $0x10] ss:$0 sps:$4 sm:$0x33]   ;;  %vm363_vm0 = vcmask 1041408   ;;  %v737_v1 = vld [vmem:[%s919_s1 + $0x8] sm:$0xff]   ;;  %v738_v3 = vld [vmem:[%s919_s1] sm:$0xff]  }
   0xc   : > { %726 = vmatprep.subr.msk.bf16.mxu0 %vm363_vm0, %v736_v0  ;;  %727 = vmatprep.subr.msk.bf16.mxu1 %vm363_vm0, %v736_v0  ;;  %v365_v2 = vsel %vm363_vm0, %v736_v0, 0  ;;  %s923_s18 = smov (!%p163_p3, %s621_s18), 63  ;;  %vm314_vm1 = vcmask 293888   ;;  %v844_v20 = vld [vmem:[%s920_s2] ss:$0 sm:$0xff] }
   0xd   : > { %683 = vmatpush3.bf16.msra.mxu0 %v365_v2  ;;  %723 = vmatpush3.bf16.msra.mxu1 %v365_v2  ;;  %s622_s21 = sshll.u32 %s923_s18, 2  ;;  %s624_s25 = sshll.u32 %s923_s18, 3 }
   0xe   : > { %684 = vmatprep.subr.bf16.mxu0 %v737_v1  ;;  %721 = vmatprep.subr.bf16.mxu1 %v737_v1  ;;  %s806_s24 = scalar_lea.vmem %s918_s0, %s622_s21  ;;  %s849_s30 = scalar_lea.vmem %s921_s3, %s624_s25 }
   0xf   : > { %v739_v4 = vld [vmem:[%s806_s24] sm:$0xff]   ;;  %v741_v6 = vld [vmem:[%s806_s24 + $0x8] sm:$0xff]   ;;  %v743_v8 = vld [vmem:[%s806_s24 + $0x10] sm:$0xff]  }
  0x10   : > { %v740_v5 = vld [vmem:[%s806_s24 + $0x40] sm:$0xff]   ;;  %688 = vmatprep.mubr.msk.bf16.mxu0 %vm314_vm1, %v739_v4  ;;  %v742_v7 = vld [vmem:[%s806_s24 + $0x48] sm:$0xff]   ;;  %v744_v9 = vld [vmem:[%s806_s24 + $0x50] sm:$0xff]  }
  0x11   : > { %685 = vmatpush3.bf16.msra.mxu0 %v737_v1  ;;  %724 = vmatpush3.bf16.msra.mxu1 %v737_v1  ;;  %v745_v10 = vld [vmem:[%s806_s24 + $0x18] sm:$0xff]   ;;  %v747_v12 = vld [vmem:[%s806_s24 + $0x20] sm:$0xff]   ;;  %v749_v14 = vld [vmem:[%s806_s24 + $0x28] sm:$0xff]  }
  0x12   : > { %686 = vmatprep.subr.bf16.mxu0 %v738_v3  ;;  %722 = vmatprep.subr.bf16.mxu1 %v738_v3  ;;  %v746_v11 = vld [vmem:[%s806_s24 + $0x58] sm:$0xff]   ;;  %v748_v13 = vld [vmem:[%s806_s24 + $0x60] sm:$0xff]   ;;  %v750_v15 = vld [vmem:[%s806_s24 + $0x68] sm:$0xff]  }
  0x13   : > { %704 = vmatprep.mubr.msk.bf16.mxu1 %vm314_vm1, %v740_v5  ;;  %v751_v16 = vld [vmem:[%s806_s24 + $0x30] sm:$0xff]   ;;  %v753_v18 = vld [vmem:[%s806_s24 + $0x38] sm:$0xff]  }
  0x14   : > { %v752_v17 = vld [vmem:[%s806_s24 + $0x70] sm:$0xff]   ;;  %v754_v19 = vld [vmem:[%s806_s24 + $0x78] sm:$0xff]  }
  0x15   : > { %687 = vmatpush3.bf16.msra.mxu0 %v738_v3  ;;  %725 = vmatpush3.bf16.msra.mxu1 %v738_v3 }
  0x18   : > { %689 = vmatmul.mubr.msk.bf16.vlgmr.msra.gmra.mxu0 %vm314_vm1, %v741_v6  ;;  %705 = vmatmul.mubr.msk.bf16.vlgmr.msra.gmra.mxu1 %vm314_vm1, %v742_v7 }
  0x19   : > { %692 = vmatprep.mubr.msk.bf16.mxu0 %vm314_vm1, %v743_v8  ;;  %708 = vmatprep.mubr.msk.bf16.mxu1 %vm314_vm1, %v744_v9 }
  0x20   : > { %693 = vmatmul.mubr.msk.bf16.gmra.mxu0 %vm314_vm1, %v745_v10  ;;  %709 = vmatmul.mubr.msk.bf16.gmra.mxu1 %vm314_vm1, %v746_v11 }
  0x21   : > { %696 = vmatprep.mubr.msk.bf16.mxu0 %vm314_vm1, %v747_v12  ;;  %712 = vmatprep.mubr.msk.bf16.mxu1 %vm314_vm1, %v748_v13 }
  0x28   : > { %697 = vmatmul.mubr.msk.bf16.gmra.mxu0 %vm314_vm1, %v749_v14  ;;  %713 = vmatmul.mubr.msk.bf16.gmra.mxu1 %vm314_vm1, %v750_v15 }
  0x29   : > { %700 = vmatprep.mubr.msk.bf16.mxu0 %vm314_vm1, %v751_v16  ;;  %716 = vmatprep.mubr.msk.bf16.mxu1 %vm314_vm1, %v752_v17 }
  0x30   : > { %701 = vmatmul.mubr.msk.bf16.gmra.mxu0 %vm314_vm1, %v753_v18  ;;  %717 = vmatmul.mubr.msk.bf16.gmra.mxu1 %vm314_vm1, %v754_v19 }
  0xd8   : > { %v690_v21 = vpop.f32.mrf.mxu0  ;;  %v706_v22 = vpop.f32.mrf.mxu1 }
  0xd9   : > { %v410_v23 = vadd.f32 %v690_v21, %v844_v20  ;;  %v474_v24 = vadd.f32 %v706_v22, %v844_v20 }
  0xda   : > { %v401_v25 = vpop.f32.mrf.mxu0  ;;  %v465_v26 = vpop.f32.mrf.mxu1 }
  0xdb   : > { %530 = vst [vmem:[%s849_s30 + $0x10] sm:$0xff] %v410_v23  ;;  %546 = vst [vmem:[%s849_s30 + $0x90] sm:$0xff] %v474_v24  ;;  %v402_v27 = vadd.f32 %v844_v20, %v401_v25  ;;  %v466_v28 = vadd.f32 %v844_v20, %v465_v26 }
  0xdc   : > { %v691_v29 = vpop.f32.mrf.mxu0  ;;  %v707_v30 = vpop.f32.mrf.mxu1 }
  0xdd   : > { %528 = vst [vmem:[%s849_s30] sm:$0xff] %v402_v27  ;;  %544 = vst [vmem:[%s849_s30 + $0x80] sm:$0xff] %v466_v28  ;;  %v413_v31 = vadd.f32 %v691_v29, %v844_v20  ;;  %v477_v32 = vadd.f32 %v707_v30, %v844_v20 }
  0xde   : > { %v404_v33 = vpop.f32.mrf.mxu0  ;;  %v468_v34 = vpop.f32.mrf.mxu1 }
  0xdf   : > { %531 = vst [vmem:[%s849_s30 + $0x18] sm:$0xff] %v413_v31  ;;  %547 = vst [vmem:[%s849_s30 + $0x98] sm:$0xff] %v477_v32  ;;  %v405_v35 = vadd.f32 %v844_v20, %v404_v33  ;;  %v469_v36 = vadd.f32 %v844_v20, %v468_v34 }
  0xe0   : > { %v694_v37 = vpop.f32.mrf.mxu0  ;;  %v710_v38 = vpop.f32.mrf.mxu1 }
  0xe1   : > { %529 = vst [vmem:[%s849_s30 + $0x8] sm:$0xff] %v405_v35  ;;  %545 = vst [vmem:[%s849_s30 + $0x88] sm:$0xff] %v469_v36  ;;  %v426_v39 = vadd.f32 %v694_v37, %v844_v20  ;;  %v490_v40 = vadd.f32 %v710_v38, %v844_v20 }
  0xe2   : > { %v417_v41 = vpop.f32.mrf.mxu0  ;;  %v481_v42 = vpop.f32.mrf.mxu1 }
  0xe3   : > { %534 = vst [vmem:[%s849_s30 + $0x30] sm:$0xff] %v426_v39  ;;  %550 = vst [vmem:[%s849_s30 + $0xb0] sm:$0xff] %v490_v40  ;;  %v418_v43 = vadd.f32 %v844_v20, %v417_v41  ;;  %v482_v44 = vadd.f32 %v844_v20, %v481_v42 }
  0xe4   : > { %v695_v45 = vpop.f32.mrf.mxu0  ;;  %v711_v46 = vpop.f32.mrf.mxu1 }
  0xe5   : > { %532 = vst [vmem:[%s849_s30 + $0x20] sm:$0xff] %v418_v43  ;;  %548 = vst [vmem:[%s849_s30 + $0xa0] sm:$0xff] %v482_v44  ;;  %v429_v47 = vadd.f32 %v695_v45, %v844_v20  ;;  %v493_v48 = vadd.f32 %v711_v46, %v844_v20 }
  0xe6   : > { %v420_v49 = vpop.f32.mrf.mxu0  ;;  %v484_v50 = vpop.f32.mrf.mxu1 }
  0xe7   : > { %535 = vst [vmem:[%s849_s30 + $0x38] sm:$0xff] %v429_v47  ;;  %551 = vst [vmem:[%s849_s30 + $0xb8] sm:$0xff] %v493_v48  ;;  %v421_v51 = vadd.f32 %v844_v20, %v420_v49  ;;  %v485_v52 = vadd.f32 %v844_v20, %v484_v50 }
  0xe8   : > { %v698_v53 = vpop.f32.mrf.mxu0  ;;  %v714_v54 = vpop.f32.mrf.mxu1 }
  0xe9   : > { %533 = vst [vmem:[%s849_s30 + $0x28] sm:$0xff] %v421_v51  ;;  %549 = vst [vmem:[%s849_s30 + $0xa8] sm:$0xff] %v485_v52  ;;  %v442_v55 = vadd.f32 %v698_v53, %v844_v20  ;;  %v506_v56 = vadd.f32 %v714_v54, %v844_v20 }
  0xea   : > { %v433_v57 = vpop.f32.mrf.mxu0  ;;  %v497_v58 = vpop.f32.mrf.mxu1 }
  0xeb   : > { %538 = vst [vmem:[%s849_s30 + $0x50] sm:$0xff] %v442_v55  ;;  %554 = vst [vmem:[%s849_s30 + $0xd0] sm:$0xff] %v506_v56  ;;  %v434_v59 = vadd.f32 %v844_v20, %v433_v57  ;;  %v498_v60 = vadd.f32 %v844_v20, %v497_v58 }
  0xec   : > { %v699_v61 = vpop.f32.mrf.mxu0  ;;  %v715_v62 = vpop.f32.mrf.mxu1 }
  0xed   : > { %536 = vst [vmem:[%s849_s30 + $0x40] sm:$0xff] %v434_v59  ;;  %552 = vst [vmem:[%s849_s30 + $0xc0] sm:$0xff] %v498_v60  ;;  %v445_v63 = vadd.f32 %v699_v61, %v844_v20  ;;  %v509_v0 = vadd.f32 %v715_v62, %v844_v20 }
  0xee   : > { %v436_v1 = vpop.f32.mrf.mxu0  ;;  %v500_v2 = vpop.f32.mrf.mxu1 }
  0xef   : > { %539 = vst [vmem:[%s849_s30 + $0x58] sm:$0xff] %v445_v63  ;;  %555 = vst [vmem:[%s849_s30 + $0xd8] sm:$0xff] %v509_v0  ;;  %v437_v3 = vadd.f32 %v844_v20, %v436_v1  ;;  %v501_v4 = vadd.f32 %v844_v20, %v500_v2 }
  0xf0   : > { %v702_v5 = vpop.f32.mrf.mxu0  ;;  %v718_v6 = vpop.f32.mrf.mxu1 }
  0xf1   : > { %537 = vst [vmem:[%s849_s30 + $0x48] sm:$0xff] %v437_v3  ;;  %553 = vst [vmem:[%s849_s30 + $0xc8] sm:$0xff] %v501_v4  ;;  %v458_v7 = vadd.f32 %v702_v5, %v844_v20  ;;  %v522_v8 = vadd.f32 %v718_v6, %v844_v20 }
  0xf2   : > { %v449_v9 = vpop.f32.mrf.mxu0  ;;  %v513_v10 = vpop.f32.mrf.mxu1 }
  0xf3   : > { %542 = vst [vmem:[%s849_s30 + $0x70] sm:$0xff] %v458_v7  ;;  %558 = vst [vmem:[%s849_s30 + $0xf0] sm:$0xff] %v522_v8  ;;  %v450_v11 = vadd.f32 %v844_v20, %v449_v9  ;;  %v514_v12 = vadd.f32 %v844_v20, %v513_v10 }
  0xf4   : > { %v703_v13 = vpop.f32.mrf.mxu0  ;;  %v719_v14 = vpop.f32.mrf.mxu1 }
  0xf5   : > { %540 = vst [vmem:[%s849_s30 + $0x60] sm:$0xff] %v450_v11  ;;  %556 = vst [vmem:[%s849_s30 + $0xe0] sm:$0xff] %v514_v12  ;;  %v461_v15 = vadd.f32 %v703_v13, %v844_v20  ;;  %v525_v16 = vadd.f32 %v719_v14, %v844_v20 }
  0xf6   : > { %v452_v17 = vpop.f32.mrf.mxu0  ;;  %v516_v18 = vpop.f32.mrf.mxu1 }
  0xf7   : > { %543 = vst [vmem:[%s849_s30 + $0x78] sm:$0xff] %v461_v15  ;;  %559 = vst [vmem:[%s849_s30 + $0xf8] sm:$0xff] %v525_v16  ;;  %v453_v19 = vadd.f32 %v844_v20, %v452_v17  ;;  %v517_v21 = vadd.f32 %v844_v20, %v516_v18 }
  0xf9   : > { %541 = vst [vmem:[%s849_s30 + $0x68] sm:$0xff] %v453_v19  ;;  %557 = vst [vmem:[%s849_s30 + $0xe8] sm:$0xff] %v517_v21 }
  0xfa PF: > { %s13_s12 = sadd.s32 1, %s761_s12  }
  0xfb   : > { %p10_p4 = scmp.ge.s32.totalorder %s13_s12, 4  }
  0xfd   :  { %12 = sbr.rel (!%p10_p4) target bundleno = 1 (0x1), region = 62 }

// kernel: _forward_impl.37
= control target key start
LH: loop header
LB: loop body
LE: loop exit
PB: predicated region body
PF: predicated region fallthrough
CT: control target
= control target key end

     0   :  { %s1487_s12 = smov 0   ;;  %s1735_s0 = inlined_call_operand.vmem [shape: bf16[512,288], index: 0, kind: input, shape index: {}]   ;;  %s1736_s1 = inlined_call_operand.vmem [shape: bf16[288,128], index: 1, kind: input, shape index: {}]   ;;  %s1737_s2 = inlined_call_operand.vmem [shape: f32[1,128], index: 2, kind: input, shape index: {}]   ;;  %s1738_s3 = inlined_call_operand.vmem [shape: f32[512,128], index: 3, kind: output, shape index: {}]  }
   0x1 LB: > { %s1092_s13 = sadd.s32 4294967295, %s1465_s12   ;;  %p1096_p0 = scmp.ge.s32.totalorder %s1465_s12, 1  ;;  %s1465_s12 = sphi %s1487_s12, %s13_s12  }
   0x2   : > { %p139_p1 = scmp.lt.s32.totalorder %s1465_s12, 3 }
   0x4   : > { %p140_p2 = pnand %p1096_p0, %p139_p1 }
   0x5   : > { %s1097_s16 = sshll.u32 (!%p140_p2), %s1092_s13, 5 }
   0x6   : > { %143 = sbr.rel (%p140_p2) target bundleno = 338 (0x152), region = 32  ;;  %p165_p3 = scmp.lt.s32.totalorder (!%p140_p2), %s1097_s16, 63 }
   0xb   : > { %v1377_v0 = vld [vmem:[%s1736_s1 + $0x78] sm:$0xff]   ;;  %v1379_v2 = vld [vmem:[%s1736_s1 + $0x70] sm:$0xff]   ;;  %v1381_v4 = vld [vmem:[%s1736_s1 + $0x68] sm:$0xff]   ;;  %s1740_s16 = smov (!%p165_p3, %s1097_s16), 63  ;;  %vm633_vm0 = vcmask 261120  }
   0xc   : > { %v1378_v1 = vld [vmem:[%s1736_s1 + $0x38] sm:$0xff]   ;;  %1186 = vmatprep.subr.bf16.mxu0 %v1377_v0  ;;  %1352 = vmatprep.subr.bf16.mxu1 %v1377_v0  ;;  %v1380_v3 = vld [vmem:[%s1736_s1 + $0x30] sm:$0xff]   ;;  %v1382_v5 = vld [vmem:[%s1736_s1 + $0x28] sm:$0xff]   ;;  %s1368_s29 = smul.u32 12, %s1740_s16  ;;  %s1100_s30 = sshll.u32 %s1740_s16, 3 }
   0xd   : > { %1187 = vmatpush3.bf16.msra.mxu0 %v1378_v1  ;;  %1360 = vmatpush3.bf16.msra.mxu1 %v1378_v1  ;;  %v1383_v6 = vld [vmem:[%s1736_s1 + $0x60] sm:$0xff]   ;;  %v1385_v8 = vld [vmem:[%s1736_s1 + $0x58] sm:$0xff]   ;;  %v1387_v10 = vld [vmem:[%s1736_s1 + $0x50] sm:$0xff]   ;;  %s1651_s8 = scalar_lea.vmem %s1738_s3, %s1100_s30 }
   0xe   : > { %1188 = vmatprep.subr.bf16.mxu0 %v1379_v2  ;;  %1353 = vmatprep.subr.bf16.mxu1 %v1379_v2  ;;  %v1384_v7 = vld [vmem:[%s1736_s1 + $0x20] sm:$0xff]   ;;  %s1528_s9 = scalar_lea.vmem %s1735_s0, %s1368_s29  ;;  %v1386_v9 = vld [vmem:[%s1736_s1 + $0x18] sm:$0xff]   ;;  %v1388_v13 = vld [vmem:[%s1736_s1 + $0x10] sm:$0xff]  }
   0xf   : > { %v1395_v11 = vld [vmem:[%s1528_s9 + $0x4] ss:$12 sps:$4 sm:$0xff]   ;;  %v1389_v14 = vld [vmem:[%s1736_s1 + $0x48] sm:$0xff]   ;;  %v1406_v26 = vld [vmem:[%s1528_s9 + $0x34] ss:$12 sps:$4 sm:$0xff]  }
  0x10   : > { %v1398_v12 = vld [vmem:[%s1528_s9 + $0x124] ss:$12 sps:$4 sm:$0xff]   ;;  %714 = vmatprep.mubr.bf16.mxu0 %v1395_v11  ;;  %v1390_v15 = vld [vmem:[%s1736_s1 + $0x8] sm:$0xff]   ;;  %v1408_v27 = vld [vmem:[%s1528_s9 + $0x154] ss:$12 sps:$4 sm:$0xff]  }
  0x11   : > { %1189 = vmatpush3.bf16.msra.mxu0 %v1380_v3  ;;  %1361 = vmatpush3.bf16.msra.mxu1 %v1380_v3  ;;  %v1391_v16 = vld [vmem:[%s1736_s1 + $0x40] sm:$0xff]   ;;  %v1399_v18 = vld [vmem:[%s1736_s1 + $0x88] sm:$0xff]   ;;  %v1410_v28 = vld [vmem:[%s1528_s9 + $0x30] ss:$12 sps:$4 sm:$0xff]  }
  0x12   : > { %1190 = vmatprep.subr.bf16.mxu0 %v1381_v4  ;;  %1354 = vmatprep.subr.bf16.mxu1 %v1381_v4  ;;  %v1392_v17 = vld [vmem:[%s1736_s1] sm:$0xff]   ;;  %v1400_v21 = vld [vmem:[%s1528_s9 + $0x1c] ss:$12 sps:$4 sm:$0xff]   ;;  %v1413_v30 = vld [vmem:[%s1528_s9 + $0x4c] ss:$12 sps:$4 sm:$0xff]  }
  0x13   : > { %810 = vmatprep.mubr.bf16.mxu1 %v1398_v12  ;;  %v1393_v19 = vld [vmem:[%s1528_s9] ss:$12 sps:$4 sm:$0xff]   ;;  %v1402_v22 = vld [vmem:[%s1528_s9 + $0x13c] ss:$12 sps:$4 sm:$0xff]   ;;  %v1404_v24 = vld [vmem:[%s1528_s9 + $0x18] ss:$12 sps:$4 sm:$0xff]  }
  0x14   : > { %v1396_v20 = vld [vmem:[%s1528_s9 + $0x120] ss:$12 sps:$4 sm:$0xff]   ;;  %v1405_v25 = vld [vmem:[%s1528_s9 + $0x138] ss:$12 sps:$4 sm:$0xff]   ;;  %v1411_v29 = vld [vmem:[%s1528_s9 + $0x150] ss:$12 sps:$4 sm:$0xff]  }
  0x15   : > { %1191 = vmatpush3.bf16.msra.mxu0 %v1382_v5  ;;  %1362 = vmatpush3.bf16.msra.mxu1 %v1382_v5  ;;  %v1412_v23 = vld [vmem:[%s1736_s1 + $0x80] sm:$0xff]   ;;  %v1415_v31 = vld [vmem:[%s1528_s9 + $0x16c] ss:$12 sps:$4 sm:$0xff]   ;;  %v1417_v32 = vld [vmem:[%s1528_s9 + $0x48] ss:$12 sps:$4 sm:$0xff]  }
  0x16   : > { %1192 = vmatprep.subr.bf16.mxu0 %v1383_v6  ;;  %1355 = vmatprep.subr.bf16.mxu1 %v1383_v6  ;;  %v1418_v33 = vld [vmem:[%s1528_s9 + $0x168] ss:$12 sps:$4 sm:$0xff]   ;;  %v1419_v34 = vld [vmem:[%s1528_s9 + $0x64] ss:$12 sps:$4 sm:$0xff]   ;;  %v1422_v36 = vld [vmem:[%s1528_s9 + $0x60] ss:$12 sps:$4 sm:$0xff]  }
  0x17   : > { %v1421_v35 = vld [vmem:[%s1528_s9 + $0x8] ss:$12 sps:$4 sm:$0xff]   ;;  %v1423_v37 = vld [vmem:[%s1528_s9 + $0x20] ss:$12 sps:$4 sm:$0xff]   ;;  %v1426_v39 = vld [vmem:[%s1528_s9 + $0x38] ss:$12 sps:$4 sm:$0xff]  }
  0x18   : > { %v1424_v38 = vld [vmem:[%s1528_s9 + $0x7c] ss:$12 sps:$4 sm:$0xff]   ;;  %v1427_v40 = vld [vmem:[%s1528_s9 + $0x78] ss:$12 sps:$4 sm:$0xff]   ;;  %v1429_v42 = vld [vmem:[%s1528_s9 + $0x94] ss:$12 sps:$4 sm:$0xff]  }
  0x19   : > { %1193 = vmatpush3.bf16.msra.mxu0 %v1384_v7  ;;  %1363 = vmatpush3.bf16.msra.mxu1 %v1384_v7  ;;  %v1428_v41 = vld [vmem:[%s1528_s9 + $0x50] ss:$12 sps:$4 sm:$0xff]   ;;  %v1431_v43 = vld [vmem:[%s1528_s9 + $0x68] ss:$12 sps:$4 sm:$0xff]   ;;  %v1433_v45 = vld [vmem:[%s1528_s9 + $0x80] ss:$12 sps:$4 sm:$0xff]  }
  0x1a   : > { %1194 = vmatprep.subr.bf16.mxu0 %v1385_v8  ;;  %1356 = vmatprep.subr.bf16.mxu1 %v1385_v8  ;;  %v1432_v44 = vld [vmem:[%s1528_s9 + $0x90] ss:$12 sps:$4 sm:$0xff]   ;;  %v1434_v46 = vld [vmem:[%s1528_s9 + $0xac] ss:$12 sps:$4 sm:$0xff]   ;;  %v1437_v48 = vld [vmem:[%s1528_s9 + $0xa8] ss:$12 sps:$4 sm:$0xff]  }
  0x1b   : > { %v1436_v47 = vld [vmem:[%s1528_s9 + $0x98] ss:$12 sps:$4 sm:$0xff]   ;;  %v1438_v49 = vld [vmem:[%s1528_s9 + $0xb0] ss:$12 sps:$4 sm:$0xff]   ;;  %v1441_v51 = vld [vmem:[%s1528_s9 + $0xc8] ss:$12 sps:$4 sm:$0xff]  }
  0x1c   : > { %v1439_v50 = vld [vmem:[%s1528_s9 + $0xc4] ss:$12 sps:$4 sm:$0xff]   ;;  %v1442_v52 = vld [vmem:[%s1528_s9 + $0xc0] ss:$12 sps:$4 sm:$0xff]   ;;  %v1444_v54 = vld [vmem:[%s1528_s9 + $0xdc] ss:$12 sps:$4 sm:$0xff]  }
  0x1d   : > { %1195 = vmatpush3.bf16.msra.mxu0 %v1386_v9  ;;  %1364 = vmatpush3.bf16.msra.mxu1 %v1386_v9  ;;  %v1443_v53 = vld [vmem:[%s1528_s9 + $0xe0] ss:$12 sps:$4 sm:$0xff]   ;;  %v1446_v55 = vld [vmem:[%s1528_s9 + $0xf8] ss:$12 sps:$4 sm:$0xff]   ;;  %v1448_v57 = vld [vmem:[%s1528_s9 + $0x110] ss:$12 sps:$4 sm:$0xff]  }
  0x1e   : > { %1196 = vmatprep.subr.bf16.mxu0 %v1387_v10  ;;  %1357 = vmatprep.subr.bf16.mxu1 %v1387_v10  ;;  %v1447_v56 = vld [vmem:[%s1528_s9 + $0xd8] ss:$12 sps:$4 sm:$0xff]   ;;  %v1449_v58 = vld [vmem:[%s1528_s9 + $0xf4] ss:$12 sps:$4 sm:$0xff]   ;;  %v1452_v60 = vld [vmem:[%s1528_s9 + $0xf0] ss:$12 sps:$4 sm:$0xff]  }
  0x1f   : > { %v1451_v59 = vld [vmem:[%s1528_s9 + $0x128] ss:$12 sps:$4 sm:$0xff]   ;;  %v1453_v61 = vld [vmem:[%s1528_s9 + $0x140] ss:$12 sps:$4 sm:$0xff]   ;;  %v1456_v63 = vld [vmem:[%s1528_s9 + $0x158] ss:$12 sps:$4 sm:$0xff]  }
  0x20   : > { %v1454_v62 = vld [vmem:[%s1528_s9 + $0x10c] ss:$12 sps:$4 sm:$0xff]   ;;  %v1457_v0 = vld [vmem:[%s1528_s9 + $0x108] ss:$12 sps:$4 sm:$0xff]   ;;  %v1458_v1 = vld [vmem:[%s1528_s9 + $0x170] ss:$12 sps:$4 sm:$0xff]  }
  0x21   : > { %1197 = vmatpush3.bf16.msra.mxu0 %v1388_v13  ;;  %1365 = vmatpush3.bf16.msra.mxu1 %v1388_v13 }
  0x22   : > { %1198 = vmatprep.subr.bf16.mxu0 %v1389_v14  ;;  %1358 = vmatprep.subr.bf16.mxu1 %v1389_v14 }
  0x25   : > { %1199 = vmatpush3.bf16.msra.mxu0 %v1390_v15  ;;  %1366 = vmatpush3.bf16.msra.mxu1 %v1390_v15 }
  0x26   : > { %1200 = vmatprep.subr.bf16.mxu0 %v1391_v16  ;;  %1359 = vmatprep.subr.bf16.mxu1 %v1391_v16 }
  0x29   : > { %1201 = vmatpush3.bf16.msra.mxu0 %v1392_v17  ;;  %1367 = vmatpush3.bf16.msra.mxu1 %v1392_v17 }
  0x2a   : > { %1316 = vmatprep.subr.bf16.mxu1 %v1399_v18 }
  0x2c   : > { %715 = vmatmul.mubr.bf16.vlgmr.msra.gmra.mxu0 %v1393_v19  ;;  %811 = vmatmul.mubr.bf16.vlgmr.msra.gmra.mxu1 %v1396_v20 }
  0x2d   : > { %1317 = vmatpush3.bf16.msra.mxu1 %v1399_v18  ;;  %722 = vmatprep.mubr.bf16.mxu0 %v1400_v21 }
  0x2e   : > { %818 = vmatprep.mubr.bf16.mxu1 %v1402_v22  ;;  %1318 = vmatprep.subr.bf16.mxu1 %v1412_v23 }
  0x31   : > { %1319 = vmatpush3.bf16.msra.mxu1 %v1412_v23 }
  0x34   : > { %723 = vmatmul.mubr.bf16.gmra.mxu0 %v1404_v24  ;;  %819 = vmatmul.mubr.bf16.gmra.mxu1 %v1405_v25 }
  0x35   : > { %730 = vmatprep.mubr.bf16.mxu0 %v1406_v26  ;;  %826 = vmatprep.mubr.bf16.mxu1 %v1408_v27 }
  0x3c   : > { %731 = vmatmul.mubr.bf16.gmra.mxu0 %v1410_v28  ;;  %827 = vmatmul.mubr.bf16.gmra.mxu1 %v1411_v29 }
  0x3d   : > { %738 = vmatprep.mubr.bf16.mxu0 %v1413_v30  ;;  %834 = vmatprep.mubr.bf16.mxu1 %v1415_v31 }
  0x44   : > { %739 = vmatmul.mubr.bf16.gmra.mxu0 %v1417_v32  ;;  %835 = vmatmul.mubr.bf16.gmra.mxu1 %v1418_v33 }
  0x45   : > { %746 = vmatprep.mubr.bf16.mxu0 %v1419_v34  ;;  %1320 = vmatprep.mubr.msk.bf16.mxu1 %vm633_vm0, %v1421_v35 }
  0x4c   : > { %747 = vmatmul.mubr.bf16.gmra.mxu0 %v1422_v36  ;;  %1321 = vmatmul.mubr.msk.bf16.vlgmr.msra.gmra.mxu1 %vm633_vm0, %v1423_v37 }
  0x4d   : > { %754 = vmatprep.mubr.bf16.mxu0 %v1424_v38  ;;  %1324 = vmatprep.mubr.msk.bf16.mxu1 %vm633_vm0, %v1426_v39 }
  0x54   : > { %755 = vmatmul.mubr.bf16.gmra.mxu0 %v1427_v40  ;;  %1325 = vmatmul.mubr.msk.bf16.gmra.mxu1 %vm633_vm0, %v1428_v41 }
  0x55   : > { %762 = vmatprep.mubr.bf16.mxu0 %v1429_v42  ;;  %1328 = vmatprep.mubr.msk.bf16.mxu1 %vm633_vm0, %v1431_v43  ;;  %v1645_v42 = vld [vmem:[%s1737_s2] ss:$0 sm:$0xff] }
  0x5c   : > { %763 = vmatmul.mubr.bf16.gmra.mxu0 %v1432_v44  ;;  %1329 = vmatmul.mubr.msk.bf16.gmra.mxu1 %vm633_vm0, %v1433_v45 }
  0x5d   : > { %770 = vmatprep.mubr.bf16.mxu0 %v1434_v46  ;;  %1332 = vmatprep.mubr.msk.bf16.mxu1 %vm633_vm0, %v1436_v47 }
  0x64   : > { %771 = vmatmul.mubr.bf16.gmra.mxu0 %v1437_v48  ;;  %1333 = vmatmul.mubr.msk.bf16.gmra.mxu1 %vm633_vm0, %v1438_v49 }
  0x65   : > { %778 = vmatprep.mubr.bf16.mxu0 %v1439_v50  ;;  %1336 = vmatprep.mubr.msk.bf16.mxu1 %vm633_vm0, %v1441_v51 }
  0x6c   : > { %779 = vmatmul.mubr.bf16.gmra.mxu0 %v1442_v52  ;;  %1337 = vmatmul.mubr.msk.bf16.gmra.mxu1 %vm633_vm0, %v1443_v53 }
  0x6d   : > { %786 = vmatprep.mubr.bf16.mxu0 %v1444_v54  ;;  %1340 = vmatprep.mubr.msk.bf16.mxu1 %vm633_vm0, %v1446_v55 }
  0x74   : > { %787 = vmatmul.mubr.bf16.gmra.mxu0 %v1447_v56  ;;  %1341 = vmatmul.mubr.msk.bf16.gmra.mxu1 %vm633_vm0, %v1448_v57 }
  0x75   : > { %794 = vmatprep.mubr.bf16.mxu0 %v1449_v58  ;;  %1344 = vmatprep.mubr.msk.bf16.mxu1 %vm633_vm0, %v1451_v59 }
  0x7c   : > { %795 = vmatmul.mubr.bf16.gmra.mxu0 %v1452_v60  ;;  %1345 = vmatmul.mubr.msk.bf16.gmra.mxu1 %vm633_vm0, %v1453_v61 }
  0x7d   : > { %802 = vmatprep.mubr.bf16.mxu0 %v1454_v62  ;;  %1348 = vmatprep.mubr.msk.bf16.mxu1 %vm633_vm0, %v1456_v63 }
  0x84   : > { %803 = vmatmul.mubr.bf16.gmra.mxu0 %v1457_v0  ;;  %1349 = vmatmul.mubr.msk.bf16.gmra.mxu1 %vm633_vm0, %v1458_v1 }
  0xec   : > { %v1202_v2 = vpop.f32.mrf.mxu0  ;;  %v1274_v3 = vpop.f32.mrf.mxu1 }
  0xee   : > { %v1203_v4 = vpop.f32.mrf.mxu0  ;;  %v1275_v5 = vpop.f32.mrf.mxu1 }
  0xef   : > { %v1621_v6 = vadd.f32 %v1275_v5, %v1274_v3  ;;  %v1204_v39 = vadd.f32 %v1203_v4, %v1202_v2 }
  0xf0   : > { %v1205_v7 = vpop.f32.mrf.mxu0  ;;  %v1277_v8 = vpop.f32.mrf.mxu1 }
  0xf1   : > { %v717_v49 = vadd.f32 %v1204_v39, %v1645_v42 }
  0xf2   : > { %v1206_v9 = vpop.f32.mrf.mxu0  ;;  %v1278_v10 = vpop.f32.mrf.mxu1 }
  0xf3   : > { %v1623_v11 = vadd.f32 %v1278_v10, %v1277_v8  ;;  %v1207_v47 = vadd.f32 %v1206_v9, %v1205_v7 }
  0xf4   : > { %v1208_v12 = vpop.f32.mrf.mxu0  ;;  %v1280_v13 = vpop.f32.mrf.mxu1 }
  0xf5   : > { %v720_v59 = vadd.f32 %v1207_v47, %v1645_v42 }
  0xf6   : > { %v1209_v14 = vpop.f32.mrf.mxu0  ;;  %v1281_v15 = vpop.f32.mrf.mxu1 }
  0xf7   : > { %v1625_v16 = vadd.f32 %v1281_v15, %v1280_v13  ;;  %v1210_v36 = vadd.f32 %v1209_v14, %v1208_v12 }
  0xf8   : > { %v1211_v17 = vpop.f32.mrf.mxu0  ;;  %v1283_v18 = vpop.f32.mrf.mxu1 }
  0xf9   : > { %v725_v44 = vadd.f32 %v1210_v36, %v1645_v42 }
  0xfa   : > { %v1212_v19 = vpop.f32.mrf.mxu0  ;;  %v1284_v20 = vpop.f32.mrf.mxu1 }
  0xfb   : > { %v1627_v21 = vadd.f32 %v1284_v20, %v1283_v18  ;;  %v1213_v43 = vadd.f32 %v1212_v19, %v1211_v17 }
  0xfc   : > { %v1214_v22 = vpop.f32.mrf.mxu0  ;;  %v1286_v23 = vpop.f32.mrf.mxu1 }
  0xfd   : > { %v728_v54 = vadd.f32 %v1213_v43, %v1645_v42 }
  0xfe   : > { %v1215_v24 = vpop.f32.mrf.mxu0  ;;  %v1287_v25 = vpop.f32.mrf.mxu1 }
  0xff   : > { %v1629_v26 = vadd.f32 %v1287_v25, %v1286_v23  ;;  %v1216_v57 = vadd.f32 %v1215_v24, %v1214_v22 }
 0x100   : > { %v1217_v27 = vpop.f32.mrf.mxu0  ;;  %v1289_v28 = vpop.f32.mrf.mxu1 }
 0x101   : > { %v733_v5 = vadd.f32 %v1216_v57, %v1645_v42 }
 0x102   : > { %v1218_v29 = vpop.f32.mrf.mxu0  ;;  %v1290_v30 = vpop.f32.mrf.mxu1 }
 0x103   : > { %v1631_v31 = vadd.f32 %v1290_v30, %v1289_v28  ;;  %v1219_v3 = vadd.f32 %v1218_v29, %v1217_v27 }
 0x104   : > { %v1220_v32 = vpop.f32.mrf.mxu0  ;;  %v1633_v33 = vpop.f32.mrf.mxu1 }
 0x105   : > { %v736_v18 = vadd.f32 %v1219_v3, %v1645_v42 }
 0x106   : > { %v1221_v34 = vpop.f32.mrf.mxu0  ;;  %v1635_v35 = vpop.f32.mrf.mxu1 }
 0x107   : > { %v1222_v52 = vadd.f32 %v1221_v34, %v1220_v32 }
 0x108   : > { %v1223_v37 = vpop.f32.mrf.mxu0  ;;  %v1637_v38 = vpop.f32.mrf.mxu1 }
 0x109   : > { %v741_v0 = vadd.f32 %v1222_v52, %v1645_v42 }
 0x10a   : > { %v1224_v40 = vpop.f32.mrf.mxu0  ;;  %v1640_v41 = vpop.f32.mrf.mxu1 }
 0x10b   : > { %v1225_v62 = vadd.f32 %v1224_v40, %v1223_v37 }
 0x10c   : > { %v1226_v45 = vpop.f32.mrf.mxu0  ;;  %v1322_v46 = vpop.f32.mrf.mxu1 }
 0x10d   : > { %v886_v48 = vadd.f32 %v1322_v46, %v725_v44  ;;  %v744_v12 = vadd.f32 %v1225_v62, %v1645_v42 }
 0x10e   : > { %v1227_v50 = vpop.f32.mrf.mxu0  ;;  %v877_v51 = vpop.f32.mrf.mxu1 }
 0x10f   : > { %1006 = vst [vmem:[%s1651_s8 + $0x10] sm:$0xff] %v886_v48  ;;  %v878_v53 = vadd.f32 %v877_v51, %v717_v49  ;;  %v1228_v15 = vadd.f32 %v1227_v50, %v1226_v45 }
 0x110   : > { %v1229_v55 = vpop.f32.mrf.mxu0  ;;  %v1323_v56 = vpop.f32.mrf.mxu1 }
 0x111   : > { %1004 = vst [vmem:[%s1651_s8] sm:$0xff] %v878_v53  ;;  %v889_v58 = vadd.f32 %v1323_v56, %v728_v54  ;;  %v749_v30 = vadd.f32 %v1228_v15, %v1645_v42 }
 0x112   : > { %v1230_v60 = vpop.f32.mrf.mxu0  ;;  %v880_v61 = vpop.f32.mrf.mxu1 }
 0x113   : > { %1007 = vst [vmem:[%s1651_s8 + $0x18] sm:$0xff] %v889_v58  ;;  %v881_v63 = vadd.f32 %v880_v61, %v720_v59  ;;  %v1231_v28 = vadd.f32 %v1230_v60, %v1229_v55 }
 0x114   : > { %v1232_v1 = vpop.f32.mrf.mxu0  ;;  %v1326_v2 = vpop.f32.mrf.mxu1 }
 0x115   : > { %1005 = vst [vmem:[%s1651_s8 + $0x8] sm:$0xff] %v881_v63  ;;  %v902_v4 = vadd.f32 %v1326_v2, %v741_v0  ;;  %v752_v45 = vadd.f32 %v1231_v28, %v1645_v42 }
 0x116   : > { %v1233_v7 = vpop.f32.mrf.mxu0  ;;  %v893_v8 = vpop.f32.mrf.mxu1 }
 0x117   : > { %1010 = vst [vmem:[%s1651_s8 + $0x30] sm:$0xff] %v902_v4  ;;  %v1234_v9 = vadd.f32 %v1233_v7, %v1232_v1  ;;  %v894_v10 = vadd.f32 %v893_v8, %v733_v5 }
 0x118   : > { %v1235_v13 = vpop.f32.mrf.mxu0  ;;  %v1327_v14 = vpop.f32.mrf.mxu1 }
 0x119   : > { %1008 = vst [vmem:[%s1651_s8 + $0x20] sm:$0xff] %v894_v10  ;;  %v905_v17 = vadd.f32 %v1327_v14, %v744_v12  ;;  %v757_v24 = vadd.f32 %v1234_v9, %v1645_v42 }
 0x11a   : > { %v1236_v19 = vpop.f32.mrf.mxu0  ;;  %v896_v20 = vpop.f32.mrf.mxu1 }
 0x11b   : > { %1011 = vst [vmem:[%s1651_s8 + $0x38] sm:$0xff] %v905_v17  ;;  %v1237_v22 = vadd.f32 %v1236_v19, %v1235_v13  ;;  %v897_v23 = vadd.f32 %v896_v20, %v736_v18 }
 0x11c   : > { %v1238_v25 = vpop.f32.mrf.mxu0  ;;  %v1330_v27 = vpop.f32.mrf.mxu1 }
 0x11d   : > { %1009 = vst [vmem:[%s1651_s8 + $0x28] sm:$0xff] %v897_v23  ;;  %v918_v29 = vadd.f32 %v1330_v27, %v757_v24  ;;  %v760_v37 = vadd.f32 %v1237_v22, %v1645_v42 }
 0x11e   : > { %v1239_v32 = vpop.f32.mrf.mxu0  ;;  %v909_v34 = vpop.f32.mrf.mxu1 }
 0x11f   : > { %1014 = vst [vmem:[%s1651_s8 + $0x50] sm:$0xff] %v918_v29  ;;  %v910_v36 = vadd.f32 %v909_v34, %v749_v30  ;;  %v1240_v43 = vadd.f32 %v1239_v32, %v1238_v25 }
 0x120   : > { %v1241_v39 = vpop.f32.mrf.mxu0  ;;  %v1331_v40 = vpop.f32.mrf.mxu1 }
 0x121   : > { %1012 = vst [vmem:[%s1651_s8 + $0x40] sm:$0xff] %v910_v36  ;;  %v921_v44 = vadd.f32 %v1331_v40, %v760_v37  ;;  %v765_v52 = vadd.f32 %v1240_v43, %v1645_v42 }
 0x122   : > { %v1242_v46 = vpop.f32.mrf.mxu0  ;;  %v912_v47 = vpop.f32.mrf.mxu1 }
 0x123   : > { %1015 = vst [vmem:[%s1651_s8 + $0x58] sm:$0xff] %v921_v44  ;;  %v913_v48 = vadd.f32 %v912_v47, %v752_v45  ;;  %v1243_v51 = vadd.f32 %v1242_v46, %v1241_v39  ;;  %v821_v39 = vadd.f32 %v1625_v16, %v1645_v42  ;;  %v813_v46 = vadd.f32 %v1621_v6, %v1645_v42 }
 0x124   : > { %v1244_v49 = vpop.f32.mrf.mxu0  ;;  %v1334_v50 = vpop.f32.mrf.mxu1  ;;  %v1294_v47 = vadd.f32 %v1635_v35, %v1633_v33  ;;  %v816_v33 = vadd.f32 %v1623_v11, %v1645_v42 }
 0x125   : > { %1013 = vst [vmem:[%s1651_s8 + $0x48] sm:$0xff] %v913_v48  ;;  %v768_v60 = vadd.f32 %v1243_v51, %v1645_v42 }
 0x126   : > { %v1245_v53 = vpop.f32.mrf.mxu0  ;;  %v925_v54 = vpop.f32.mrf.mxu1 }
 0x127   : > { %v1246_v55 = vadd.f32 %v1245_v53, %v1244_v49  ;;  %v926_v56 = vadd.f32 %v925_v54, %v765_v52  ;;  %v824_v52 = vadd.f32 %v1627_v21, %v1645_v42  ;;  %v1297_v21 = vadd.f32 %v1640_v41, %v1637_v38 }
 0x128   : > { %v1247_v57 = vpop.f32.mrf.mxu0  ;;  %v1335_v58 = vpop.f32.mrf.mxu1 }
 0x129   : > { %v773_v59 = vadd.f32 %v1246_v55, %v1645_v42  ;;  %1016 = vst [vmem:[%s1651_s8 + $0x60] sm:$0xff] %v926_v56 }
 0x12a   : > { %v1248_v61 = vpop.f32.mrf.mxu0  ;;  %v928_v62 = vpop.f32.mrf.mxu1 }
 0x12b   : > { %v934_v63 = vadd.f32 %v1334_v50, %v773_v59  ;;  %v1249_v0 = vadd.f32 %v1248_v61, %v1247_v57  ;;  %v929_v1 = vadd.f32 %v928_v62, %v768_v60  ;;  %v837_v57 = vadd.f32 %v1294_v47, %v1645_v42 }
 0x12c   : > { %v1250_v2 = vpop.f32.mrf.mxu0  ;;  %v1338_v3 = vpop.f32.mrf.mxu1 }
 0x12d   : > { %1018 = vst [vmem:[%s1651_s8 + $0x70] sm:$0xff] %v934_v63  ;;  %v776_v4 = vadd.f32 %v1249_v0, %v1645_v42  ;;  %1017 = vst [vmem:[%s1651_s8 + $0x68] sm:$0xff] %v929_v1  ;;  %v829_v0 = vadd.f32 %v1629_v26, %v1645_v42  ;;  %v832_v26 = vadd.f32 %v1631_v31, %v1645_v42 }
 0x12e   : > { %v1251_v5 = vpop.f32.mrf.mxu0  ;;  %v941_v7 = vpop.f32.mrf.mxu1 }
 0x12f   : > { %v937_v8 = vadd.f32 %v1335_v58, %v776_v4  ;;  %v1252_v9 = vadd.f32 %v1251_v5, %v1250_v2  ;;  %v840_v4 = vadd.f32 %v1297_v21, %v1645_v42 }
 0x130   : > { %v1253_v10 = vpop.f32.mrf.mxu0  ;;  %v1339_v12 = vpop.f32.mrf.mxu1 }
 0x131   : > { %1019 = vst [vmem:[%s1651_s8 + $0x78] sm:$0xff] %v937_v8  ;;  %v781_v13 = vadd.f32 %v1252_v9, %v1645_v42 }
 0x132   : > { %v1254_v14 = vpop.f32.mrf.mxu0  ;;  %v944_v15 = vpop.f32.mrf.mxu1 }
 0x133   : > { %v942_v17 = vadd.f32 %v941_v7, %v781_v13  ;;  %v1255_v18 = vadd.f32 %v1254_v14, %v1253_v10 }
 0x134   : > { %v1256_v19 = vpop.f32.mrf.mxu0  ;;  %v1685_v20 = vpop.f32.mrf.mxu1 }
 0x135   : > { %1020 = vst [vmem:[%s1651_s8 + $0x80] sm:$0xff] %v942_v17  ;;  %v784_v22 = vadd.f32 %v1255_v18, %v1645_v42 }
 0x136   : > { %v1257_v23 = vpop.f32.mrf.mxu0  ;;  %v957_v24 = vpop.f32.mrf.mxu1 }
 0x137   : > { %v945_v25 = vadd.f32 %v944_v15, %v784_v22  ;;  %v1258_v27 = vadd.f32 %v1257_v23, %v1256_v19 }
 0x138   : > { %v1259_v28 = vpop.f32.mrf.mxu0  ;;  %v1689_v29 = vpop.f32.mrf.mxu1 }
 0x139   : > { %1021 = vst [vmem:[%s1651_s8 + $0x88] sm:$0xff] %v945_v25  ;;  %v789_v30 = vadd.f32 %v1258_v27, %v1645_v42 }
 0x13a   : > { %v1260_v32 = vpop.f32.mrf.mxu0  ;;  %v960_v34 = vpop.f32.mrf.mxu1 }
 0x13b   : > { %v950_v36 = vadd.f32 %v1338_v3, %v789_v30  ;;  %v1261_v37 = vadd.f32 %v1260_v32, %v1259_v28 }
 0x13c   : > { %v1262_v40 = vpop.f32.mrf.mxu0  ;;  %v1346_v43 = vpop.f32.mrf.mxu1 }
 0x13d   : > { %1022 = vst [vmem:[%s1651_s8 + $0x90] sm:$0xff] %v950_v36  ;;  %v792_v44 = vadd.f32 %v1261_v37, %v1645_v42  ;;  %v982_v45 = vadd.f32 %v1346_v43, %v821_v39 }
 0x13e   : > { %v1263_v48 = vpop.f32.mrf.mxu0  ;;  %v973_v49 = vpop.f32.mrf.mxu1 }
 0x13f   : > { %v953_v50 = vadd.f32 %v1339_v12, %v792_v44  ;;  %1030 = vst [vmem:[%s1651_s8 + $0xd0] sm:$0xff] %v982_v45  ;;  %v1264_v16 = vadd.f32 %v1263_v48, %v1262_v40  ;;  %v974_v51 = vadd.f32 %v973_v49, %v813_v46 }
 0x140   : > { %v1265_v53 = vpop.f32.mrf.mxu0  ;;  %v1347_v54 = vpop.f32.mrf.mxu1 }
 0x141   : > { %1023 = vst [vmem:[%s1651_s8 + $0x98] sm:$0xff] %v953_v50  ;;  %v797_v55 = vadd.f32 %v1264_v16, %v1645_v42  ;;  %1028 = vst [vmem:[%s1651_s8 + $0xc0] sm:$0xff] %v974_v51  ;;  %v985_v6 = vadd.f32 %v1347_v54, %v824_v52 }
 0x142   : > { %v1266_v35 = vpop.f32.mrf.mxu0  ;;  %v976_v56 = vpop.f32.mrf.mxu1 }
 0x143   : > { %v958_v58 = vadd.f32 %v957_v24, %v797_v55  ;;  %1031 = vst [vmem:[%s1651_s8 + $0xd8] sm:$0xff] %v985_v6  ;;  %v1267_v59 = vadd.f32 %v1266_v35, %v1265_v53  ;;  %v977_v60 = vadd.f32 %v976_v56, %v816_v33 }
 0x144   : > { %v1268_v61 = vpop.f32.mrf.mxu0  ;;  %v1350_v62 = vpop.f32.mrf.mxu1 }
 0x145   : > { %1024 = vst [vmem:[%s1651_s8 + $0xa0] sm:$0xff] %v958_v58  ;;  %v800_v63 = vadd.f32 %v1267_v59, %v1645_v42  ;;  %1029 = vst [vmem:[%s1651_s8 + $0xc8] sm:$0xff] %v977_v60  ;;  %v998_v11 = vadd.f32 %v1350_v62, %v837_v57 }
 0x146   : > { %v1269_v1 = vpop.f32.mrf.mxu0  ;;  %v989_v2 = vpop.f32.mrf.mxu1 }
 0x147   : > { %v961_v38 = vadd.f32 %v960_v34, %v800_v63  ;;  %1034 = vst [vmem:[%s1651_s8 + $0xf0] sm:$0xff] %v998_v11  ;;  %v1270_v41 = vadd.f32 %v1269_v1, %v1268_v61  ;;  %v990_v3 = vadd.f32 %v989_v2, %v829_v0 }
 0x148   : > { %v1271_v5 = vpop.f32.mrf.mxu0  ;;  %v1351_v7 = vpop.f32.mrf.mxu1 }
 0x149   : > { %1025 = vst [vmem:[%s1651_s8 + $0xa8] sm:$0xff] %v961_v38  ;;  %v805_v8 = vadd.f32 %v1270_v41, %v1645_v42  ;;  %1032 = vst [vmem:[%s1651_s8 + $0xe0] sm:$0xff] %v990_v3  ;;  %v1001_v9 = vadd.f32 %v1351_v7, %v840_v4 }
 0x14a   : > { %v1272_v10 = vpop.f32.mrf.mxu0  ;;  %v992_v12 = vpop.f32.mrf.mxu1 }
 0x14b   : > { %v966_v13 = vadd.f32 %v1685_v20, %v805_v8  ;;  %1035 = vst [vmem:[%s1651_s8 + $0xf8] sm:$0xff] %v1001_v9  ;;  %v1273_v14 = vadd.f32 %v1272_v10, %v1271_v5  ;;  %v993_v15 = vadd.f32 %v992_v12, %v832_v26 }
 0x14d   : > { %1026 = vst [vmem:[%s1651_s8 + $0xb0] sm:$0xff] %v966_v13  ;;  %v808_v17 = vadd.f32 %v1273_v14, %v1645_v42  ;;  %1033 = vst [vmem:[%s1651_s8 + $0xe8] sm:$0xff] %v993_v15 }
 0x14f   : > { %v969_v18 = vadd.f32 %v1689_v29, %v808_v17 }
 0x151   : > { %1027 = vst [vmem:[%s1651_s8 + $0xb8] sm:$0xff] %v969_v18 }
 0x152 PF: > { %s13_s12 = sadd.s32 1, %s1465_s12  }
 0x153   : > { %p10_p4 = scmp.ge.s32.totalorder %s13_s12, 4  }
 0x155   :  { %12 = sbr.rel (!%p10_p4) target bundleno = 1 (0x1), region = 62 }

// kernel: _forward_impl.30
= control target key start
LH: loop header
LB: loop body
LE: loop exit
PB: predicated region body
PF: predicated region fallthrough
CT: control target
= control target key end

     0   :  { %s1805_s18 = smov 0   ;;  %s2149_s0 = inlined_call_operand.vmem [shape: bf16[512,144], index: 0, kind: input, shape index: {}]   ;;  %s2150_s1 = inlined_call_operand.vmem [shape: f32[512,8], index: 1, kind: input, shape index: {}]   ;;  %s2151_s2 = inlined_call_operand.vmem [shape: bf16[144,128], index: 2, kind: input, shape index: {}]   ;;  %s2152_s3 = inlined_call_operand.vmem [shape: f32[1,128], index: 3, kind: input, shape index: {}]   ;;  %s2153_s4 = inlined_call_operand.vmem [shape: bf16[512,8], index: 4, kind: output, shape index: {0}]   ;;  %s2154_s5 = inlined_call_operand.vmem [shape: f32[512,8], index: 5, kind: output, shape index: {1}]  }
   0x1 LB: > { %s1413_s19 = sadd.s32 4294967295, %s1771_s18   ;;  %p1417_p0 = scmp.ge.s32.totalorder %s1771_s18, 1  ;;  %s1771_s18 = sphi %s1805_s18, %s16_s18  }
   0x2   : > { %p203_p1 = scmp.lt.s32.totalorder %s1771_s18, 3 }
   0x4   : > { %p204_p2 = pnand %p1417_p0, %p203_p1 }
   0x5   : > { %s1418_s22 = sshll.u32 (!%p204_p2), %s1413_s19, 5  ;;  %s1774_s26 = smov (!%p204_p2), 120  }
   0x6   : > { %207 = sbr.rel (%p204_p2) target bundleno = 459 (0x1cb), region = 36  ;;  %p243_p3 = scmp.lt.s32.totalorder (!%p204_p2), %s1418_s22, 63 }
   0xb   : > { %v1580_v0 = vld [vmem:[%s2151_s2 + $0x38] sm:$0xff]   ;;  %v1773_v1 = vmov 0   ;;  %v1581_v2 = vld [vmem:[%s2151_s2 + $0x30] sm:$0xff]   ;;  %s2156_s22 = smov (!%p243_p3, %s1418_s22), 63  ;;  %v1582_v3 = vld [vmem:[%s2151_s2 + $0x28] sm:$0xff]   ;;  %vm523_vm0 = vcmask 130048  }
   0xc   : > { %572 = vmatprep.subr.bf16.mxu0 %v1773_v1  ;;  %1552 = vmatprep.subr.bf16.mxu1 %v1773_v1  ;;  %s1825_s27 = sshll.u32 %s2156_s22, 3  ;;  %v1583_v4 = vld [vmem:[%s2151_s2 + $0x20] sm:$0xff]   ;;  %v1584_v7 = vld [vmem:[%s2151_s2 + $0x18] sm:$0xff]   ;;  %v1585_v8 = vld [vmem:[%s2151_s2 + $0x10] sm:$0xff]   ;;  %s1424_s25 = sshll.u32 %s2156_s22, 2  ;;  %vm1117_vm1 = vcmask 60416  }
   0xd   : > { %573 = vmatpush1.bf16.msra.mxu0 %v1580_v0  ;;  %1561 = vmatpush1.bf16.msra.mxu1 %v1580_v0  ;;  %s1831_s30 = scalar_lea.vmem %s2149_s0, %s1825_s27  ;;  %v1586_v9 = vld [vmem:[%s2151_s2 + $0x8] sm:$0xff]   ;;  %v1587_v10 = vld [vmem:[%s2151_s2] sm:$0xff]   ;;  %s1924_s24 = scalar_lea.vmem %s2150_s1, %s1825_s27  ;;  %vm1278_vm2 = vcmask 64512  }
   0xe   : > { %574 = vmatprep.subr.bf16.mxu0 %v1773_v1  ;;  %1553 = vmatprep.subr.bf16.mxu1 %v1773_v1  ;;  %v1591_v5 = vld [vmem:[%s1831_s30 + $0x4] ss:$8 sps:$4 sm:$0xff]   ;;  %v1589_v12 = vld [vmem:[%s1831_s30] ss:$8 sps:$4 sm:$0xff]   ;;  %v1595_v14 = vld [vmem:[%s1831_s30 + $0x14] ss:$8 sps:$4 sm:$0xff]   ;;  %s1936_s29 = scalar_lea.vmem %s2153_s4, %s1424_s25  ;;  %s2080_s7 = scalar_lea.vmem %s2154_s5, %s1825_s27 }
   0xf   : > { %v1594_v6 = vld [vmem:[%s1831_s30 + $0x84] ss:$8 sps:$4 sm:$0xff]   ;;  %1469 = vmatprep.mubr.msk.bf16.mxu0 %vm523_vm0, %v1591_v5  ;;  %v1592_v13 = vld [vmem:[%s1831_s30 + $0x80] ss:$8 sps:$4 sm:$0xff]   ;;  %v1597_v15 = vld [vmem:[%s1831_s30 + $0x94] ss:$8 sps:$4 sm:$0xff]  }
  0x10   : > { %1477 = vmatprep.mubr.msk.bf16.mxu1 %vm523_vm0, %v1594_v6  ;;  %v1588_v11 = vld [vmem:[%s2151_s2 + $0x40] sm:$0xff]   ;;  %v1599_v16 = vld [vmem:[%s1831_s30 + $0x10] ss:$8 sps:$4 sm:$0xff]   ;;  %v1607_v22 = vld [vmem:[%s1831_s30 + $0x34] ss:$8 sps:$4 sm:$0xff]  }
  0x11   : > { %575 = vmatpush1.bf16.msra.mxu0 %v1581_v2  ;;  %1562 = vmatpush1.bf16.msra.mxu1 %v1581_v2  ;;  %v1600_v17 = vld [vmem:[%s1831_s30 + $0x90] ss:$8 sps:$4 sm:$0xff]   ;;  %v1601_v18 = vld [vmem:[%s1831_s30 + $0x24] ss:$8 sps:$4 sm:$0xff]   ;;  %v1605_v20 = vld [vmem:[%s1831_s30 + $0x20] ss:$8 sps:$4 sm:$0xff]  }
  0x12   : > { %576 = vmatprep.subr.bf16.mxu0 %v1773_v1  ;;  %1554 = vmatprep.subr.bf16.mxu1 %v1773_v1  ;;  %v1603_v19 = vld [vmem:[%s1831_s30 + $0xa4] ss:$8 sps:$4 sm:$0xff]   ;;  %v1606_v21 = vld [vmem:[%s1831_s30 + $0xa0] ss:$8 sps:$4 sm:$0xff]   ;;  %v1609_v23 = vld [vmem:[%s1831_s30 + $0xb4] ss:$8 sps:$4 sm:$0xff]  }
  0x13   : > { %v1611_v24 = vld [vmem:[%s1831_s30 + $0x30] ss:$8 sps:$4 sm:$0xff]   ;;  %v1613_v26 = vld [vmem:[%s1831_s30 + $0x44] ss:$8 sps:$4 sm:$0xff]   ;;  %v1617_v28 = vld [vmem:[%s1831_s30 + $0x40] ss:$8 sps:$4 sm:$0xff]  }
  0x14   : > { %v1612_v25 = vld [vmem:[%s1831_s30 + $0xb0] ss:$8 sps:$4 sm:$0xff]   ;;  %v1615_v27 = vld [vmem:[%s1831_s30 + $0xc4] ss:$8 sps:$4 sm:$0xff]   ;;  %v1618_v29 = vld [vmem:[%s1831_s30 + $0xc0] ss:$8 sps:$4 sm:$0xff]  }
  0x15   : > { %577 = vmatpush1.bf16.msra.mxu0 %v1582_v3  ;;  %1563 = vmatpush1.bf16.msra.mxu1 %v1582_v3  ;;  %v1619_v30 = vld [vmem:[%s1831_s30 + $0x54] ss:$8 sps:$4 sm:$0xff]   ;;  %v1623_v32 = vld [vmem:[%s1831_s30 + $0x50] ss:$8 sps:$4 sm:$0xff]   ;;  %v1625_v34 = vld [vmem:[%s1831_s30 + $0x64] ss:$8 sps:$4 sm:$0xff]  }
  0x16   : > { %578 = vmatprep.subr.bf16.mxu0 %v1773_v1  ;;  %1555 = vmatprep.subr.bf16.mxu1 %v1773_v1  ;;  %v1621_v31 = vld [vmem:[%s1831_s30 + $0xd4] ss:$8 sps:$4 sm:$0xff]   ;;  %v1624_v33 = vld [vmem:[%s1831_s30 + $0xd0] ss:$8 sps:$4 sm:$0xff]   ;;  %v1627_v35 = vld [vmem:[%s1831_s30 + $0xe4] ss:$8 sps:$4 sm:$0xff]  }
  0x17   : > { %v1629_v36 = vld [vmem:[%s1831_s30 + $0x60] ss:$8 sps:$4 sm:$0xff]   ;;  %v1631_v38 = vld [vmem:[%s1831_s30 + $0x74] ss:$8 sps:$4 sm:$0xff]   ;;  %v1635_v40 = vld [vmem:[%s1831_s30 + $0x70] ss:$8 sps:$4 sm:$0xff]  }
  0x18   : > { %v1630_v37 = vld [vmem:[%s1831_s30 + $0xe0] ss:$8 sps:$4 sm:$0xff]   ;;  %v1633_v39 = vld [vmem:[%s1831_s30 + $0xf4] ss:$8 sps:$4 sm:$0xff]   ;;  %v1636_v41 = vld [vmem:[%s1831_s30 + $0xf0] ss:$8 sps:$4 sm:$0xff]  }
  0x19   : > { %579 = vmatpush1.bf16.msra.mxu0 %v1583_v4  ;;  %1564 = vmatpush1.bf16.msra.mxu1 %v1583_v4  ;;  %v1902_v42 = vld [vmem:[%s2152_s3] ss:$0 sm:$0xff] }
  0x1a   : > { %580 = vmatprep.subr.bf16.mxu0 %v1773_v1  ;;  %1556 = vmatprep.subr.bf16.mxu1 %v1773_v1 }
  0x1d   : > { %581 = vmatpush1.bf16.msra.mxu0 %v1584_v7  ;;  %1565 = vmatpush1.bf16.msra.mxu1 %v1584_v7 }
  0x1e   : > { %582 = vmatprep.subr.bf16.mxu0 %v1773_v1  ;;  %1557 = vmatprep.subr.bf16.mxu1 %v1773_v1 }
  0x21   : > { %583 = vmatpush1.bf16.msra.mxu0 %v1585_v8  ;;  %1566 = vmatpush1.bf16.msra.mxu1 %v1585_v8 }
  0x22   : > { %584 = vmatprep.subr.bf16.mxu0 %v1773_v1  ;;  %1558 = vmatprep.subr.bf16.mxu1 %v1773_v1 }
  0x25   : > { %585 = vmatpush1.bf16.msra.mxu0 %v1586_v9  ;;  %1567 = vmatpush1.bf16.msra.mxu1 %v1586_v9 }
  0x26   : > { %586 = vmatprep.subr.bf16.mxu0 %v1773_v1  ;;  %1559 = vmatprep.subr.bf16.mxu1 %v1773_v1 }
  0x29   : > { %587 = vmatpush1.bf16.msra.mxu0 %v1587_v10  ;;  %1568 = vmatpush1.bf16.msra.mxu1 %v1587_v10 }
  0x2a   : > { %602 = vmatprep.subr.bf16.mxu0 %v1773_v1  ;;  %1560 = vmatprep.subr.bf16.mxu1 %v1773_v1 }
  0x2d   : > { %603 = vmatpush2.bf16.msra.mxu0 %v1588_v11  ;;  %1569 = vmatpush2.bf16.msra.mxu1 %v1588_v11 }
  0x30   : > { %605 = vmatmul.mubr.bf16.vlgmr.msra.gmra.mxu0 %v1589_v12  ;;  %669 = vmatmul.mubr.bf16.vlgmr.msra.gmra.mxu1 %v1592_v13 }
  0x31   : > { %1470 = vmatprep.mubr.msk.bf16.mxu0 %vm523_vm0, %v1595_v14  ;;  %1478 = vmatprep.mubr.msk.bf16.mxu1 %vm523_vm0, %v1597_v15 }
  0x38   : > { %613 = vmatmul.mubr.bf16.gmra.mxu0 %v1599_v16  ;;  %677 = vmatmul.mubr.bf16.gmra.mxu1 %v1600_v17 }
  0x39   : > { %1471 = vmatprep.mubr.msk.bf16.mxu0 %vm523_vm0, %v1601_v18  ;;  %1479 = vmatprep.mubr.msk.bf16.mxu1 %vm523_vm0, %v1603_v19 }
  0x40   : > { %621 = vmatmul.mubr.bf16.gmra.mxu0 %v1605_v20  ;;  %685 = vmatmul.mubr.bf16.gmra.mxu1 %v1606_v21 }
  0x41   : > { %1472 = vmatprep.mubr.msk.bf16.mxu0 %vm523_vm0, %v1607_v22  ;;  %1480 = vmatprep.mubr.msk.bf16.mxu1 %vm523_vm0, %v1609_v23 }
  0x48   : > { %629 = vmatmul.mubr.bf16.gmra.mxu0 %v1611_v24  ;;  %693 = vmatmul.mubr.bf16.gmra.mxu1 %v1612_v25 }
  0x49   : > { %1473 = vmatprep.mubr.msk.bf16.mxu0 %vm523_vm0, %v1613_v26  ;;  %1481 = vmatprep.mubr.msk.bf16.mxu1 %vm523_vm0, %v1615_v27 }
  0x50   : > { %637 = vmatmul.mubr.bf16.gmra.mxu0 %v1617_v28  ;;  %701 = vmatmul.mubr.bf16.gmra.mxu1 %v1618_v29 }
  0x51   : > { %1474 = vmatprep.mubr.msk.bf16.mxu0 %vm523_vm0, %v1619_v30  ;;  %1482 = vmatprep.mubr.msk.bf16.mxu1 %vm523_vm0, %v1621_v31 }
  0x58   : > { %645 = vmatmul.mubr.bf16.gmra.mxu0 %v1623_v32  ;;  %709 = vmatmul.mubr.bf16.gmra.mxu1 %v1624_v33 }
  0x59   : > { %1475 = vmatprep.mubr.msk.bf16.mxu0 %vm523_vm0, %v1625_v34  ;;  %1483 = vmatprep.mubr.msk.bf16.mxu1 %vm523_vm0, %v1627_v35 }
  0x60   : > { %653 = vmatmul.mubr.bf16.gmra.mxu0 %v1629_v36  ;;  %717 = vmatmul.mubr.bf16.gmra.mxu1 %v1630_v37 }
  0x61   : > { %1476 = vmatprep.mubr.msk.bf16.mxu0 %vm523_vm0, %v1631_v38  ;;  %1484 = vmatprep.mubr.msk.bf16.mxu1 %vm523_vm0, %v1633_v39 }
  0x68   : > { %661 = vmatmul.mubr.bf16.gmra.mxu0 %v1635_v40  ;;  %725 = vmatmul.mubr.bf16.gmra.mxu1 %v1636_v41 }
  0xf0   : > { %v606_v43 = vpop.f32.mrf.mxu0  ;;  %v670_v44 = vpop.f32.mrf.mxu1 }
  0xf1   : > { %v607_v45 = vadd.f32 %v1902_v42, %v606_v43  ;;  %v671_v46 = vadd.f32 %v1902_v42, %v670_v44 }
  0xf2   : > { %v608_v47 = vpop.f32.mrf.mxu0  ;;  %v672_v48 = vpop.f32.mrf.mxu1 }
  0xf3   : > { %v733_v49 = vsub.f32 0.0, %v607_v45  ;;  %v749_v50 = vsub.f32 0.0, %v671_v46 }
  0xf4   : > { %v609_v51 = vpop.f32.mrf.mxu0  ;;  %v673_v52 = vpop.f32.mrf.mxu1 }
  0xf5   : > { %v765_v53 = vmul.f32 1.442695, %v733_v49  ;;  %v797_v54 = vmul.f32 1.442695, %v749_v50  ;;  %v610_v55 = vadd.f32 %v1902_v42, %v609_v51  ;;  %v674_v56 = vadd.f32 %v1902_v42, %v673_v52 }
  0xf6   : > { %v611_v57 = vpop.f32.mrf.mxu0  ;;  %v675_v58 = vpop.f32.mrf.mxu1 }
  0xf7   : > { %1637 = vpow2.f32 %v765_v53  ;;  %v734_v59 = vsub.f32 0.0, %v610_v55  ;;  %v750_v60 = vsub.f32 0.0, %v674_v56 }
  0xf8   : > { %1639 = vpow2.f32 %v797_v54  ;;  %v614_v61 = vpop.f32.mrf.mxu0  ;;  %v678_v62 = vpop.f32.mrf.mxu1 }
  0xf9   : > { %v767_v63 = vmul.f32 1.442695, %v734_v59  ;;  %v799_v0 = vmul.f32 1.442695, %v750_v60  ;;  %v615_v1 = vadd.f32 %v1902_v42, %v614_v61  ;;  %v679_v2 = vadd.f32 %v1902_v42, %v678_v62 }
  0xfa   : > { %v616_v3 = vpop.f32.mrf.mxu0  ;;  %v680_v4 = vpop.f32.mrf.mxu1 }
  0xfb   : > { %1641 = vpow2.f32 %v767_v63  ;;  %v735_v5 = vsub.f32 0.0, %v615_v1  ;;  %v751_v6 = vsub.f32 0.0, %v679_v2 }
  0xfc   : > { %1643 = vpow2.f32 %v799_v0  ;;  %v617_v7 = vpop.f32.mrf.mxu0  ;;  %v681_v8 = vpop.f32.mrf.mxu1 }
  0xfd   : > { %v769_v9 = vmul.f32 1.442695, %v735_v5  ;;  %v801_v10 = vmul.f32 1.442695, %v751_v6  ;;  %v618_v11 = vadd.f32 %v1902_v42, %v617_v7  ;;  %v682_v12 = vadd.f32 %v1902_v42, %v681_v8 }
  0xfe   : > { %v619_v13 = vpop.f32.mrf.mxu0  ;;  %v683_v14 = vpop.f32.mrf.mxu1 }
  0xff   : > { %1645 = vpow2.f32 %v769_v9  ;;  %v736_v15 = vsub.f32 0.0, %v618_v11  ;;  %v752_v16 = vsub.f32 0.0, %v682_v12  ;;  %v925_v13 = vld [vmem:[%s1924_s24] sm:$0xff] }
 0x100   : > { %1647 = vpow2.f32 %v801_v10  ;;  %v622_v17 = vpop.f32.mrf.mxu0  ;;  %v686_v18 = vpop.f32.mrf.mxu1 }
 0x101   : > { %v771_v19 = vmul.f32 1.442695, %v736_v15  ;;  %v803_v20 = vmul.f32 1.442695, %v752_v16  ;;  %v623_v21 = vadd.f32 %v1902_v42, %v622_v17  ;;  %v687_v22 = vadd.f32 %v1902_v42, %v686_v18 }
 0x102   : > { %v624_v23 = vpop.f32.mrf.mxu0  ;;  %v688_v24 = vpop.f32.mrf.mxu1 }
 0x103   : > { %1649 = vpow2.f32 %v771_v19  ;;  %v737_v25 = vsub.f32 0.0, %v623_v21  ;;  %v753_v26 = vsub.f32 0.0, %v687_v22  ;;  %v941_v19 = vld [vmem:[%s1924_s24 + $0x80] sm:$0xff] }
 0x104   : > { %v1638_v27 = vpop.eup %1637  ;;  %1651 = vpow2.f32 %v803_v20  ;;  %v625_v28 = vpop.f32.mrf.mxu0 }
 0x105   : > { %v689_v29 = vpop.f32.mrf.mxu1  ;;  %v1640_v30 = vpop.eup %1639  ;;  %v829_v31 = vadd.f32 1.0, %v1638_v27  ;;  %v773_v32 = vmul.f32 1.442695, %v737_v25  ;;  %v626_v33 = vadd.f32 %v1902_v42, %v625_v28  ;;  %v805_v35 = vmul.f32 1.442695, %v753_v26 }
 0x106   : > { %v845_v34 = vadd.f32 1.0, %v1640_v30  ;;  %v690_v36 = vadd.f32 %v1902_v42, %v689_v29  ;;  %v627_v37 = vpop.f32.mrf.mxu0 }
 0x107   : > { %v691_v38 = vpop.f32.mrf.mxu1  ;;  %1653 = vrcp.f32 %v829_v31  ;;  %v738_v39 = vsub.f32 0.0, %v626_v33  ;;  %v926_v31 = vld [vmem:[%s1924_s24 + $0x8] sm:$0xff] }
 0x108   : > { %v1642_v40 = vpop.eup %1641  ;;  %1655 = vrcp.f32 %v845_v34  ;;  %v754_v41 = vsub.f32 0.0, %v690_v36  ;;  %v630_v43 = vpop.f32.mrf.mxu0  ;;  %v942_v38 = vld [vmem:[%s1924_s24 + $0x88] sm:$0xff] }
 0x109   : > { %v694_v44 = vpop.f32.mrf.mxu1  ;;  %v1644_v45 = vpop.eup %1643  ;;  %v830_v46 = vadd.f32 1.0, %v1642_v40  ;;  %1657 = vpow2.f32 %v773_v32  ;;  %v775_v47 = vmul.f32 1.442695, %v738_v39  ;;  %v631_v48 = vadd.f32 %v1902_v42, %v630_v43 }
 0x10a   : > { %v846_v49 = vadd.f32 1.0, %v1644_v45  ;;  %1659 = vpow2.f32 %v805_v35  ;;  %v807_v50 = vmul.f32 1.442695, %v754_v41  ;;  %v695_v51 = vadd.f32 %v1902_v42, %v694_v44  ;;  %v632_v52 = vpop.f32.mrf.mxu0 }
 0x10b   : > { %v696_v53 = vpop.f32.mrf.mxu1  ;;  %1661 = vrcp.f32 %v830_v46  ;;  %v739_v54 = vsub.f32 0.0, %v631_v48 }
 0x10c   : > { %v1646_v55 = vpop.eup %1645  ;;  %1663 = vrcp.f32 %v846_v49  ;;  %v755_v56 = vsub.f32 0.0, %v695_v51  ;;  %v633_v57 = vpop.f32.mrf.mxu0 }
 0x10d   : > { %v697_v58 = vpop.f32.mrf.mxu1  ;;  %v1648_v59 = vpop.eup %1647  ;;  %v831_v60 = vadd.f32 1.0, %v1646_v55  ;;  %1665 = vpow2.f32 %v775_v47  ;;  %v777_v61 = vmul.f32 1.442695, %v739_v54  ;;  %v634_v62 = vadd.f32 %v1902_v42, %v633_v57  ;;  %v927_v54 = vld [vmem:[%s1924_s24 + $0x10] sm:$0xff] }
 0x10e   : > { %v847_v63 = vadd.f32 1.0, %v1648_v59  ;;  %1667 = vpow2.f32 %v807_v50  ;;  %v809_v0 = vmul.f32 1.442695, %v755_v56  ;;  %v698_v1 = vadd.f32 %v1902_v42, %v697_v58  ;;  %v635_v2 = vpop.f32.mrf.mxu0 }
 0x10f   : > { %v699_v3 = vpop.f32.mrf.mxu1  ;;  %1669 = vrcp.f32 %v831_v60  ;;  %v740_v4 = vsub.f32 0.0, %v634_v62 }
 0x110   : > { %v1650_v5 = vpop.eup %1649  ;;  %1671 = vrcp.f32 %v847_v63  ;;  %v756_v6 = vsub.f32 0.0, %v698_v1  ;;  %v638_v7 = vpop.f32.mrf.mxu0 }
 0x111   : > { %v702_v8 = vpop.f32.mrf.mxu1  ;;  %v1652_v9 = vpop.eup %1651  ;;  %v832_v10 = vadd.f32 1.0, %v1650_v5  ;;  %1673 = vpow2.f32 %v777_v61  ;;  %v779_v11 = vmul.f32 1.442695, %v740_v4  ;;  %v639_v12 = vadd.f32 %v1902_v42, %v638_v7  ;;  %v943_v61 = vld [vmem:[%s1924_s24 + $0x90] sm:$0xff] }
 0x112   : > { %v848_v14 = vadd.f32 1.0, %v1652_v9  ;;  %1675 = vpow2.f32 %v809_v0  ;;  %v811_v15 = vmul.f32 1.442695, %v756_v6  ;;  %v703_v16 = vadd.f32 %v1902_v42, %v702_v8  ;;  %v640_v17 = vpop.f32.mrf.mxu0 }
 0x113   : > { %v704_v18 = vpop.f32.mrf.mxu1  ;;  %1677 = vrcp.f32 %v832_v10  ;;  %v741_v20 = vsub.f32 0.0, %v639_v12  ;;  %v928_v12 = vld [vmem:[%s1924_s24 + $0x18] sm:$0xff] }
 0x114   : > { %v1654_v21 = vpop.eup %1653  ;;  %1679 = vrcp.f32 %v848_v14  ;;  %v757_v22 = vsub.f32 0.0, %v703_v16  ;;  %v641_v23 = vpop.f32.mrf.mxu0 }
 0x115   : > { %v705_v24 = vpop.f32.mrf.mxu1  ;;  %v1656_v25 = vpop.eup %1655  ;;  %v957_v26 = vmul.f32 %v1654_v21, %v925_v13  ;;  %1681 = vpow2.f32 %v779_v11  ;;  %v781_v27 = vmul.f32 1.442695, %v741_v20  ;;  %v642_v28 = vadd.f32 %v1902_v42, %v641_v23  ;;  %1182 = vrot.lane.b32.xlu0 %v1654_v21, %s1774_s26 }
 0x116   : > { %v1658_v29 = vpop.eup %1657  ;;  %v973_v30 = vmul.f32 %v1656_v25, %v941_v19  ;;  %1683 = vpow2.f32 %v811_v15  ;;  %v813_v32 = vmul.f32 1.442695, %v757_v22  ;;  %v706_v33 = vadd.f32 %v1902_v42, %v705_v24  ;;  %v643_v34 = vpop.f32.mrf.mxu0  ;;  %v944_v19 = vld [vmem:[%s1924_s24 + $0x98] sm:$0xff] }
 0x117   : > { %v707_v35 = vpop.f32.mrf.mxu1  ;;  %v1660_v36 = vpop.eup %1659  ;;  %v1520_v37 = vpack.c.bf16 %v957_v26, %v957_v26  ;;  %v833_v39 = vadd.f32 1.0, %v1658_v29  ;;  %1685 = vpow2.f32 %v781_v27  ;;  %v742_v40 = vsub.f32 0.0, %v642_v28 }
 0x118   : > { %v1662_v41 = vpop.eup %1661  ;;  %v1536_v43 = vpack.c.bf16 %v973_v30, %v973_v30  ;;  %v849_v44 = vadd.f32 1.0, %v1660_v36  ;;  %1687 = vpow2.f32 %v813_v32  ;;  %v758_v45 = vsub.f32 0.0, %v706_v33  ;;  %v646_v46 = vpop.f32.mrf.mxu0 }
 0x119   : > { %v710_v47 = vpop.f32.mrf.mxu1  ;;  %v1664_v48 = vpop.eup %1663  ;;  %1118 = vst.msk [vmem:[%s1936_s29] sm:$0xf] %vm1117_vm1, %v1520_v37  ;;  %v958_v49 = vmul.f32 %v1662_v41, %v926_v31  ;;  %1689 = vrcp.f32 %v833_v39  ;;  %v783_v50 = vmul.f32 1.442695, %v742_v40  ;;  %v647_v51 = vadd.f32 %v1902_v42, %v646_v46  ;;  %1214 = vrot.lane.b32.xlu0 %v1656_v25, %s1774_s26 }
 0x11a   : > { %v1666_v52 = vpop.eup %1665  ;;  %1134 = vst.msk [vmem:[%s1936_s29 + $0x40] sm:$0xf] %vm1117_vm1, %v1536_v43  ;;  %v974_v53 = vmul.f32 %v1664_v48, %v942_v38  ;;  %1691 = vrcp.f32 %v849_v44  ;;  %v815_v55 = vmul.f32 1.442695, %v758_v45  ;;  %v711_v56 = vadd.f32 %v1902_v42, %v710_v47  ;;  %1216 = vrot.lane.b32.xlu1 %v1664_v48, %s1774_s26  ;;  %v648_v57 = vpop.f32.mrf.mxu0  ;;  %v929_v45 = vld [vmem:[%s1924_s24 + $0x20] sm:$0xff] }
 0x11b   : > { %v712_v58 = vpop.f32.mrf.mxu1  ;;  %v1668_v59 = vpop.eup %1667  ;;  %v1521_v60 = vpack.c.bf16 %v958_v49, %v958_v49  ;;  %v834_v62 = vadd.f32 1.0, %v1666_v52  ;;  %1693 = vpow2.f32 %v783_v50  ;;  %v743_v63 = vsub.f32 0.0, %v647_v51  ;;  %v945_v51 = vld [vmem:[%s1924_s24 + $0xa0] sm:$0xff] }
 0x11c   : > { %v1670_v0 = vpop.eup %1669  ;;  %v1537_v1 = vpack.c.bf16 %v974_v53, %v974_v53  ;;  %v850_v2 = vadd.f32 1.0, %v1668_v59  ;;  %1695 = vpow2.f32 %v815_v55  ;;  %v759_v3 = vsub.f32 0.0, %v711_v56  ;;  %v649_v4 = vpop.f32.mrf.mxu0 }
 0x11d   : > { %v713_v5 = vpop.f32.mrf.mxu1  ;;  %v1672_v6 = vpop.eup %1671  ;;  %1119 = vst.msk [vmem:[%s1936_s29 + $0x4] sm:$0xf] %vm1117_vm1, %v1521_v60  ;;  %v959_v7 = vmul.f32 %v1670_v0, %v927_v54  ;;  %1697 = vrcp.f32 %v834_v62  ;;  %v785_v8 = vmul.f32 1.442695, %v743_v63  ;;  %v650_v9 = vadd.f32 %v1902_v42, %v649_v4  ;;  %1184 = vrot.lane.b32.xlu0 %v1662_v41, %s1774_s26 }
 0x11e   : > { %v1674_v10 = vpop.eup %1673  ;;  %1135 = vst.msk [vmem:[%s1936_s29 + $0x44] sm:$0xf] %vm1117_vm1, %v1537_v1  ;;  %v975_v11 = vmul.f32 %v1672_v6, %v943_v61  ;;  %1699 = vrcp.f32 %v850_v2  ;;  %v817_v13 = vmul.f32 1.442695, %v759_v3  ;;  %v714_v14 = vadd.f32 %v1902_v42, %v713_v5  ;;  %1186 = vrot.lane.b32.xlu1 %v1670_v0, %s1774_s26  ;;  %v651_v15 = vpop.f32.mrf.mxu0  ;;  %v930_v2 = vld [vmem:[%s1924_s24 + $0x28] sm:$0xff] }
 0x11f   : > { %v715_v16 = vpop.f32.mrf.mxu1  ;;  %v1676_v17 = vpop.eup %1675  ;;  %v1522_v18 = vpack.c.bf16 %v959_v7, %v959_v7  ;;  %v835_v20 = vadd.f32 1.0, %v1674_v10  ;;  %1701 = vpow2.f32 %v785_v8  ;;  %v744_v21 = vsub.f32 0.0, %v650_v9  ;;  %v946_v8 = vld [vmem:[%s1924_s24 + $0xa8] sm:$0xff] }
 0x120   : > { %v1678_v22 = vpop.eup %1677  ;;  %v1538_v23 = vpack.c.bf16 %v975_v11, %v975_v11  ;;  %v851_v24 = vadd.f32 1.0, %v1676_v17  ;;  %1703 = vpow2.f32 %v817_v13  ;;  %v760_v25 = vsub.f32 0.0, %v714_v14  ;;  %v654_v26 = vpop.f32.mrf.mxu0 }
 0x121   : > { %v718_v27 = vpop.f32.mrf.mxu1  ;;  %v1680_v28 = vpop.eup %1679  ;;  %1120 = vst.msk [vmem:[%s1936_s29 + $0x8] sm:$0xf] %vm1117_vm1, %v1522_v18  ;;  %v960_v29 = vmul.f32 %v1678_v22, %v928_v12  ;;  %1705 = vrcp.f32 %v835_v20  ;;  %v787_v30 = vmul.f32 1.442695, %v744_v21  ;;  %v655_v31 = vadd.f32 %v1902_v42, %v654_v26  ;;  %1218 = vrot.lane.b32.xlu0 %v1672_v6, %s1774_s26 }
 0x122   : > { %v1682_v32 = vpop.eup %1681  ;;  %1136 = vst.msk [vmem:[%s1936_s29 + $0x48] sm:$0xf] %vm1117_vm1, %v1538_v23  ;;  %v976_v33 = vmul.f32 %v1680_v28, %v944_v19  ;;  %1707 = vrcp.f32 %v851_v24  ;;  %v819_v34 = vmul.f32 1.442695, %v760_v25  ;;  %v719_v35 = vadd.f32 %v1902_v42, %v718_v27  ;;  %1188 = vrot.lane.b32.xlu1 %v1678_v22, %s1774_s26  ;;  %v656_v36 = vpop.f32.mrf.mxu0  ;;  %v931_v23 = vld [vmem:[%s1924_s24 + $0x30] sm:$0xff] }
 0x123   : > { %v720_v37 = vpop.f32.mrf.mxu1  ;;  %v1684_v38 = vpop.eup %1683  ;;  %v1523_v39 = vpack.c.bf16 %v960_v29, %v960_v29  ;;  %v836_v40 = vadd.f32 1.0, %v1682_v32  ;;  %1709 = vpow2.f32 %v787_v30  ;;  %v745_v41 = vsub.f32 0.0, %v655_v31 }
 0x124   : > { %v1686_v43 = vpop.eup %1685  ;;  %v1539_v44 = vpack.c.bf16 %v976_v33, %v976_v33  ;;  %v852_v46 = vadd.f32 1.0, %v1684_v38  ;;  %1711 = vpow2.f32 %v819_v34  ;;  %v761_v47 = vsub.f32 0.0, %v719_v35  ;;  %v657_v48 = vpop.f32.mrf.mxu0 }
 0x125   : > { %v721_v49 = vpop.f32.mrf.mxu1  ;;  %v1688_v50 = vpop.eup %1687  ;;  %1121 = vst.msk [vmem:[%s1936_s29 + $0xc] sm:$0xf] %vm1117_vm1, %v1523_v39  ;;  %1713 = vrcp.f32 %v836_v40  ;;  %v837_v52 = vadd.f32 1.0, %v1686_v43  ;;  %v789_v53 = vmul.f32 1.442695, %v745_v41  ;;  %v658_v54 = vadd.f32 %v1902_v42, %v657_v48 }
 0x126   : > { %v1690_v55 = vpop.eup %1689  ;;  %1137 = vst.msk [vmem:[%s1936_s29 + $0x4c] sm:$0xf] %vm1117_vm1, %v1539_v44  ;;  %1715 = vrcp.f32 %v852_v46  ;;  %v853_v56 = vadd.f32 1.0, %v1688_v50  ;;  %v821_v57 = vmul.f32 1.442695, %v761_v47  ;;  %v722_v58 = vadd.f32 %v1902_v42, %v721_v49  ;;  %1220 = vrot.lane.b32.xlu1 %v1680_v28, %s1774_s26  ;;  %v659_v59 = vpop.f32.mrf.mxu0  ;;  %v947_v28 = vld [vmem:[%s1924_s24 + $0xb0] sm:$0xff] }
 0x127   : > { %v723_v60 = vpop.f32.mrf.mxu1  ;;  %v1692_v61 = vpop.eup %1691  ;;  %v961_v62 = vmul.f32 %v1690_v55, %v929_v45  ;;  %1717 = vrcp.f32 %v837_v52  ;;  %v746_v63 = vsub.f32 0.0, %v658_v54  ;;  %1190 = vrot.lane.b32.xlu0 %v1690_v55, %s1774_s26  ;;  %v932_v44 = vld [vmem:[%s1924_s24 + $0x38] sm:$0xff]  ;;  %v933_v54 = vld [vmem:[%s1924_s24 + $0x40] sm:$0xff] }
 0x128   : > { %v1694_v0 = vpop.eup %1693  ;;  %v977_v1 = vmul.f32 %v1692_v61, %v945_v51  ;;  %1719 = vrcp.f32 %v853_v56  ;;  %v762_v3 = vsub.f32 0.0, %v722_v58  ;;  %v662_v4 = vpop.f32.mrf.mxu0  ;;  %v948_v49 = vld [vmem:[%s1924_s24 + $0xb8] sm:$0xff]  ;;  %v949_v59 = vld [vmem:[%s1924_s24 + $0xc0] sm:$0xff] }
 0x129   : > { %v726_v5 = vpop.f32.mrf.mxu1  ;;  %v1696_v6 = vpop.eup %1695  ;;  %v1524_v7 = vpack.c.bf16 %v961_v62, %v961_v62  ;;  %v838_v9 = vadd.f32 1.0, %v1694_v0  ;;  %1721 = vpow2.f32 %v789_v53  ;;  %v791_v10 = vmul.f32 1.442695, %v746_v63 }
 0x12a   : > { %v1698_v11 = vpop.eup %1697  ;;  %v1540_v12 = vpack.c.bf16 %v977_v1, %v977_v1  ;;  %v854_v13 = vadd.f32 1.0, %v1696_v6  ;;  %1723 = vpow2.f32 %v821_v57  ;;  %v823_v14 = vmul.f32 1.442695, %v762_v3  ;;  %v664_v15 = vpop.f32.mrf.mxu0 }
 0x12b   : > { %v728_v16 = vpop.f32.mrf.mxu1  ;;  %v1700_v17 = vpop.eup %1699  ;;  %1122 = vst.msk [vmem:[%s1936_s29 + $0x10] sm:$0xf] %vm1117_vm1, %v1524_v7  ;;  %v962_v18 = vmul.f32 %v1698_v11, %v930_v2  ;;  %1725 = vrcp.f32 %v838_v9  ;;  %v663_v19 = vadd.f32 %v1902_v42, %v662_v4  ;;  %v727_v20 = vadd.f32 %v1902_v42, %v726_v5  ;;  %1192 = vrot.lane.b32.xlu1 %v1698_v11, %s1774_s26  ;;  %v934_v5 = vld [vmem:[%s1924_s24 + $0x48] sm:$0xff] }
 0x12c   : > { %1222 = vrot.lane.b32.xlu0 %v1692_v61, %s1774_s26  ;;  %v1702_v21 = vpop.eup %1701  ;;  %1138 = vst.msk [vmem:[%s1936_s29 + $0x50] sm:$0xf] %vm1117_vm1, %v1540_v12  ;;  %v978_v22 = vmul.f32 %v1700_v17, %v946_v8  ;;  %1727 = vrcp.f32 %v854_v13  ;;  %v665_v24 = vpop.f32.mrf.mxu0  ;;  %v950_v8 = vld [vmem:[%s1924_s24 + $0xc8] sm:$0xff] }
 0x12d   : > { %v729_v25 = vpop.f32.mrf.mxu1  ;;  %v1704_v26 = vpop.eup %1703  ;;  %v1525_v27 = vpack.c.bf16 %v962_v18, %v962_v18  ;;  %v839_v29 = vadd.f32 1.0, %v1702_v21  ;;  %1729 = vpow2.f32 %v791_v10  ;;  %v747_v30 = vsub.f32 0.0, %v663_v19 }
 0x12e   : > { %v1706_v31 = vpop.eup %1705  ;;  %v1541_v32 = vpack.c.bf16 %v978_v22, %v978_v22  ;;  %v855_v33 = vadd.f32 1.0, %v1704_v26  ;;  %1731 = vpow2.f32 %v823_v14  ;;  %v763_v34 = vsub.f32 0.0, %v727_v20  ;;  %v667_v35 = vpop.f32.mrf.mxu0  ;;  %v951_v20 = vld [vmem:[%s1924_s24 + $0xd0] sm:$0xff] }
 0x12f   : > { %v731_v36 = vpop.f32.mrf.mxu1  ;;  %v1708_v37 = vpop.eup %1707  ;;  %1123 = vst.msk [vmem:[%s1936_s29 + $0x14] sm:$0xf] %vm1117_vm1, %v1525_v27  ;;  %v963_v38 = vmul.f32 %v1706_v31, %v931_v23  ;;  %1733 = vrcp.f32 %v839_v29  ;;  %v793_v39 = vmul.f32 1.442695, %v747_v30  ;;  %v666_v40 = vadd.f32 %v1902_v42, %v665_v24  ;;  %1224 = vrot.lane.b32.xlu1 %v1700_v17, %s1774_s26  ;;  %v935_v17 = vld [vmem:[%s1924_s24 + $0x50] sm:$0xff]  ;;  %v936_v29 = vld [vmem:[%s1924_s24 + $0x58] sm:$0xff] }
 0x130   : > { %1194 = vrot.lane.b32.xlu0 %v1706_v31, %s1774_s26  ;;  %v1710_v41 = vpop.eup %1709  ;;  %1139 = vst.msk [vmem:[%s1936_s29 + $0x54] sm:$0xf] %vm1117_vm1, %v1541_v32  ;;  %v979_v43 = vmul.f32 %v1708_v37, %v947_v28  ;;  %1735 = vrcp.f32 %v855_v33  ;;  %v825_v45 = vmul.f32 1.442695, %v763_v34  ;;  %v730_v46 = vadd.f32 %v1902_v42, %v729_v25  ;;  %v952_v32 = vld [vmem:[%s1924_s24 + $0xd8] sm:$0xff] }
 0x131   : > { %v1712_v47 = vpop.eup %1711  ;;  %v1526_v48 = vpack.c.bf16 %v963_v38, %v963_v38  ;;  %v840_v50 = vadd.f32 1.0, %v1710_v41  ;;  %1737 = vpow2.f32 %v793_v39  ;;  %v748_v51 = vsub.f32 0.0, %v666_v40 }
 0x132   : > { %v1714_v52 = vpop.eup %1713  ;;  %v1542_v53 = vpack.c.bf16 %v979_v43, %v979_v43  ;;  %v856_v55 = vadd.f32 1.0, %v1712_v47  ;;  %1739 = vpow2.f32 %v825_v45  ;;  %v764_v56 = vsub.f32 0.0, %v730_v46  ;;  %v937_v46 = vld [vmem:[%s1924_s24 + $0x60] sm:$0xff] }
 0x133   : > { %v1716_v57 = vpop.eup %1715  ;;  %1124 = vst.msk [vmem:[%s1936_s29 + $0x18] sm:$0xf] %vm1117_vm1, %v1526_v48  ;;  %v964_v58 = vmul.f32 %v1714_v52, %v932_v44  ;;  %1741 = vrcp.f32 %v840_v50  ;;  %v795_v42 = vmul.f32 1.442695, %v748_v51  ;;  %1196 = vrot.lane.b32.xlu1 %v1714_v52, %s1774_s26  ;;  %v953_v48 = vld [vmem:[%s1924_s24 + $0xe0] sm:$0xff] }
 0x134   : > { %1226 = vrot.lane.b32.xlu0 %v1708_v37, %s1774_s26  ;;  %v1718_v60 = vpop.eup %1717  ;;  %1140 = vst.msk [vmem:[%s1936_s29 + $0x58] sm:$0xf] %vm1117_vm1, %v1542_v53  ;;  %v980_v61 = vmul.f32 %v1716_v57, %v948_v49  ;;  %1743 = vrcp.f32 %v856_v55  ;;  %v827_v62 = vmul.f32 1.442695, %v764_v56  ;;  %v938_v53 = vld [vmem:[%s1924_s24 + $0x68] sm:$0xff] }
 0x135   : > { %v1720_v63 = vpop.eup %1719  ;;  %v1527_v0 = vpack.c.bf16 %v964_v58, %v964_v58  ;;  %v965_v1 = vmul.f32 %v1718_v60, %v933_v54  ;;  %1745 = vpow2.f32 %v795_v42  ;;  %v954_v55 = vld [vmem:[%s1924_s24 + $0xe8] sm:$0xff] }
 0x136   : > { %v1722_v2 = vpop.eup %1721  ;;  %v1543_v3 = vpack.c.bf16 %v980_v61, %v980_v61  ;;  %v981_v4 = vmul.f32 %v1720_v63, %v949_v59  ;;  %1747 = vpow2.f32 %v827_v62  ;;  %v955_v62 = vld [vmem:[%s1924_s24 + $0xf0] sm:$0xff] }
 0x137   : > { %v1724_v6 = vpop.eup %1723  ;;  %1125 = vst.msk [vmem:[%s1936_s29 + $0x1c] sm:$0xf] %vm1117_vm1, %v1527_v0  ;;  %v1528_v7 = vpack.c.bf16 %v965_v1, %v965_v1  ;;  %v841_v9 = vadd.f32 1.0, %v1722_v2  ;;  %1228 = vrot.lane.b32.xlu1 %v1716_v57, %s1774_s26 }
 0x138   : > { %1198 = vrot.lane.b32.xlu0 %v1718_v60, %s1774_s26  ;;  %v1726_v10 = vpop.eup %1725  ;;  %1141 = vst.msk [vmem:[%s1936_s29 + $0x5c] sm:$0xf] %vm1117_vm1, %v1543_v3  ;;  %v1544_v11 = vpack.c.bf16 %v981_v4, %v981_v4  ;;  %v857_v12 = vadd.f32 1.0, %v1724_v6  ;;  %v939_v60 = vld [vmem:[%s1924_s24 + $0x70] sm:$0xff]  ;;  %v940_v4 = vld [vmem:[%s1924_s24 + $0x78] sm:$0xff] }
 0x139   : > { %v1728_v13 = vpop.eup %1727  ;;  %1126 = vst.msk [vmem:[%s1936_s29 + $0x20] sm:$0xf] %vm1117_vm1, %v1528_v7  ;;  %v966_v14 = vmul.f32 %v1726_v10, %v934_v5  ;;  %1749 = vrcp.f32 %v841_v9  ;;  %v956_v6 = vld [vmem:[%s1924_s24 + $0xf8] sm:$0xff] }
 0x13a   : > { %v1730_v15 = vpop.eup %1729  ;;  %1142 = vst.msk [vmem:[%s1936_s29 + $0x60] sm:$0xf] %vm1117_vm1, %v1544_v11  ;;  %v982_v16 = vmul.f32 %v1728_v13, %v950_v8  ;;  %1751 = vrcp.f32 %v857_v12 }
 0x13b   : > { %v1732_v18 = vpop.eup %1731  ;;  %v1529_v19 = vpack.c.bf16 %v966_v14, %v966_v14  ;;  %v842_v21 = vadd.f32 1.0, %v1730_v15  ;;  %1200 = vrot.lane.b32.xlu1 %v1726_v10, %s1774_s26 }
 0x13c   : > { %1230 = vrot.lane.b32.xlu0 %v1720_v63, %s1774_s26  ;;  %v1734_v22 = vpop.eup %1733  ;;  %v1545_v23 = vpack.c.bf16 %v982_v16, %v982_v16  ;;  %v858_v24 = vadd.f32 1.0, %v1732_v18 }
 0x13d   : > { %v1736_v25 = vpop.eup %1735  ;;  %1127 = vst.msk [vmem:[%s1936_s29 + $0x24] sm:$0xf] %vm1117_vm1, %v1529_v19  ;;  %v967_v26 = vmul.f32 %v1734_v22, %v935_v17  ;;  %1753 = vrcp.f32 %v842_v21 }
 0x13e   : > { %v1738_v27 = vpop.eup %1737  ;;  %1143 = vst.msk [vmem:[%s1936_s29 + $0x64] sm:$0xf] %vm1117_vm1, %v1545_v23  ;;  %v983_v28 = vmul.f32 %v1736_v25, %v951_v20  ;;  %1755 = vrcp.f32 %v858_v24 }
 0x13f   : > { %v1740_v30 = vpop.eup %1739  ;;  %v1530_v31 = vpack.c.bf16 %v967_v26, %v967_v26  ;;  %v843_v33 = vadd.f32 1.0, %v1738_v27  ;;  %1232 = vrot.lane.b32.xlu1 %v1728_v13, %s1774_s26 }
 0x140   : > { %1202 = vrot.lane.b32.xlu0 %v1734_v22, %s1774_s26  ;;  %v1742_v34 = vpop.eup %1741  ;;  %v1546_v35 = vpack.c.bf16 %v983_v28, %v983_v28  ;;  %v859_v36 = vadd.f32 1.0, %v1740_v30 }
 0x141   : > { %v1744_v37 = vpop.eup %1743  ;;  %1128 = vst.msk [vmem:[%s1936_s29 + $0x28] sm:$0xf] %vm1117_vm1, %v1530_v31  ;;  %v968_v38 = vmul.f32 %v1742_v34, %v936_v29  ;;  %1757 = vrcp.f32 %v843_v33 }
 0x142   : > { %v1746_v39 = vpop.eup %1745  ;;  %1144 = vst.msk [vmem:[%s1936_s29 + $0x68] sm:$0xf] %vm1117_vm1, %v1546_v35  ;;  %v984_v40 = vmul.f32 %v1744_v37, %v952_v32  ;;  %1759 = vrcp.f32 %v859_v36 }
 0x143   : > { %v1748_v41 = vpop.eup %1747  ;;  %v1531_v43 = vpack.c.bf16 %v968_v38, %v968_v38  ;;  %v844_v44 = vadd.f32 1.0, %v1746_v39  ;;  %1204 = vrot.lane.b32.xlu1 %v1742_v34, %s1774_s26 }
 0x144   : > { %1234 = vrot.lane.b32.xlu0 %v1736_v25, %s1774_s26  ;;  %v1547_v45 = vpack.c.bf16 %v984_v40, %v984_v40  ;;  %v860_v47 = vadd.f32 1.0, %v1748_v41 }
 0x145   : > { %1129 = vst.msk [vmem:[%s1936_s29 + $0x2c] sm:$0xf] %vm1117_vm1, %v1531_v43  ;;  %1761 = vrcp.f32 %v844_v44 }
 0x146   : > { %v1750_v49 = vpop.eup %1749  ;;  %1145 = vst.msk [vmem:[%s1936_s29 + $0x6c] sm:$0xf] %vm1117_vm1, %v1547_v45  ;;  %1763 = vrcp.f32 %v860_v47 }
 0x147   : > { %v1752_v50 = vpop.eup %1751  ;;  %v969_v51 = vmul.f32 %v1750_v49, %v937_v46  ;;  %1236 = vrot.lane.b32.xlu1 %v1744_v37, %s1774_s26 }
 0x148   : > { %1206 = vrot.lane.b32.xlu0 %v1750_v49, %s1774_s26  ;;  %v985_v52 = vmul.f32 %v1752_v50, %v953_v48 }
 0x149   : > { %v1532_v54 = vpack.c.bf16 %v969_v51, %v969_v51 }
 0x14a   : > { %v1754_v56 = vpop.eup %1753  ;;  %v1548_v57 = vpack.c.bf16 %v985_v52, %v985_v52 }
 0x14b   : > { %v1756_v58 = vpop.eup %1755  ;;  %1130 = vst.msk [vmem:[%s1936_s29 + $0x30] sm:$0xf] %vm1117_vm1, %v1532_v54  ;;  %v970_v59 = vmul.f32 %v1754_v56, %v938_v53  ;;  %1208 = vrot.lane.b32.xlu1 %v1754_v56, %s1774_s26 }
 0x14c   : > { %1238 = vrot.lane.b32.xlu0 %v1752_v50, %s1774_s26  ;;  %1146 = vst.msk [vmem:[%s1936_s29 + $0x70] sm:$0xf] %vm1117_vm1, %v1548_v57  ;;  %v986_v42 = vmul.f32 %v1756_v58, %v954_v55 }
 0x14d   : > { %v1533_v61 = vpack.c.bf16 %v970_v59, %v970_v59 }
 0x14e   : > { %v1758_v63 = vpop.eup %1757  ;;  %v1549_v0 = vpack.c.bf16 %v986_v42, %v986_v42 }
 0x14f   : > { %v1760_v1 = vpop.eup %1759  ;;  %1131 = vst.msk [vmem:[%s1936_s29 + $0x34] sm:$0xf] %vm1117_vm1, %v1533_v61  ;;  %v971_v2 = vmul.f32 %v1758_v63, %v939_v60  ;;  %1240 = vrot.lane.b32.xlu1 %v1756_v58, %s1774_s26 }
 0x150   : > { %1210 = vrot.lane.b32.xlu0 %v1758_v63, %s1774_s26  ;;  %1147 = vst.msk [vmem:[%s1936_s29 + $0x74] sm:$0xf] %vm1117_vm1, %v1549_v0  ;;  %v987_v3 = vmul.f32 %v1760_v1, %v955_v62 }
 0x151   : > { %v1534_v5 = vpack.c.bf16 %v971_v2, %v971_v2 }
 0x152   : > { %v1762_v7 = vpop.eup %1761  ;;  %v1550_v8 = vpack.c.bf16 %v987_v3, %v987_v3 }
 0x153   : > { %v1764_v9 = vpop.eup %1763  ;;  %1132 = vst.msk [vmem:[%s1936_s29 + $0x38] sm:$0xf] %vm1117_vm1, %v1534_v5  ;;  %v972_v10 = vmul.f32 %v1762_v7, %v940_v4  ;;  %1212 = vrot.lane.b32.xlu1 %v1762_v7, %s1774_s26 }
 0x154   : > { %1242 = vrot.lane.b32.xlu0 %v1760_v1, %s1774_s26  ;;  %1148 = vst.msk [vmem:[%s1936_s29 + $0x78] sm:$0xf] %vm1117_vm1, %v1550_v8  ;;  %v988_v11 = vmul.f32 %v1764_v9, %v956_v6 }
 0x155   : > { %v1535_v12 = vpack.c.bf16 %v972_v10, %v972_v10 }
 0x156   : > { %v1551_v13 = vpack.c.bf16 %v988_v11, %v988_v11 }
 0x157   : > { %1133 = vst.msk [vmem:[%s1936_s29 + $0x3c] sm:$0xf] %vm1117_vm1, %v1535_v12  ;;  %1244 = vrot.lane.b32.xlu1 %v1764_v9, %s1774_s26 }
 0x158   : > { %1149 = vst.msk [vmem:[%s1936_s29 + $0x7c] sm:$0xf] %vm1117_vm1, %v1551_v13 }
 0x187   : > { %v1183_v14 = vpop.permute.xlu0 %1182 }
 0x188   : > { %1279 = vst.msk [vmem:[%s2080_s7] sm:$0xff] %vm1278_vm2, %v1183_v14 }
 0x18b   : > { %v1215_v15 = vpop.permute.xlu0 %1214 }
 0x18c   : > { %v1217_v16 = vpop.permute.xlu1 %1216  ;;  %1295 = vst.msk [vmem:[%s2080_s7 + $0x80] sm:$0xff] %vm1278_vm2, %v1215_v15 }
 0x18d   : > { %1296 = vst.msk [vmem:[%s2080_s7 + $0x88] sm:$0xff] %vm1278_vm2, %v1217_v16 }
 0x18f   : > { %v1185_v17 = vpop.permute.xlu0 %1184 }
 0x190   : > { %v1187_v18 = vpop.permute.xlu1 %1186  ;;  %1280 = vst.msk [vmem:[%s2080_s7 + $0x8] sm:$0xff] %vm1278_vm2, %v1185_v17 }
 0x191   : > { %1281 = vst.msk [vmem:[%s2080_s7 + $0x10] sm:$0xff] %vm1278_vm2, %v1187_v18 }
 0x193   : > { %v1219_v19 = vpop.permute.xlu0 %1218 }
 0x194   : > { %v1189_v20 = vpop.permute.xlu1 %1188  ;;  %1297 = vst.msk [vmem:[%s2080_s7 + $0x90] sm:$0xff] %vm1278_vm2, %v1219_v19 }
 0x195   : > { %1282 = vst.msk [vmem:[%s2080_s7 + $0x18] sm:$0xff] %vm1278_vm2, %v1189_v20 }
 0x198   : > { %v1221_v21 = vpop.permute.xlu1 %1220 }
 0x199   : > { %1298 = vst.msk [vmem:[%s2080_s7 + $0x98] sm:$0xff] %vm1278_vm2, %v1221_v21  ;;  %v1191_v22 = vpop.permute.xlu0 %1190 }
 0x19a   : > { %1283 = vst.msk [vmem:[%s2080_s7 + $0x20] sm:$0xff] %vm1278_vm2, %v1191_v22 }
 0x19d   : > { %v1193_v23 = vpop.permute.xlu1 %1192 }
 0x19e   : > { %v1223_v24 = vpop.permute.xlu0 %1222  ;;  %1284 = vst.msk [vmem:[%s2080_s7 + $0x28] sm:$0xff] %vm1278_vm2, %v1193_v23 }
 0x19f   : > { %1299 = vst.msk [vmem:[%s2080_s7 + $0xa0] sm:$0xff] %vm1278_vm2, %v1223_v24 }
 0x1a1   : > { %v1225_v25 = vpop.permute.xlu1 %1224 }
 0x1a2   : > { %v1195_v26 = vpop.permute.xlu0 %1194  ;;  %1300 = vst.msk [vmem:[%s2080_s7 + $0xa8] sm:$0xff] %vm1278_vm2, %v1225_v25 }
 0x1a3   : > { %1285 = vst.msk [vmem:[%s2080_s7 + $0x30] sm:$0xff] %vm1278_vm2, %v1195_v26 }
 0x1a5   : > { %v1197_v27 = vpop.permute.xlu1 %1196 }
 0x1a6   : > { %v1227_v28 = vpop.permute.xlu0 %1226  ;;  %1286 = vst.msk [vmem:[%s2080_s7 + $0x38] sm:$0xff] %vm1278_vm2, %v1197_v27 }
 0x1a7   : > { %1301 = vst.msk [vmem:[%s2080_s7 + $0xb0] sm:$0xff] %vm1278_vm2, %v1227_v28 }
 0x1a9   : > { %v1229_v29 = vpop.permute.xlu1 %1228 }
 0x1aa   : > { %v1199_v30 = vpop.permute.xlu0 %1198  ;;  %1302 = vst.msk [vmem:[%s2080_s7 + $0xb8] sm:$0xff] %vm1278_vm2, %v1229_v29 }
 0x1ab   : > { %1287 = vst.msk [vmem:[%s2080_s7 + $0x40] sm:$0xff] %vm1278_vm2, %v1199_v30 }
 0x1ad   : > { %v1201_v31 = vpop.permute.xlu1 %1200 }
 0x1ae   : > { %v1231_v32 = vpop.permute.xlu0 %1230  ;;  %1288 = vst.msk [vmem:[%s2080_s7 + $0x48] sm:$0xff] %vm1278_vm2, %v1201_v31 }
 0x1af   : > { %1303 = vst.msk [vmem:[%s2080_s7 + $0xc0] sm:$0xff] %vm1278_vm2, %v1231_v32 }
 0x1b1   : > { %v1233_v33 = vpop.permute.xlu1 %1232 }
 0x1b2   : > { %v1203_v34 = vpop.permute.xlu0 %1202  ;;  %1304 = vst.msk [vmem:[%s2080_s7 + $0xc8] sm:$0xff] %vm1278_vm2, %v1233_v33 }
 0x1b3   : > { %1289 = vst.msk [vmem:[%s2080_s7 + $0x50] sm:$0xff] %vm1278_vm2, %v1203_v34 }
 0x1b5   : > { %v1205_v35 = vpop.permute.xlu1 %1204 }
 0x1b6   : > { %v1235_v36 = vpop.permute.xlu0 %1234  ;;  %1290 = vst.msk [vmem:[%s2080_s7 + $0x58] sm:$0xff] %vm1278_vm2, %v1205_v35 }
 0x1b7   : > { %1305 = vst.msk [vmem:[%s2080_s7 + $0xd0] sm:$0xff] %vm1278_vm2, %v1235_v36 }
 0x1b9   : > { %v1237_v37 = vpop.permute.xlu1 %1236 }
 0x1ba   : > { %v1207_v38 = vpop.permute.xlu0 %1206  ;;  %1306 = vst.msk [vmem:[%s2080_s7 + $0xd8] sm:$0xff] %vm1278_vm2, %v1237_v37 }
 0x1bb   : > { %1291 = vst.msk [vmem:[%s2080_s7 + $0x60] sm:$0xff] %vm1278_vm2, %v1207_v38 }
 0x1bd   : > { %v1209_v39 = vpop.permute.xlu1 %1208 }
 0x1be   : > { %v1239_v40 = vpop.permute.xlu0 %1238  ;;  %1292 = vst.msk [vmem:[%s2080_s7 + $0x68] sm:$0xff] %vm1278_vm2, %v1209_v39 }
 0x1bf   : > { %1307 = vst.msk [vmem:[%s2080_s7 + $0xe0] sm:$0xff] %vm1278_vm2, %v1239_v40 }
 0x1c1   : > { %v1241_v41 = vpop.permute.xlu1 %1240 }
 0x1c2   : > { %v1211_v43 = vpop.permute.xlu0 %1210  ;;  %1308 = vst.msk [vmem:[%s2080_s7 + $0xe8] sm:$0xff] %vm1278_vm2, %v1241_v41 }
 0x1c3   : > { %1293 = vst.msk [vmem:[%s2080_s7 + $0x70] sm:$0xff] %vm1278_vm2, %v1211_v43 }
 0x1c5   : > { %v1213_v44 = vpop.permute.xlu1 %1212 }
 0x1c6   : > { %v1243_v45 = vpop.permute.xlu0 %1242  ;;  %1294 = vst.msk [vmem:[%s2080_s7 + $0x78] sm:$0xff] %vm1278_vm2, %v1213_v44 }
 0x1c7   : > { %1309 = vst.msk [vmem:[%s2080_s7 + $0xf0] sm:$0xff] %vm1278_vm2, %v1243_v45 }
 0x1c9   : > { %v1245_v46 = vpop.permute.xlu1 %1244 }
 0x1ca   : > { %1310 = vst.msk [vmem:[%s2080_s7 + $0xf8] sm:$0xff] %vm1278_vm2, %v1245_v46 }
 0x1cb PF: > { %s16_s18 = sadd.s32 1, %s1771_s18  }
 0x1cc   : > { %p13_p4 = scmp.ge.s32.totalorder %s16_s18, 4  }
 0x1ce   :  { %15 = sbr.rel (!%p13_p4) target bundleno = 1 (0x1), region = 81 }

// kernel: _forward_impl.31
= control target key start
LH: loop header
LB: loop body
LE: loop exit
PB: predicated region body
PF: predicated region fallthrough
CT: control target
= control target key end

     0   :  { %s2253_s30 = smov 0   ;;  %s2943_s0 = inlined_call_operand.vmem [shape: bf16[512,144], index: 0, kind: input, shape index: {}]   ;;  %s2944_s1 = inlined_call_operand.vmem [shape: bf16[512,72], index: 1, kind: input, shape index: {}]   ;;  %s2945_s2 = inlined_call_operand.vmem [shape: f32[512,8], index: 2, kind: input, shape index: {}, may-alias: {2,4,5}]   ;;  %s2946_s3 = inlined_call_operand.vmem [shape: f32[512,8], index: 3, kind: input, shape index: {}]   ;;  %s2947_s4 = inlined_call_operand.vmem [shape: f32[512,8], index: 4, kind: input, shape index: {}, may-alias: {2,4,5}]   ;;  %s2948_s5 = inlined_call_operand.vmem [shape: f32[512,8], index: 5, kind: input, shape index: {}, may-alias: {2,4,5}]   ;;  %s2949_s6 = inlined_call_operand.vmem [shape: bf16[144,128], index: 6, kind: input, shape index: {}]   ;;  %s2950_s7 = inlined_call_operand.vmem [shape: bf16[72,128], index: 7, kind: input, shape index: {}]   ;;  %s2951_s8 = inlined_call_operand.vmem [shape: f32[1,128], index: 8, kind: input, shape index: {}]   ;;  %s2952_s9 = inlined_call_operand.vmem [shape: f32[512,8], index: 9, kind: output, shape index: {}]  }
   0x1 LB: > { %s1842_s10 = sadd.s32 4294967295, %s2200_s30   ;;  %p1846_p0 = scmp.ge.s32.totalorder %s2200_s30, 1  ;;  %s2200_s30 = sphi %s2253_s30, %s19_s30  }
   0x2   : > { %p344_p1 = scmp.lt.s32.totalorder %s2200_s30, 3 }
   0x4   : > { %p345_p2 = pnand %p1846_p0, %p344_p1 }
   0x5   : > { %s1847_s15 = sshll.u32 (!%p345_p2), %s1842_s10, 5 }
   0x6   : > { %348 = sbr.rel (%p345_p2) target bundleno = 354 (0x162), region = 56  ;;  %p407_p3 = scmp.lt.s32.totalorder (!%p345_p2), %s1847_s15, 63 }
   0xb   : > { %v2051_v0 = vld [vmem:[%s2950_s7 + $0x20] ss:$0 sps:$4 sm:$0xff]   ;;  %vm697_vm0 = vcmask 1043456   ;;  %v2202_v1 = vmov 0   ;;  %v2052_v2 = vld [vmem:[%s2949_s6 + $0x38] sm:$0xff]   ;;  %v2054_v5 = vld [vmem:[%s2949_s6 + $0x30] sm:$0xff]  }
   0xc   : > { %2023 = vmatprep.subr.bf16.mxu1 %v2202_v1  ;;  %2041 = vmatprep.subr.msk.bf16.mxu0 %vm697_vm0, %v2051_v0  ;;  %v699_v3 = vsel %vm697_vm0, %v2051_v0, 0  ;;  %v2053_v4 = vld [vmem:[%s2950_s7 + $0x18] sm:$0xff]   ;;  %v2055_v6 = vld [vmem:[%s2950_s7 + $0x10] sm:$0xff]   ;;  %s2958_s15 = smov (!%p407_p3, %s1847_s15), 63  ;;  %v2056_v7 = vld [vmem:[%s2949_s6 + $0x28] sm:$0xff]   ;;  %vm648_vm1 = vcmask 588800  }
   0xd   : > { %2032 = vmatpush1.bf16.msra.mxu1 %v2052_v2  ;;  %1982 = vmatpush3.bf16.msra.mxu0 %v699_v3  ;;  %v2057_v8 = vld [vmem:[%s2950_s7 + $0x8] sm:$0xff]   ;;  %s1851_s26 = sshll.u32 %s2958_s15, 2  ;;  %v2058_v10 = vld [vmem:[%s2949_s6 + $0x20] sm:$0xff]   ;;  %s2298_s14 = sshll.u32 %s2958_s15, 3  ;;  %v2060_v12 = vld [vmem:[%s2949_s6 + $0x18] sm:$0xff]   ;;  %vm1060_vm2 = vcmask 130048  }
   0xe   : > { %2024 = vmatprep.subr.bf16.mxu1 %v2202_v1  ;;  %1983 = vmatprep.subr.bf16.mxu0 %v2053_v4  ;;  %s2288_s29 = scalar_lea.vmem %s2944_s1, %s1851_s26  ;;  %v2059_v11 = vld [vmem:[%s2950_s7] sm:$0xff]   ;;  %s2309_s20 = scalar_lea.vmem %s2943_s0, %s2298_s14  ;;  %v2063_v14 = vld [vmem:[%s2949_s6 + $0x10] sm:$0xff]   ;;  %v2064_v17 = vld [vmem:[%s2949_s6 + $0x8] sm:$0xff]   ;;  %vm1693_vm3 = vcmask 64512  }
   0xf   : > { %v2061_v9 = vld [vmem:[%s2288_s29] sm:$0xff]   ;;  %v2062_v13 = vld [vmem:[%s2288_s29 + $0x8] sm:$0xff]   ;;  %v2071_v15 = vld [vmem:[%s2309_s20 + $0x54] ss:$8 sps:$4 sm:$0xff]   ;;  %s2430_s10 = scalar_lea.vmem %s2947_s4, %s2298_s14  ;;  %s2446_s17 = scalar_lea.vmem %s2948_s5, %s2298_s14 }
  0x10   : > { %1991 = vmatprep.mubr.msk.bf16.mxu0 %vm648_vm1, %v2061_v9  ;;  %v2065_v16 = vld [vmem:[%s2288_s29 + $0x10] sm:$0xff]   ;;  %1945 = vmatprep.mubr.msk.bf16.mxu1 %vm1060_vm2, %v2071_v15  ;;  %v2066_v18 = vld [vmem:[%s2288_s29 + $0x18] sm:$0xff]   ;;  %v2067_v19 = vld [vmem:[%s2949_s6] sm:$0xff]   ;;  %s2472_s22 = scalar_lea.vmem %s2945_s2, %s2298_s14  ;;  %s2493_s25 = scalar_lea.vmem %s2952_s9, %s2298_s14 }
  0x11   : > { %2033 = vmatpush1.bf16.msra.mxu1 %v2054_v5  ;;  %1984 = vmatpush3.bf16.msra.mxu0 %v2053_v4  ;;  %v2072_v20 = vld [vmem:[%s2288_s29 + $0x20] sm:$0xff]   ;;  %v2069_v22 = vld [vmem:[%s2309_s20 + $0x50] ss:$8 sps:$4 sm:$0xff]   ;;  %v2073_v23 = vld [vmem:[%s2288_s29 + $0x28] sm:$0xff]  }
  0x12   : > { %2025 = vmatprep.subr.bf16.mxu1 %v2202_v1  ;;  %1985 = vmatprep.subr.bf16.mxu0 %v2055_v6  ;;  %v2068_v21 = vld [vmem:[%s2949_s6 + $0x40] sm:$0xff]   ;;  %v2076_v25 = vld [vmem:[%s2288_s29 + $0x30] sm:$0xff]   ;;  %v2078_v27 = vld [vmem:[%s2288_s29 + $0x38] sm:$0xff]  }
  0x13   : > { %v2074_v24 = vld [vmem:[%s2309_s20 + $0x64] ss:$8 sps:$4 sm:$0xff]   ;;  %v2077_v26 = vld [vmem:[%s2309_s20 + $0x60] ss:$8 sps:$4 sm:$0xff]   ;;  %v2079_v28 = vld [vmem:[%s2309_s20 + $0x74] ss:$8 sps:$4 sm:$0xff]  }
  0x14   : > { %v2081_v29 = vld [vmem:[%s2288_s29 + $0x40] sm:$0xff]   ;;  %v2082_v30 = vld [vmem:[%s2309_s20 + $0x70] ss:$8 sps:$4 sm:$0xff]   ;;  %v2083_v31 = vld [vmem:[%s2288_s29 + $0x48] sm:$0xff]  }
  0x15   : > { %2034 = vmatpush1.bf16.msra.mxu1 %v2056_v7  ;;  %1986 = vmatpush3.bf16.msra.mxu0 %v2055_v6  ;;  %v2084_v32 = vld [vmem:[%s2309_s20 + $0x84] ss:$8 sps:$4 sm:$0xff]   ;;  %v2086_v33 = vld [vmem:[%s2288_s29 + $0x50] sm:$0xff]   ;;  %v2087_v34 = vld [vmem:[%s2309_s20 + $0x80] ss:$8 sps:$4 sm:$0xff]  }
  0x16   : > { %2026 = vmatprep.subr.bf16.mxu1 %v2202_v1  ;;  %1987 = vmatprep.subr.bf16.mxu0 %v2057_v8  ;;  %v2088_v35 = vld [vmem:[%s2288_s29 + $0x58] sm:$0xff]   ;;  %v2091_v37 = vld [vmem:[%s2288_s29 + $0x60] sm:$0xff]   ;;  %v2093_v39 = vld [vmem:[%s2288_s29 + $0x68] sm:$0xff]  }
  0x17   : > { %v2089_v36 = vld [vmem:[%s2309_s20 + $0x94] ss:$8 sps:$4 sm:$0xff]   ;;  %v2092_v38 = vld [vmem:[%s2309_s20 + $0x90] ss:$8 sps:$4 sm:$0xff]   ;;  %v2094_v40 = vld [vmem:[%s2309_s20 + $0xa4] ss:$8 sps:$4 sm:$0xff]  }
  0x18   : > { %v2096_v41 = vld [vmem:[%s2288_s29 + $0x70] sm:$0xff]   ;;  %v2097_v42 = vld [vmem:[%s2309_s20 + $0xa0] ss:$8 sps:$4 sm:$0xff]   ;;  %v2098_v43 = vld [vmem:[%s2288_s29 + $0x78] sm:$0xff]  }
  0x19   : > { %2035 = vmatpush1.bf16.msra.mxu1 %v2058_v10  ;;  %1988 = vmatpush3.bf16.msra.mxu0 %v2057_v8  ;;  %v2099_v44 = vld [vmem:[%s2309_s20 + $0xb4] ss:$8 sps:$4 sm:$0xff]   ;;  %v2103_v45 = vld [vmem:[%s2309_s20 + $0x4] ss:$8 sps:$4 sm:$0xff]   ;;  %v2101_v46 = vld [vmem:[%s2309_s20] ss:$8 sps:$4 sm:$0xff]  }
  0x1a   : > { %2027 = vmatprep.subr.bf16.mxu1 %v2202_v1  ;;  %1989 = vmatprep.subr.bf16.mxu0 %v2059_v11  ;;  %v2104_v47 = vld [vmem:[%s2309_s20 + $0xb0] ss:$8 sps:$4 sm:$0xff]   ;;  %v2105_v48 = vld [vmem:[%s2309_s20 + $0xc4] ss:$8 sps:$4 sm:$0xff]   ;;  %v2107_v49 = vld [vmem:[%s2309_s20 + $0x14] ss:$8 sps:$4 sm:$0xff]  }
  0x1b   : > { %v2109_v50 = vld [vmem:[%s2309_s20 + $0xc0] ss:$8 sps:$4 sm:$0xff]   ;;  %v2110_v51 = vld [vmem:[%s2309_s20 + $0x10] ss:$8 sps:$4 sm:$0xff]   ;;  %v2111_v52 = vld [vmem:[%s2309_s20 + $0xd4] ss:$8 sps:$4 sm:$0xff]  }
  0x1c   : > { %v2113_v53 = vld [vmem:[%s2309_s20 + $0x24] ss:$8 sps:$4 sm:$0xff]   ;;  %v2115_v54 = vld [vmem:[%s2309_s20 + $0xd0] ss:$8 sps:$4 sm:$0xff]   ;;  %v2116_v55 = vld [vmem:[%s2309_s20 + $0x20] ss:$8 sps:$4 sm:$0xff]  }
  0x1d   : > { %2036 = vmatpush1.bf16.msra.mxu1 %v2060_v12  ;;  %1990 = vmatpush3.bf16.msra.mxu0 %v2059_v11  ;;  %v2117_v56 = vld [vmem:[%s2309_s20 + $0xe4] ss:$8 sps:$4 sm:$0xff]   ;;  %v2119_v57 = vld [vmem:[%s2309_s20 + $0x34] ss:$8 sps:$4 sm:$0xff]   ;;  %v2121_v58 = vld [vmem:[%s2309_s20 + $0xe0] ss:$8 sps:$4 sm:$0xff]  }
  0x1e   : > { %2028 = vmatprep.subr.bf16.mxu1 %v2202_v1  ;;  %1109 = vmatprep.subr.bf16.mxu0 %v2202_v1  ;;  %v2122_v59 = vld [vmem:[%s2309_s20 + $0x30] ss:$8 sps:$4 sm:$0xff]   ;;  %v2123_v60 = vld [vmem:[%s2309_s20 + $0xf4] ss:$8 sps:$4 sm:$0xff]   ;;  %v2125_v61 = vld [vmem:[%s2309_s20 + $0x44] ss:$8 sps:$4 sm:$0xff]  }
  0x1f   : > { %v2127_v62 = vld [vmem:[%s2309_s20 + $0xf0] ss:$8 sps:$4 sm:$0xff]   ;;  %v2128_v63 = vld [vmem:[%s2309_s20 + $0x40] ss:$8 sps:$4 sm:$0xff]   ;;  %s2463_s20 = scalar_lea.vmem %s2946_s3, %s2298_s14 }
  0x20   : > { %1992 = vmatmul.mubr.msk.bf16.vlgmr.msra.gmra.mxu0 %vm648_vm1, %v2062_v13  ;;  %v1319_v8 = vld [vmem:[%s2430_s10 + $0x50] sm:$0xff]  ;;  %v2440_v11 = vld [vmem:[%s2951_s8] ss:$0 sm:$0xff] }
  0x21   : > { %2037 = vmatpush1.bf16.msra.mxu1 %v2063_v14  ;;  %1110 = vmatpush1.bf16.msra.mxu0 %v2052_v2  ;;  %v1351_v13 = vadd.f32 1.0, %v1319_v8 }
  0x22   : > { %2029 = vmatprep.subr.bf16.mxu1 %v2202_v1  ;;  %1995 = vmatprep.mubr.msk.bf16.mxu0 %vm648_vm1, %v2065_v16  ;;  %v1320_v16 = vld [vmem:[%s2430_s10 + $0x58] sm:$0xff] }
  0x23   : > { %1111 = vmatprep.subr.bf16.mxu0 %v2202_v1 }
  0x25   : > { %2038 = vmatpush1.bf16.msra.mxu1 %v2064_v17  ;;  %1112 = vmatpush1.bf16.msra.mxu0 %v2054_v5 }
  0x26   : > { %2030 = vmatprep.subr.bf16.mxu1 %v2202_v1  ;;  %1113 = vmatprep.subr.bf16.mxu0 %v2202_v1 }
  0x28   : > { %1996 = vmatmul.mubr.msk.bf16.gmra.mxu0 %vm648_vm1, %v2066_v18  ;;  %v1415_v18 = vld [vmem:[%s2446_s17 + $0x50] sm:$0xff] }
  0x29   : > { %2039 = vmatpush1.bf16.msra.mxu1 %v2067_v19  ;;  %1999 = vmatprep.mubr.msk.bf16.mxu0 %vm648_vm1, %v2072_v20 }
  0x2a   : > { %2031 = vmatprep.subr.bf16.mxu1 %v2202_v1  ;;  %1114 = vmatpush1.bf16.msra.mxu0 %v2056_v7 }
  0x2b   : > { %1115 = vmatprep.subr.bf16.mxu0 %v2202_v1 }
  0x2d   : > { %2040 = vmatpush2.bf16.msra.mxu1 %v2068_v21 }
  0x2e   : > { %1116 = vmatpush1.bf16.msra.mxu0 %v2058_v10 }
  0x2f   : > { %1117 = vmatprep.subr.bf16.mxu0 %v2202_v1 }
  0x30   : > { %1182 = vmatmul.mubr.bf16.vlgmr.msra.gmra.mxu1 %v2069_v22  ;;  %2000 = vmatmul.mubr.msk.bf16.gmra.mxu0 %vm648_vm1, %v2073_v23  ;;  %v1352_v23 = vadd.f32 1.0, %v1320_v16  ;;  %v1608_v16 = vld [vmem:[%s2472_s22 + $0x58] sm:$0xff] }
  0x31   : > { %1946 = vmatprep.mubr.msk.bf16.mxu1 %vm1060_vm2, %v2074_v24  ;;  %2003 = vmatprep.mubr.msk.bf16.mxu0 %vm648_vm1, %v2076_v25 }
  0x32   : > { %1118 = vmatpush1.bf16.msra.mxu0 %v2060_v12 }
  0x33   : > { %1119 = vmatprep.subr.bf16.mxu0 %v2202_v1 }
  0x36   : > { %1120 = vmatpush1.bf16.msra.mxu0 %v2063_v14 }
  0x37   : > { %1121 = vmatprep.subr.bf16.mxu0 %v2202_v1 }
  0x38   : > { %1190 = vmatmul.mubr.bf16.gmra.mxu1 %v2077_v26  ;;  %2004 = vmatmul.mubr.msk.bf16.gmra.mxu0 %vm648_vm1, %v2078_v27 }
  0x39   : > { %1947 = vmatprep.mubr.msk.bf16.mxu1 %vm1060_vm2, %v2079_v28  ;;  %2007 = vmatprep.mubr.msk.bf16.mxu0 %vm648_vm1, %v2081_v29  ;;  %v1416_v28 = vld [vmem:[%s2446_s17 + $0x58] sm:$0xff] }
  0x3a   : > { %1122 = vmatpush1.bf16.msra.mxu0 %v2064_v17 }
  0x3b   : > { %1123 = vmatprep.subr.bf16.mxu0 %v2202_v1 }
  0x3e   : > { %1124 = vmatpush1.bf16.msra.mxu0 %v2067_v19 }
  0x3f   : > { %1139 = vmatprep.subr.bf16.mxu0 %v2202_v1 }
  0x40   : > { %1198 = vmatmul.mubr.bf16.gmra.mxu1 %v2082_v30  ;;  %2008 = vmatmul.mubr.msk.bf16.gmra.mxu0 %vm648_vm1, %v2083_v31  ;;  %v1321_v31 = vld [vmem:[%s2430_s10 + $0x60] sm:$0xff] }
  0x41   : > { %1948 = vmatprep.mubr.msk.bf16.mxu1 %vm1060_vm2, %v2084_v32  ;;  %2011 = vmatprep.mubr.msk.bf16.mxu0 %vm648_vm1, %v2086_v33 }
  0x42   : > { %1140 = vmatpush2.bf16.msra.mxu0 %v2068_v21 }
  0x48   : > { %1206 = vmatmul.mubr.bf16.gmra.mxu1 %v2087_v34  ;;  %2012 = vmatmul.mubr.msk.bf16.gmra.mxu0 %vm648_vm1, %v2088_v35 }
  0x49   : > { %1949 = vmatprep.mubr.msk.bf16.mxu1 %vm1060_vm2, %v2089_v36  ;;  %2015 = vmatprep.mubr.msk.bf16.mxu0 %vm648_vm1, %v2091_v37  ;;  %v1353_v37 = vadd.f32 1.0, %v1321_v31 }
  0x50   : > { %1214 = vmatmul.mubr.bf16.gmra.mxu1 %v2092_v38  ;;  %2016 = vmatmul.mubr.msk.bf16.gmra.mxu0 %vm648_vm1, %v2093_v39 }
  0x51   : > { %1950 = vmatprep.mubr.msk.bf16.mxu1 %vm1060_vm2, %v2094_v40  ;;  %2019 = vmatprep.mubr.msk.bf16.mxu0 %vm648_vm1, %v2096_v41  ;;  %v1322_v40 = vld [vmem:[%s2430_s10 + $0x68] sm:$0xff] }
  0x58   : > { %1222 = vmatmul.mubr.bf16.gmra.mxu1 %v2097_v42  ;;  %2020 = vmatmul.mubr.msk.bf16.gmra.mxu0 %vm648_vm1, %v2098_v43  ;;  %v1417_v42 = vld [vmem:[%s2446_s17 + $0x60] sm:$0xff] }
  0x59   : > { %1951 = vmatprep.mubr.msk.bf16.mxu1 %vm1060_vm2, %v2099_v44  ;;  %1940 = vmatprep.mubr.msk.bf16.mxu0 %vm1060_vm2, %v2103_v45  ;;  %v1323_v45 = vld [vmem:[%s2430_s10 + $0x70] sm:$0xff] }
  0x60   : > { %1230 = vmatmul.mubr.bf16.gmra.mxu1 %v2104_v47  ;;  %1142 = vmatmul.mubr.bf16.vlgmr.msra.gmra.mxu0 %v2101_v46 }
  0x61   : > { %1952 = vmatprep.mubr.msk.bf16.mxu1 %vm1060_vm2, %v2105_v48  ;;  %1941 = vmatprep.mubr.msk.bf16.mxu0 %vm1060_vm2, %v2107_v49  ;;  %v1354_v48 = vadd.f32 1.0, %v1322_v40  ;;  %v1511_v49 = vld [vmem:[%s2463_s20 + $0x50] sm:$0xff] }
  0x68   : > { %1238 = vmatmul.mubr.bf16.gmra.mxu1 %v2109_v50  ;;  %1150 = vmatmul.mubr.bf16.gmra.mxu0 %v2110_v51 }
  0x69   : > { %1953 = vmatprep.mubr.msk.bf16.mxu1 %vm1060_vm2, %v2111_v52  ;;  %1942 = vmatprep.mubr.msk.bf16.mxu0 %vm1060_vm2, %v2113_v53 }
  0x70   : > { %1246 = vmatmul.mubr.bf16.gmra.mxu1 %v2115_v54  ;;  %1158 = vmatmul.mubr.bf16.gmra.mxu0 %v2116_v55  ;;  %v1355_v55 = vadd.f32 1.0, %v1323_v45 }
  0x71   : > { %1954 = vmatprep.mubr.msk.bf16.mxu1 %vm1060_vm2, %v2117_v56  ;;  %1943 = vmatprep.mubr.msk.bf16.mxu0 %vm1060_vm2, %v2119_v57  ;;  %v1324_v56 = vld [vmem:[%s2430_s10 + $0x78] sm:$0xff]  ;;  %v1607_v57 = vld [vmem:[%s2472_s22 + $0x50] sm:$0xff] }
  0x78   : > { %1254 = vmatmul.mubr.bf16.gmra.mxu1 %v2121_v58  ;;  %1166 = vmatmul.mubr.bf16.gmra.mxu0 %v2122_v59  ;;  %v1418_v58 = vld [vmem:[%s2446_s17 + $0x68] sm:$0xff] }
  0x79   : > { %1955 = vmatprep.mubr.msk.bf16.mxu1 %vm1060_vm2, %v2123_v60  ;;  %1944 = vmatprep.mubr.msk.bf16.mxu0 %vm1060_vm2, %v2125_v61  ;;  %v1543_v61 = vsub.f32 1.0, %v1511_v49 }
  0x80   : > { %1262 = vmatmul.mubr.bf16.gmra.mxu1 %v2127_v62  ;;  %1174 = vmatmul.mubr.bf16.gmra.mxu0 %v2128_v63  ;;  %v1512_v62 = vld [vmem:[%s2463_s20 + $0x58] sm:$0xff] }
  0xe0   : > { %v2414_v0 = vpop.f32.mrf.mxu0 }
  0xe2   : > { %v2416_v1 = vpop.f32.mrf.mxu0 }
  0xe4   : > { %v2418_v2 = vpop.f32.mrf.mxu0 }
  0xe6   : > { %v2420_v3 = vpop.f32.mrf.mxu0 }
  0xe8   : > { %v2422_v4 = vpop.f32.mrf.mxu0 }
  0xea   : > { %v2424_v5 = vpop.f32.mrf.mxu0 }
  0xec   : > { %v2432_v6 = vpop.f32.mrf.mxu0 }
  0xee   : > { %v2434_v7 = vpop.f32.mrf.mxu0 }
  0xf0   : > { %v1183_v9 = vpop.f32.mrf.mxu1  ;;  %v2001_v10 = vpop.f32.mrf.mxu0 }
  0xf1   : > { %v1184_v12 = vadd.f32 %v2001_v10, %v1183_v9  ;;  %v1419_v9 = vld [vmem:[%s2446_s17 + $0x70] sm:$0xff] }
  0xf2   : > { %v1185_v14 = vpop.f32.mrf.mxu1  ;;  %v2448_v15 = vpop.f32.mrf.mxu0 }
  0xf3   : > { %v1287_v17 = vadd.f32 %v2440_v11, %v1184_v12  ;;  %v1356_v12 = vadd.f32 1.0, %v1324_v56  ;;  %v1639_v14 = vmul.f32 %v1607_v57, %v1511_v49  ;;  %v1327_v56 = vld [vmem:[%s2430_s10 + $0x90] sm:$0xff] }
  0xf4   : > { %v1186_v19 = vpop.f32.mrf.mxu1  ;;  %v2002_v20 = vpop.f32.mrf.mxu0 }
  0xf5   : > { %v1383_v21 = vmul.f32 %v1351_v13, %v1287_v17  ;;  %v1187_v22 = vadd.f32 %v2002_v20, %v1186_v19  ;;  %v1325_v20 = vld [vmem:[%s2430_s10 + $0x80] sm:$0xff] }
  0xf6   : > { %v1188_v24 = vpop.f32.mrf.mxu1  ;;  %v2453_v25 = vpop.f32.mrf.mxu0 }
  0xf7   : > { %v1447_v26 = vadd.f32 %v1415_v18, %v1383_v21  ;;  %v1288_v27 = vadd.f32 %v2440_v11, %v1187_v22  ;;  %v1544_v22 = vsub.f32 1.0, %v1512_v62 }
  0xf8   : > { %v1191_v29 = vpop.f32.mrf.mxu1  ;;  %v2005_v30 = vpop.f32.mrf.mxu0 }
  0xf9   : > { %2129 = vtanh.f32 %v1447_v26  ;;  %v1384_v32 = vmul.f32 %v1352_v23, %v1288_v27 }
  0xfa   : > { %v1193_v33 = vpop.f32.mrf.mxu1  ;;  %v783_v34 = vpop.f32.mrf.mxu0 }
  0xfb   : > { %v1448_v35 = vadd.f32 %v1416_v28, %v1384_v32  ;;  %v1192_v36 = vadd.f32 %v1191_v29, %v783_v34  ;;  %v1640_v29 = vmul.f32 %v1608_v16, %v1512_v62  ;;  %v1357_v32 = vadd.f32 1.0, %v1325_v20 }
  0xfc   : > { %v1194_v38 = vpop.f32.mrf.mxu1  ;;  %v2006_v39 = vpop.f32.mrf.mxu0 }
  0xfd   : > { %2131 = vtanh.f32 %v1448_v35  ;;  %v1289_v41 = vadd.f32 %v2440_v11, %v1192_v36  ;;  %v1513_v35 = vld [vmem:[%s2463_s20 + $0x60] sm:$0xff] }
  0xfe   : > { %v1196_v43 = vpop.f32.mrf.mxu1  ;;  %v786_v44 = vpop.f32.mrf.mxu0  ;;  %v1545_v45 = vsub.f32 1.0, %v1513_v35 }
  0xff   : > { %v1385_v46 = vmul.f32 %v1353_v37, %v1289_v41  ;;  %v1195_v47 = vadd.f32 %v1194_v38, %v786_v44  ;;  %v1326_v38 = vld [vmem:[%s2430_s10 + $0x88] sm:$0xff] }
 0x100   : > { %v1199_v50 = vpop.f32.mrf.mxu1  ;;  %v2475_v51 = vpop.f32.mrf.mxu0  ;;  %v1358_v49 = vadd.f32 1.0, %v1326_v38 }
 0x101   : > { %v1449_v52 = vadd.f32 %v1417_v42, %v1385_v46  ;;  %v1290_v53 = vadd.f32 %v2440_v11, %v1195_v47  ;;  %v1200_v54 = vadd.f32 %v2005_v30, %v1199_v50  ;;  %v1420_v30 = vld [vmem:[%s2446_s17 + $0x78] sm:$0xff]  ;;  %v1609_v46 = vld [vmem:[%s2472_s22 + $0x60] sm:$0xff] }
 0x102   : > { %v1201_v59 = vpop.f32.mrf.mxu1  ;;  %v799_v60 = vpop.f32.mrf.mxu0  ;;  %v1421_v47 = vld [vmem:[%s2446_s17 + $0x80] sm:$0xff] }
 0x103   : > { %2133 = vtanh.f32 %v1449_v52  ;;  %v1386_v63 = vmul.f32 %v1354_v48, %v1290_v53  ;;  %v1291_v8 = vadd.f32 %v2440_v11, %v1200_v54  ;;  %v1514_v53 = vld [vmem:[%s2463_s20 + $0x68] sm:$0xff]  ;;  %v1641_v59 = vmul.f32 %v1609_v46, %v1513_v35  ;;  %v1423_v35 = vld [vmem:[%s2446_s17 + $0x90] sm:$0xff] }
 0x104   : > { %v1202_v10 = vpop.f32.mrf.mxu1  ;;  %v2484_v13 = vpop.f32.mrf.mxu0 }
 0x105   : > { %v1450_v17 = vadd.f32 %v1418_v58, %v1386_v63  ;;  %v1387_v18 = vmul.f32 %v1355_v55, %v1291_v8  ;;  %v1203_v19 = vadd.f32 %v2006_v39, %v1202_v10  ;;  %v1546_v8 = vsub.f32 1.0, %v1514_v53  ;;  %v1422_v10 = vld [vmem:[%s2446_s17 + $0x88] sm:$0xff] }
 0x106   : > { %v2130_v21 = vpop.eup %2129  ;;  %v1204_v23 = vpop.f32.mrf.mxu1 }
 0x107   : > { %v802_v24 = vpop.f32.mrf.mxu0  ;;  %v1575_v26 = vmul.f32 %v2130_v21, %v1543_v61  ;;  %2135 = vtanh.f32 %v1450_v17  ;;  %v1451_v27 = vadd.f32 %v1419_v9, %v1387_v18  ;;  %v1292_v28 = vadd.f32 %v2440_v11, %v1203_v19  ;;  %v1610_v9 = vld [vmem:[%s2472_s22 + $0x68] sm:$0xff]  ;;  %v1611_v18 = vld [vmem:[%s2472_s22 + $0x70] sm:$0xff]  ;;  %v1328_v21 = vld [vmem:[%s2430_s10 + $0x98] sm:$0xff] }
 0x108   : > { %v1207_v31 = vpop.f32.mrf.mxu1 }
 0x109   : > { %v2496_v33 = vpop.f32.mrf.mxu0  ;;  %v1671_v34 = vadd.f32 %v1639_v14, %v1575_v26  ;;  %2137 = vtanh.f32 %v1451_v27  ;;  %v1388_v36 = vmul.f32 %v1356_v12, %v1292_v28  ;;  %v1208_v37 = vadd.f32 %v1207_v31, %v799_v60  ;;  %v1515_v60 = vld [vmem:[%s2463_s20 + $0x70] sm:$0xff]  ;;  %v1516_v28 = vld [vmem:[%s2463_s20 + $0x78] sm:$0xff] }
 0x10a   : > { %v2132_v39 = vpop.eup %2131  ;;  %v1209_v40 = vpop.f32.mrf.mxu1  ;;  %v1359_v14 = vadd.f32 1.0, %v1327_v56  ;;  %v1642_v27 = vmul.f32 %v1610_v9, %v1514_v53  ;;  %v1548_v46 = vsub.f32 1.0, %v1516_v28 }
 0x10b   : > { %v2500_v41 = vpop.f32.mrf.mxu0  ;;  %1704 = vst.msk [vmem:[%s2493_s25 + $0x50] sm:$0xff] %vm1693_vm3, %v1671_v34  ;;  %v1576_v42 = vmul.f32 %v2132_v39, %v1544_v22  ;;  %v1452_v43 = vadd.f32 %v1420_v30, %v1388_v36  ;;  %v1293_v44 = vadd.f32 %v2440_v11, %v1208_v37  ;;  %v1547_v22 = vsub.f32 1.0, %v1515_v60  ;;  %v1612_v34 = vld [vmem:[%s2472_s22 + $0x78] sm:$0xff]  ;;  %v2535_v39 = vld [vmem:[%s2463_s20 + $0x80] sm:$0xff] }
 0x10c   : > { %v1210_v48 = vpop.f32.mrf.mxu1  ;;  %v1360_v36 = vadd.f32 1.0, %v1328_v21  ;;  %v1613_v40 = vld [vmem:[%s2472_s22 + $0x80] sm:$0xff]  ;;  %v1310_v21 = vld [vmem:[%s2430_s10 + $0x8] sm:$0xff] }
 0x10d   : > { %v2507_v50 = vpop.f32.mrf.mxu0  ;;  %v1672_v52 = vadd.f32 %v1640_v29, %v1576_v42  ;;  %2139 = vtanh.f32 %v1452_v43  ;;  %v1389_v54 = vmul.f32 %v1357_v32, %v1293_v44  ;;  %v1211_v55 = vadd.f32 %v1210_v48, %v802_v24  ;;  %v1329_v44 = vld [vmem:[%s2430_s10 + $0xa0] sm:$0xff] }
 0x10e   : > { %v1212_v57 = vpop.f32.mrf.mxu1  ;;  %v1643_v32 = vmul.f32 %v1611_v18, %v1515_v60  ;;  %v1549_v60 = vsub.f32 1.0, %v2535_v39  ;;  %v1361_v9 = vadd.f32 1.0, %v1329_v44  ;;  %v1617_v44 = vld [vmem:[%s2472_s22 + $0xa0] sm:$0xff] }
 0x10f   : > { %v2511_v58 = vpop.f32.mrf.mxu0  ;;  %1705 = vst.msk [vmem:[%s2493_s25 + $0x58] sm:$0xff] %vm1693_vm3, %v1672_v52  ;;  %v1453_v61 = vadd.f32 %v1421_v47, %v1389_v54  ;;  %v1294_v62 = vadd.f32 %v2440_v11, %v1211_v55  ;;  %v2544_v54 = vld [vmem:[%s2463_s20 + $0x88] sm:$0xff]  ;;  %v1331_v57 = vld [vmem:[%s2430_s10 + $0xb0] sm:$0xff] }
 0x110   : > { %v2134_v63 = vpop.eup %2133  ;;  %v1215_v12 = vpop.f32.mrf.mxu1  ;;  %v1614_v55 = vld [vmem:[%s2472_s22 + $0x88] sm:$0xff] }
 0x111   : > { %v2519_v16 = vpop.f32.mrf.mxu0  ;;  %v1577_v17 = vmul.f32 %v2134_v63, %v1545_v45  ;;  %2141 = vtanh.f32 %v1453_v61  ;;  %v1390_v19 = vmul.f32 %v1358_v49, %v1294_v62  ;;  %v1216_v20 = vadd.f32 %v2475_v51, %v1215_v12  ;;  %v1330_v49 = vld [vmem:[%s2430_s10 + $0xa8] sm:$0xff]  ;;  %v2554_v62 = vld [vmem:[%s2463_s20 + $0x90] sm:$0xff]  ;;  %v1424_v63 = vld [vmem:[%s2446_s17 + $0x98] sm:$0xff] }
 0x112   : > { %v1217_v23 = vpop.f32.mrf.mxu1  ;;  %v2551_v61 = vmul.f32 %v1613_v40, %v2535_v39  ;;  %v1309_v12 = vld [vmem:[%s2430_s10] sm:$0xff]  ;;  %v1551_v39 = vsub.f32 1.0, %v2554_v62 }
 0x113   : > { %v2524_v24 = vpop.f32.mrf.mxu0  ;;  %v1673_v26 = vadd.f32 %v1641_v59, %v1577_v17  ;;  %v1454_v29 = vadd.f32 %v1422_v10, %v1390_v19  ;;  %v1295_v30 = vadd.f32 %v2440_v11, %v1216_v20  ;;  %v1644_v59 = vmul.f32 %v1612_v34, %v1516_v28  ;;  %v1615_v17 = vld [vmem:[%s2472_s22 + $0x90] sm:$0xff]  ;;  %v1332_v20 = vld [vmem:[%s2430_s10 + $0xb8] sm:$0xff] }
 0x114   : > { %v2136_v31 = vpop.eup %2135  ;;  %v1218_v51 = vpop.f32.mrf.mxu1  ;;  %v1550_v23 = vsub.f32 1.0, %v2544_v54  ;;  %v1616_v34 = vld [vmem:[%s2472_s22 + $0x98] sm:$0xff]  ;;  %v2587_v40 = vmul.f32 %v1615_v17, %v2554_v62  ;;  %v1598_v62 = vld [vmem:[%s2472_s22 + $0x8] sm:$0xff] }
 0x115   : > { %v2530_v37 = vpop.f32.mrf.mxu0  ;;  %1706 = vst.msk [vmem:[%s2493_s25 + $0x60] sm:$0xff] %vm1693_vm3, %v1673_v26  ;;  %v1578_v38 = vmul.f32 %v2136_v31, %v1546_v8  ;;  %2143 = vtanh.f32 %v1454_v29  ;;  %v1391_v42 = vmul.f32 %v1359_v14, %v1295_v30  ;;  %v1219_v43 = vadd.f32 %v2484_v13, %v1218_v51 }
 0x116   : > { %v2138_v45 = vpop.eup %2137  ;;  %v1220_v47 = vpop.f32.mrf.mxu1  ;;  %v2568_v26 = vmul.f32 %v1614_v55, %v2544_v54  ;;  %v1362_v30 = vadd.f32 1.0, %v1330_v49  ;;  %v2581_v51 = vadd.f32 1.0, %v1309_v12  ;;  %v2598_v49 = vadd.f32 1.0, %v1310_v21  ;;  %v1618_v21 = vld [vmem:[%s2472_s22 + $0xa8] sm:$0xff] }
 0x117   : > { %v2540_v48 = vpop.f32.mrf.mxu0  ;;  %v1674_v52 = vadd.f32 %v1642_v27, %v1578_v38  ;;  %v1579_v53 = vmul.f32 %v2138_v45, %v1547_v22  ;;  %v1455_v56 = vadd.f32 %v1423_v35, %v1391_v42  ;;  %v1296_v13 = vadd.f32 %v2440_v11, %v1219_v43  ;;  %v2571_v27 = vld [vmem:[%s2463_s20 + $0x98] sm:$0xff]  ;;  %v1311_v38 = vld [vmem:[%s2430_s10 + $0x10] sm:$0xff]  ;;  %v1425_v42 = vld [vmem:[%s2446_s17 + $0xa0] sm:$0xff] }
 0x118   : > { %v1223_v8 = vpop.f32.mrf.mxu1  ;;  %v2591_v43 = vld [vmem:[%s2463_s20 + $0xa0] sm:$0xff]  ;;  %v2596_v47 = vadd.f32 1.0, %v1332_v20  ;;  %v2608_v12 = vmul.f32 %v1616_v34, %v2571_v27 }
 0x119   : > { %v2557_v10 = vpop.f32.mrf.mxu0  ;;  %1707 = vst.msk [vmem:[%s2493_s25 + $0x68] sm:$0xff] %vm1693_vm3, %v1674_v52  ;;  %v1675_v14 = vadd.f32 %v1643_v32, %v1579_v53  ;;  %2145 = vtanh.f32 %v1455_v56  ;;  %v1392_v18 = vmul.f32 %v1360_v36, %v1296_v13  ;;  %v1224_v19 = vadd.f32 %v1223_v8, %v2500_v41  ;;  %v1333_v36 = vld [vmem:[%s2430_s10 + $0xc0] sm:$0xff]  ;;  %v2602_v56 = vld [vmem:[%s2463_s20 + $0xa8] sm:$0xff] }
 0x11a   : > { %v2140_v22 = vpop.eup %2139  ;;  %v1225_v28 = vpop.f32.mrf.mxu1  ;;  %v2575_v41 = vadd.f32 1.0, %v1331_v57  ;;  %v1334_v13 = vld [vmem:[%s2430_s10 + $0xc8] sm:$0xff]  ;;  %v1312_v57 = vld [vmem:[%s2430_s10 + $0x18] sm:$0xff]  ;;  %v1552_v8 = vsub.f32 1.0, %v2571_v27 }
 0x11b   : > { %v2573_v29 = vpop.f32.mrf.mxu0  ;;  %1708 = vst.msk [vmem:[%s2493_s25 + $0x70] sm:$0xff] %vm1693_vm3, %v1675_v14  ;;  %v1580_v31 = vmul.f32 %v2140_v22, %v1548_v46  ;;  %v1456_v32 = vadd.f32 %v1424_v63, %v1392_v18  ;;  %v1297_v35 = vadd.f32 %v2440_v11, %v1224_v19  ;;  %v1335_v22 = vld [vmem:[%s2430_s10 + $0xd0] sm:$0xff]  ;;  %v1313_v28 = vld [vmem:[%s2430_s10 + $0x20] sm:$0xff] }
 0x11c   : > { %v1226_v45 = vpop.f32.mrf.mxu1 }
 0x11d   : > { %v2594_v46 = vpop.f32.mrf.mxu0  ;;  %v1676_v52 = vadd.f32 %v1644_v59, %v1580_v31  ;;  %2147 = vtanh.f32 %v1456_v32  ;;  %v1393_v53 = vmul.f32 %v1361_v9, %v1297_v35  ;;  %v1227_v55 = vadd.f32 %v1226_v45, %v2511_v58  ;;  %v1426_v32 = vld [vmem:[%s2446_s17 + $0xa8] sm:$0xff] }
 0x11e   : > { %v2142_v63 = vpop.eup %2141  ;;  %v1228_v14 = vpop.f32.mrf.mxu1  ;;  %v2612_v9 = vadd.f32 1.0, %v1333_v36  ;;  %v2614_v58 = vadd.f32 1.0, %v1311_v38  ;;  %v2624_v31 = vmul.f32 %v1617_v44, %v2591_v43  ;;  %v2629_v36 = vld [vmem:[%s2463_s20 + $0xb0] sm:$0xff]  ;;  %v2631_v38 = vadd.f32 1.0, %v1334_v13 }
 0x11f   : > { %v2610_v59 = vpop.f32.mrf.mxu0  ;;  %1709 = vst.msk [vmem:[%s2493_s25 + $0x78] sm:$0xff] %vm1693_vm3, %v1676_v52  ;;  %v1581_v17 = vmul.f32 %v2142_v63, %v1549_v60  ;;  %v1457_v18 = vadd.f32 %v1425_v42, %v1393_v53  ;;  %v1298_v20 = vadd.f32 %v2440_v11, %v1227_v55  ;;  %v2633_v42 = vadd.f32 1.0, %v1312_v57  ;;  %v1619_v44 = vld [vmem:[%s2472_s22 + $0xb0] sm:$0xff]  ;;  %v2639_v55 = vld [vmem:[%s2463_s20] sm:$0xff]  ;;  %v1336_v63 = vld [vmem:[%s2430_s10 + $0xd8] sm:$0xff] }
 0x120   : > { %v1231_v35 = vpop.f32.mrf.mxu1  ;;  %v2643_v13 = vmul.f32 %v1618_v21, %v2602_v56 }
 0x121   : > { %v1143_v60 = vpop.f32.mrf.mxu0  ;;  %v1677_v45 = vadd.f32 %v2551_v61, %v1581_v17  ;;  %2149 = vtanh.f32 %v1457_v18  ;;  %v1394_v52 = vmul.f32 %v1362_v30, %v1298_v20  ;;  %v1232_v53 = vadd.f32 %v2496_v33, %v1231_v35  ;;  %v1427_v35 = vld [vmem:[%s2446_s17 + $0xb0] sm:$0xff] }
 0x122   : > { %v2144_v14 = vpop.eup %2143  ;;  %v1144_v57 = vadd.f32 %v1143_v60, %v2416_v1  ;;  %v1233_v34 = vpop.f32.mrf.mxu1  ;;  %v2646_v17 = vadd.f32 1.0, %v1335_v22  ;;  %v2648_v30 = vadd.f32 1.0, %v1313_v28  ;;  %v1597_v1 = vld [vmem:[%s2472_s22] sm:$0xff]  ;;  %v2660_v22 = vmul.f32 %v1619_v44, %v2629_v36 }
 0x123   : > { %v1145_v61 = vpop.f32.mrf.mxu0  ;;  %1710 = vst.msk [vmem:[%s2493_s25 + $0x80] sm:$0xff] %vm1693_vm3, %v1677_v45  ;;  %v1582_v33 = vmul.f32 %v2144_v14, %v1550_v23  ;;  %v1458_v18 = vadd.f32 %v1426_v32, %v1394_v52  ;;  %v1299_v20 = vadd.f32 %v2440_v11, %v1232_v53  ;;  %v1314_v34 = vld [vmem:[%s2430_s10 + $0x28] sm:$0xff]  ;;  %v2665_v23 = vld [vmem:[%s2463_s20 + $0xb8] sm:$0xff]  ;;  %v2667_v45 = vadd.f32 1.0, %v1336_v63  ;;  %v1405_v14 = vld [vmem:[%s2446_s17] sm:$0xff] }
 0x124   : > { %v1277_v28 = vadd.f32 %v2440_v11, %v1144_v57  ;;  %v1234_v54 = vpop.f32.mrf.mxu1  ;;  %v1620_v61 = vld [vmem:[%s2472_s22 + $0xb8] sm:$0xff]  ;;  %v2675_v57 = vld [vmem:[%s2463_s20 + $0x8] sm:$0xff]  ;;  %v2679_v19 = vmul.f32 %v1597_v1, %v2639_v55  ;;  %v1337_v1 = vld [vmem:[%s2430_s10 + $0xe0] sm:$0xff] }
 0x125   : > { %v1146_v32 = vpop.f32.mrf.mxu0  ;;  %v1678_v52 = vadd.f32 %v2568_v26, %v1582_v33  ;;  %2151 = vtanh.f32 %v1458_v18  ;;  %v1395_v53 = vmul.f32 %v2575_v41, %v1299_v20  ;;  %v1235_v44 = vadd.f32 %v2507_v50, %v1234_v54 }
 0x126   : > { %v2146_v60 = vpop.eup %2145  ;;  %v1373_v21 = vmul.f32 %v2581_v51, %v1277_v28  ;;  %v1147_v26 = vadd.f32 %v1146_v32, %v2420_v3  ;;  %v1236_v63 = vpop.f32.mrf.mxu1  ;;  %v2682_v41 = vadd.f32 1.0, %v1314_v34  ;;  %v1556_v51 = vsub.f32 1.0, %v2665_v23  ;;  %v1428_v3 = vld [vmem:[%s2446_s17 + $0xb8] sm:$0xff] }
 0x127   : > { %v1148_v33 = vpop.f32.mrf.mxu0  ;;  %1711 = vst.msk [vmem:[%s2493_s25 + $0x88] sm:$0xff] %vm1693_vm3, %v1678_v52  ;;  %v1583_v50 = vmul.f32 %v2146_v60, %v1551_v39  ;;  %v1459_v18 = vadd.f32 %v1427_v35, %v1395_v53  ;;  %v1300_v20 = vadd.f32 %v2440_v11, %v1235_v44  ;;  %v2693_v54 = vmul.f32 %v1620_v61, %v2665_v23  ;;  %v1406_v53 = vld [vmem:[%s2446_s17 + $0x8] sm:$0xff]  ;;  %v1315_v44 = vld [vmem:[%s2430_s10 + $0x30] sm:$0xff] }
 0x128   : > { %v1437_v28 = vadd.f32 %v1405_v14, %v1373_v21  ;;  %v1278_v34 = vadd.f32 %v2440_v11, %v1147_v26  ;;  %v1534_v32 = vsub.f32 1.0, %v2675_v57  ;;  %v1239_v39 = vpop.f32.mrf.mxu1  ;;  %v2703_v14 = vld [vmem:[%s2463_s20 + $0xc0] sm:$0xff] }
 0x129   : > { %v1151_v35 = vpop.f32.mrf.mxu0  ;;  %v1679_v60 = vadd.f32 %v2587_v40, %v1583_v50  ;;  %2153 = vtanh.f32 %v1459_v18  ;;  %v1396_v52 = vmul.f32 %v2596_v47, %v1300_v20  ;;  %v1240_v21 = vadd.f32 %v1239_v39, %v2524_v24 }
 0x12a   : > { %v2148_v61 = vpop.eup %2147  ;;  %2155 = vtanh.f32 %v1437_v28  ;;  %v1374_v26 = vmul.f32 %v2598_v49, %v1278_v34  ;;  %v1152_v63 = vadd.f32 %v2414_v0, %v1151_v35  ;;  %v1241_v33 = vpop.f32.mrf.mxu1  ;;  %v2708_v50 = vadd.f32 1.0, %v1337_v1  ;;  %v2719_v49 = vld [vmem:[%s2463_s20 + $0x10] sm:$0xff]  ;;  %v1429_v28 = vld [vmem:[%s2446_s17 + $0xc0] sm:$0xff] }
 0x12b   : > { %v1153_v40 = vpop.f32.mrf.mxu0  ;;  %1712 = vst.msk [vmem:[%s2493_s25 + $0x90] sm:$0xff] %vm1693_vm3, %v1679_v60  ;;  %v1584_v24 = vmul.f32 %v2148_v61, %v1552_v8  ;;  %v1460_v47 = vadd.f32 %v1428_v3, %v1396_v52  ;;  %v2715_v18 = vmul.f32 %v1598_v62, %v2675_v57  ;;  %v1301_v20 = vadd.f32 %v2440_v11, %v1240_v21  ;;  %v1621_v34 = vld [vmem:[%s2472_s22 + $0xc0] sm:$0xff]  ;;  %v1407_v60 = vld [vmem:[%s2446_s17 + $0x10] sm:$0xff]  ;;  %v1338_v21 = vld [vmem:[%s2430_s10 + $0xe8] sm:$0xff] }
 0x12c   : > { %v1438_v0 = vadd.f32 %v1406_v53, %v1374_v26  ;;  %v1557_v1 = vsub.f32 1.0, %v2703_v14  ;;  %v1279_v39 = vadd.f32 %v2440_v11, %v1152_v63  ;;  %v1242_v27 = vpop.f32.mrf.mxu1  ;;  %v2725_v3 = vadd.f32 1.0, %v1315_v44  ;;  %v1599_v52 = vld [vmem:[%s2472_s22 + $0x10] sm:$0xff] }
 0x12d   : > { %v1154_v8 = vpop.f32.mrf.mxu0  ;;  %v1680_v62 = vadd.f32 %v2608_v12, %v1584_v24  ;;  %2157 = vtanh.f32 %v1460_v47  ;;  %v1397_v35 = vmul.f32 %v2612_v9, %v1301_v20  ;;  %v1243_v53 = vadd.f32 %v1242_v27, %v2540_v48  ;;  %v1316_v47 = vld [vmem:[%s2430_s10 + $0x38] sm:$0xff] }
 0x12e   : > { %v2150_v61 = vpop.eup %2149  ;;  %2159 = vtanh.f32 %v1438_v0  ;;  %v1375_v26 = vmul.f32 %v2614_v58, %v1279_v39  ;;  %v1535_v44 = vsub.f32 1.0, %v2719_v49  ;;  %v1155_v63 = vadd.f32 %v2418_v2, %v1154_v8  ;;  %v1244_v12 = vpop.f32.mrf.mxu1  ;;  %v1430_v0 = vld [vmem:[%s2446_s17 + $0xc8] sm:$0xff] }
 0x12f   : > { %v1156_v33 = vpop.f32.mrf.mxu0  ;;  %1713 = vst.msk [vmem:[%s2493_s25 + $0x98] sm:$0xff] %vm1693_vm3, %v1680_v62  ;;  %v2953_v9 = vsub.f32 1.0, %v2591_v43  ;;  %v1461_v48 = vadd.f32 %v1429_v28, %v1397_v35  ;;  %v2741_v24 = vmul.f32 %v1621_v34, %v2703_v14  ;;  %v1302_v58 = vadd.f32 %v2440_v11, %v1243_v53  ;;  %v2750_v39 = vld [vmem:[%s2463_s20 + $0xc8] sm:$0xff] }
 0x130   : > { %v1439_v20 = vadd.f32 %v1407_v60, %v1375_v26  ;;  %v2746_v2 = vmul.f32 %v1599_v52, %v2719_v49  ;;  %v1280_v43 = vadd.f32 %v2440_v11, %v1155_v63  ;;  %v1247_v27 = vpop.f32.mrf.mxu1  ;;  %v2753_v28 = vadd.f32 1.0, %v1338_v21  ;;  %v1622_v35 = vld [vmem:[%s2472_s22 + $0xc8] sm:$0xff]  ;;  %v1408_v60 = vld [vmem:[%s2446_s17 + $0x18] sm:$0xff] }
 0x131   : > { %v1585_v40 = vmul.f32 %v2150_v61, %v2953_v9  ;;  %v1159_v8 = vpop.f32.mrf.mxu0  ;;  %2161 = vtanh.f32 %v1461_v48  ;;  %v1398_v62 = vmul.f32 %v2631_v38, %v1302_v58  ;;  %v2760_v52 = vld [vmem:[%s2463_s20 + $0x18] sm:$0xff]  ;;  %v1248_v53 = vadd.f32 %v2519_v16, %v1247_v27  ;;  %v1339_v48 = vld [vmem:[%s2430_s10 + $0xf0] sm:$0xff]  ;;  %v1318_v49 = vld [vmem:[%s2430_s10 + $0x48] sm:$0xff] }
 0x132   : > { %v2152_v61 = vpop.eup %2151  ;;  %2163 = vtanh.f32 %v1439_v20  ;;  %v1376_v26 = vmul.f32 %v2633_v42, %v1280_v43  ;;  %v1160_v21 = vadd.f32 %v1159_v8, %v2424_v5  ;;  %v1249_v63 = vpop.f32.mrf.mxu1  ;;  %v2765_v12 = vadd.f32 1.0, %v1316_v47  ;;  %v1600_v47 = vld [vmem:[%s2472_s22 + $0x18] sm:$0xff]  ;;  %v1431_v20 = vld [vmem:[%s2446_s17 + $0xd0] sm:$0xff] }
 0x133   : > { %v1681_v34 = vadd.f32 %v2624_v31, %v1585_v40  ;;  %v1161_v31 = vpop.f32.mrf.mxu0  ;;  %v2954_v38 = vsub.f32 1.0, %v2602_v56  ;;  %v1462_v9 = vadd.f32 %v1430_v0, %v1398_v62  ;;  %v1558_v16 = vsub.f32 1.0, %v2750_v39 }
 0x134   : > { %v1303_v40 = vadd.f32 %v2440_v11, %v1248_v53  ;;  %v2775_v42 = vmul.f32 %v1622_v35, %v2750_v39  ;;  %v1440_v5 = vadd.f32 %v1408_v60, %v1376_v26  ;;  %v1536_v58 = vsub.f32 1.0, %v2760_v52  ;;  %v1250_v56 = vpop.f32.mrf.mxu1  ;;  %v1317_v35 = vld [vmem:[%s2430_s10 + $0x40] sm:$0xff] }
 0x135   : > { %1714 = vst.msk [vmem:[%s2493_s25 + $0xa0] sm:$0xff] %vm1693_vm3, %v1681_v34  ;;  %v1586_v33 = vmul.f32 %v2152_v61, %v2954_v38  ;;  %v1281_v43 = vadd.f32 %v2440_v11, %v1160_v21  ;;  %v1162_v27 = vpop.f32.mrf.mxu0  ;;  %2165 = vtanh.f32 %v1462_v9  ;;  %v1409_v34 = vld [vmem:[%s2446_s17 + $0x20] sm:$0xff]  ;;  %v1251_v62 = vadd.f32 %v2530_v37, %v1250_v56  ;;  %v2801_v9 = vld [vmem:[%s2463_s20 + $0xd0] sm:$0xff] }
 0x136   : > { %v1399_v8 = vmul.f32 %v2646_v17, %v1303_v40  ;;  %v2154_v60 = vpop.eup %2153  ;;  %2167 = vtanh.f32 %v1440_v5  ;;  %v1163_v61 = vadd.f32 %v1162_v27, %v2434_v7  ;;  %v1252_v26 = vpop.f32.mrf.mxu1  ;;  %v2788_v63 = vadd.f32 1.0, %v1339_v48  ;;  %v1432_v48 = vld [vmem:[%s2446_s17 + $0xd8] sm:$0xff] }
 0x137   : > { %v1682_v0 = vadd.f32 %v2643_v13, %v1586_v33  ;;  %v1377_v53 = vmul.f32 %v2648_v30, %v1281_v43  ;;  %v1164_v21 = vpop.f32.mrf.mxu0  ;;  %v2156_v13 = vpop.eup %2155  ;;  %v2955_v17 = vsub.f32 1.0, %v2629_v36  ;;  %v2795_v31 = vmul.f32 %v1600_v47, %v2760_v52 }
 0x138   : > { %v1463_v38 = vadd.f32 %v1431_v20, %v1399_v8  ;;  %v1304_v30 = vadd.f32 %v2440_v11, %v1251_v62  ;;  %v2956_v7 = vsub.f32 1.0, %v2639_v55  ;;  %v1282_v5 = vadd.f32 %v2440_v11, %v1163_v61  ;;  %v1255_v43 = vpop.f32.mrf.mxu1  ;;  %v2809_v20 = vld [vmem:[%s2463_s20 + $0x20] sm:$0xff]  ;;  %v1410_v55 = vld [vmem:[%s2446_s17 + $0x28] sm:$0xff] }
 0x139   : > { %1715 = vst.msk [vmem:[%s2493_s25 + $0xa8] sm:$0xff] %vm1693_vm3, %v1682_v0  ;;  %v1587_v37 = vmul.f32 %v2154_v60, %v2955_v17  ;;  %v1441_v40 = vadd.f32 %v1409_v34, %v1377_v53  ;;  %v1167_v56 = vpop.f32.mrf.mxu0  ;;  %v2805_v36 = vadd.f32 1.0, %v1317_v35  ;;  %v1256_v0 = vadd.f32 %v1255_v43, %v2573_v29 }
 0x13a   : > { %v1565_v33 = vmul.f32 %v2156_v13, %v2956_v7  ;;  %2169 = vtanh.f32 %v1463_v38  ;;  %v1400_v27 = vmul.f32 %v2667_v45, %v1304_v30  ;;  %v2158_v8 = vpop.eup %2157  ;;  %v1378_v62 = vmul.f32 %v2682_v41, %v1282_v5  ;;  %v1623_v41 = vld [vmem:[%s2472_s22 + $0xd0] sm:$0xff]  ;;  %v1433_v13 = vld [vmem:[%s2446_s17 + $0xe0] sm:$0xff] }
 0x13b   : > { %v1683_v47 = vadd.f32 %v2660_v22, %v1587_v37  ;;  %2171 = vtanh.f32 %v1441_v40  ;;  %v1168_v35 = vadd.f32 %v2422_v4, %v1167_v56  ;;  %v1257_v22 = vpop.f32.mrf.mxu1  ;;  %v1169_v60 = vpop.f32.mrf.mxu0  ;;  %v1588_v45 = vmul.f32 %v2158_v8, %v1556_v51  ;;  %v1411_v30 = vld [vmem:[%s2446_s17 + $0x30] sm:$0xff] }
 0x13c   : > { %v1661_v34 = vadd.f32 %v2679_v19, %v1565_v33  ;;  %v2160_v53 = vpop.eup %2159  ;;  %v1559_v29 = vsub.f32 1.0, %v2801_v9  ;;  %v1464_v61 = vadd.f32 %v1432_v48, %v1400_v27  ;;  %v1305_v19 = vadd.f32 %v2440_v11, %v1256_v0  ;;  %v1434_v27 = vld [vmem:[%s2446_s17 + $0xe8] sm:$0xff] }
 0x13d   : > { %1716 = vst.msk [vmem:[%s2493_s25 + $0xb0] sm:$0xff] %vm1693_vm3, %v1683_v47  ;;  %v1566_v4 = vmul.f32 %v2160_v53, %v1534_v32  ;;  %v1537_v26 = vsub.f32 1.0, %v2809_v20  ;;  %v1442_v21 = vadd.f32 %v1410_v55, %v1378_v62  ;;  %v1283_v23 = vadd.f32 %v2440_v11, %v1168_v35  ;;  %v1258_v51 = vpop.f32.mrf.mxu1  ;;  %v1170_v17 = vpop.f32.mrf.mxu0  ;;  %v1340_v32 = vld [vmem:[%s2430_s10 + $0xf8] sm:$0xff] }
 0x13e   : > { %1694 = vst.msk [vmem:[%s2493_s25] sm:$0xff] %vm1693_vm3, %v1661_v34  ;;  %v1684_v37 = vadd.f32 %v2693_v54, %v1588_v45  ;;  %2173 = vtanh.f32 %v1464_v61  ;;  %v1401_v38 = vmul.f32 %v2708_v50, %v1305_v19  ;;  %v1259_v57 = vadd.f32 %v1258_v51, %v2610_v59  ;;  %v2162_v7 = vpop.eup %2161  ;;  %v1412_v62 = vld [vmem:[%s2446_s17 + $0x38] sm:$0xff]  ;;  %v1506_v51 = vld [vmem:[%s2463_s20 + $0x28] sm:$0xff] }
 0x13f   : > { %v1662_v33 = vadd.f32 %v2715_v18, %v1566_v4  ;;  %2175 = vtanh.f32 %v1442_v21  ;;  %v1379_v40 = vmul.f32 %v2725_v3, %v1283_v23  ;;  %v1171_v48 = vadd.f32 %v2432_v6, %v1170_v17  ;;  %v1260_v5 = vpop.f32.mrf.mxu1  ;;  %v1172_v54 = vpop.f32.mrf.mxu0  ;;  %v1601_v3 = vld [vmem:[%s2472_s22 + $0x20] sm:$0xff] }
 0x140   : > { %v2164_v43 = vpop.eup %2163  ;;  %1717 = vst.msk [vmem:[%s2493_s25 + $0xb8] sm:$0xff] %vm1693_vm3, %v1684_v37  ;;  %v1589_v50 = vmul.f32 %v2162_v7, %v1557_v1  ;;  %v2844_v59 = vmul.f32 %v1623_v41, %v2801_v9  ;;  %v1465_v56 = vadd.f32 %v1433_v13, %v1401_v38  ;;  %v1306_v18 = vadd.f32 %v2440_v11, %v1259_v57  ;;  %v1435_v41 = vld [vmem:[%s2446_s17 + $0xf0] sm:$0xff]  ;;  %v1413_v37 = vld [vmem:[%s2446_s17 + $0x40] sm:$0xff] }
 0x141   : > { %1695 = vst.msk [vmem:[%s2493_s25 + $0x8] sm:$0xff] %vm1693_vm3, %v1662_v33  ;;  %v1567_v6 = vmul.f32 %v2164_v43, %v1535_v44  ;;  %v1443_v47 = vadd.f32 %v1411_v30, %v1379_v40  ;;  %v1284_v55 = vadd.f32 %v2440_v11, %v1171_v48  ;;  %v1263_v14 = vpop.f32.mrf.mxu1  ;;  %v1175_v1 = vpop.f32.mrf.mxu0  ;;  %v1372_v0 = vadd.f32 1.0, %v1340_v32  ;;  %v1624_v30 = vld [vmem:[%s2472_s22 + $0xd8] sm:$0xff]  ;;  %v1602_v40 = vld [vmem:[%s2472_s22 + $0x28] sm:$0xff]  ;;  %v1529_v5 = vld [vmem:[%s2463_s20 + $0xe0] sm:$0xff] }
 0x142   : > { %v1685_v8 = vadd.f32 %v2741_v24, %v1589_v50  ;;  %2177 = vtanh.f32 %v1465_v56  ;;  %v1402_v34 = vmul.f32 %v2753_v28, %v1306_v18  ;;  %v1264_v35 = vadd.f32 %v2557_v10, %v1263_v14  ;;  %v2166_v44 = vpop.eup %2165  ;;  %v1436_v43 = vld [vmem:[%s2446_s17 + $0xf8] sm:$0xff]  ;;  %v2193_v9 = vld [vmem:[%s2951_s8] ss:$0 sm:$0xff]  ;;  %v1507_v56 = vld [vmem:[%s2463_s20 + $0x30] sm:$0xff] }
 0x143   : > { %v1663_v22 = vadd.f32 %v2746_v2, %v1567_v6  ;;  %2179 = vtanh.f32 %v1443_v47  ;;  %v1380_v60 = vmul.f32 %v2765_v12, %v1284_v55  ;;  %v1176_v53 = vadd.f32 %v1175_v1, %v2448_v15  ;;  %v1265_v45 = vpop.f32.mrf.mxu1  ;;  %v1177_v24 = vpop.f32.mrf.mxu0  ;;  %v1528_v12 = vld [vmem:[%s2463_s20 + $0xd8] sm:$0xff]  ;;  %v1625_v47 = vld [vmem:[%s2472_s22 + $0xe0] sm:$0xff]  ;;  %v1603_v1 = vld [vmem:[%s2472_s22 + $0x30] sm:$0xff] }
 0x144   : > { %v2168_v61 = vpop.eup %2167  ;;  %1718 = vst.msk [vmem:[%s2493_s25 + $0xc0] sm:$0xff] %vm1693_vm3, %v1685_v8  ;;  %v1590_v10 = vmul.f32 %v2166_v44, %v1558_v16  ;;  %v1633_v28 = vmul.f32 %v1601_v3, %v2809_v20  ;;  %v1466_v19 = vadd.f32 %v1434_v27, %v1402_v34  ;;  %v1307_v2 = vadd.f32 %v2440_v11, %v1264_v35  ;;  %v1626_v24 = vld [vmem:[%s2472_s22 + $0xe8] sm:$0xff] }
 0x145   : > { %1696 = vst.msk [vmem:[%s2493_s25 + $0x10] sm:$0xff] %vm1693_vm3, %v1663_v22  ;;  %v1568_v15 = vmul.f32 %v2168_v61, %v1536_v58  ;;  %v1444_v4 = vadd.f32 %v1412_v62, %v1380_v60  ;;  %v1285_v21 = vadd.f32 %v2440_v11, %v1176_v53  ;;  %v1266_v13 = vpop.f32.mrf.mxu1  ;;  %v1178_v39 = vpop.f32.mrf.mxu0  ;;  %v1350_v16 = vadd.f32 1.0, %v1318_v49  ;;  %v1530_v62 = vld [vmem:[%s2463_s20 + $0xe8] sm:$0xff]  ;;  %v1508_v22 = vld [vmem:[%s2463_s20 + $0x38] sm:$0xff] }
 0x146   : > { %v1686_v23 = vadd.f32 %v2775_v42, %v1590_v10  ;;  %2181 = vtanh.f32 %v1466_v19  ;;  %v1403_v17 = vmul.f32 %v2788_v63, %v1307_v2  ;;  %v1267_v52 = vadd.f32 %v2594_v46, %v1266_v13  ;;  %v1604_v19 = vld [vmem:[%s2472_s22 + $0x38] sm:$0xff] }
 0x147   : > { %v2170_v58 = vpop.eup %2169  ;;  %v1664_v38 = vadd.f32 %v2795_v31, %v1568_v15  ;;  %2183 = vtanh.f32 %v1444_v4  ;;  %v1381_v57 = vmul.f32 %v2805_v36, %v1285_v21  ;;  %v1179_v42 = vadd.f32 %v1178_v39, %v2453_v25  ;;  %v1268_v32 = vpop.f32.mrf.mxu1  ;;  %v1509_v21 = vld [vmem:[%s2463_s20 + $0x40] sm:$0xff] }
 0x148   : > { %v1180_v7 = vpop.f32.mrf.mxu0  ;;  %v2172_v33 = vpop.eup %2171  ;;  %1719 = vst.msk [vmem:[%s2493_s25 + $0xc8] sm:$0xff] %vm1693_vm3, %v1686_v23  ;;  %v1591_v46 = vmul.f32 %v2170_v58, %v1559_v29  ;;  %v1560_v63 = vsub.f32 1.0, %v1528_v12  ;;  %v1467_v31 = vadd.f32 %v1435_v41, %v1403_v17  ;;  %v1308_v48 = vadd.f32 %v2440_v11, %v1267_v52  ;;  %v1627_v23 = vld [vmem:[%s2472_s22 + $0xf0] sm:$0xff]  ;;  %v1605_v52 = vld [vmem:[%s2472_s22 + $0x40] sm:$0xff]  ;;  %v1510_v32 = vld [vmem:[%s2463_s20 + $0x48] sm:$0xff] }
 0x149   : > { %1697 = vst.msk [vmem:[%s2493_s25 + $0x18] sm:$0xff] %vm1693_vm3, %v1664_v38  ;;  %v1569_v25 = vmul.f32 %v2172_v33, %v1537_v26  ;;  %v1538_v36 = vsub.f32 1.0, %v1506_v51  ;;  %v1445_v54 = vadd.f32 %v1413_v37, %v1381_v57  ;;  %v1286_v29 = vadd.f32 %v2193_v9, %v1179_v42  ;;  %v1414_v26 = vld [vmem:[%s2446_s17 + $0x48] sm:$0xff] }
 0x14a   : > { %v1687_v50 = vadd.f32 %v2844_v59, %v1591_v46  ;;  %v1656_v11 = vmul.f32 %v1624_v30, %v1528_v12  ;;  %2185 = vtanh.f32 %v1467_v31  ;;  %v1404_v20 = vmul.f32 %v1372_v0, %v1308_v48  ;;  %v1531_v12 = vld [vmem:[%s2463_s20 + $0xf0] sm:$0xff]  ;;  %v1532_v30 = vld [vmem:[%s2463_s20 + $0xf8] sm:$0xff] }
 0x14b   : > { %v2174_v18 = vpop.eup %2173  ;;  %v1665_v6 = vadd.f32 %v1633_v28, %v1569_v25  ;;  %v1634_v3 = vmul.f32 %v1602_v40, %v1506_v51  ;;  %2187 = vtanh.f32 %v1445_v54  ;;  %v1382_v27 = vmul.f32 %v1350_v16, %v1286_v29  ;;  %v1606_v25 = vld [vmem:[%s2472_s22 + $0x48] sm:$0xff] }
 0x14c   : > { %v2176_v55 = vpop.eup %2175  ;;  %1720 = vst.msk [vmem:[%s2493_s25 + $0xd0] sm:$0xff] %vm1693_vm3, %v1687_v50  ;;  %v1592_v14 = vmul.f32 %v2174_v18, %v1560_v63  ;;  %v1561_v59 = vsub.f32 1.0, %v1529_v5  ;;  %v1468_v8 = vadd.f32 %v1436_v43, %v1404_v20  ;;  %v1539_v34 = vsub.f32 1.0, %v1507_v56  ;;  %v1628_v63 = vld [vmem:[%s2472_s22 + $0xf8] sm:$0xff] }
 0x14d   : > { %1698 = vst.msk [vmem:[%s2493_s25 + $0x20] sm:$0xff] %vm1693_vm3, %v1665_v6  ;;  %v1570_v0 = vmul.f32 %v2176_v55, %v1538_v36  ;;  %v1446_v35 = vadd.f32 %v1414_v26, %v1382_v27  ;;  %v1657_v44 = vmul.f32 %v1625_v47, %v1529_v5  ;;  %v1635_v45 = vmul.f32 %v1603_v1, %v1507_v56 }
 0x14e   : > { %v1688_v49 = vadd.f32 %v1656_v11, %v1592_v14  ;;  %2189 = vtanh.f32 %v1468_v8  ;;  %v1562_v28 = vsub.f32 1.0, %v1530_v62  ;;  %v1540_v15 = vsub.f32 1.0, %v1508_v22 }
 0x14f   : > { %v2178_v60 = vpop.eup %2177  ;;  %v1666_v53 = vadd.f32 %v1634_v3, %v1570_v0  ;;  %2191 = vtanh.f32 %v1446_v35  ;;  %v1658_v41 = vmul.f32 %v1626_v24, %v1530_v62  ;;  %v1636_v16 = vmul.f32 %v1604_v19, %v1508_v22 }
 0x150   : > { %v2180_v61 = vpop.eup %2179  ;;  %1721 = vst.msk [vmem:[%s2493_s25 + $0xd8] sm:$0xff] %vm1693_vm3, %v1688_v49  ;;  %v1593_v10 = vmul.f32 %v2178_v60, %v1561_v59  ;;  %v1563_v37 = vsub.f32 1.0, %v1531_v12  ;;  %v1541_v38 = vsub.f32 1.0, %v1509_v21  ;;  %v1659_v42 = vmul.f32 %v1627_v23, %v1531_v12 }
 0x151   : > { %1699 = vst.msk [vmem:[%s2493_s25 + $0x28] sm:$0xff] %vm1693_vm3, %v1666_v53  ;;  %v1571_v2 = vmul.f32 %v2180_v61, %v1539_v34  ;;  %v1637_v46 = vmul.f32 %v1605_v52, %v1509_v21  ;;  %v1564_v48 = vsub.f32 1.0, %v1532_v30  ;;  %v1542_v5 = vsub.f32 1.0, %v1510_v32 }
 0x152   : > { %v1689_v4 = vadd.f32 %v1657_v44, %v1593_v10  ;;  %v1660_v43 = vmul.f32 %v1628_v63, %v1532_v30  ;;  %v1638_v50 = vmul.f32 %v1606_v25, %v1510_v32 }
 0x153   : > { %v2182_v13 = vpop.eup %2181  ;;  %v1667_v39 = vadd.f32 %v1635_v45, %v1571_v2 }
 0x154   : > { %v2184_v51 = vpop.eup %2183  ;;  %1722 = vst.msk [vmem:[%s2493_s25 + $0xe0] sm:$0xff] %vm1693_vm3, %v1689_v4  ;;  %v1594_v17 = vmul.f32 %v2182_v13, %v1562_v28 }
 0x155   : > { %1700 = vst.msk [vmem:[%s2493_s25 + $0x30] sm:$0xff] %vm1693_vm3, %v1667_v39  ;;  %v1572_v58 = vmul.f32 %v2184_v51, %v1540_v15 }
 0x156   : > { %v1690_v57 = vadd.f32 %v1658_v41, %v1594_v17 }
 0x157   : > { %v2186_v7 = vpop.eup %2185  ;;  %v1668_v33 = vadd.f32 %v1636_v16, %v1572_v58 }
 0x158   : > { %v2188_v40 = vpop.eup %2187  ;;  %1723 = vst.msk [vmem:[%s2493_s25 + $0xe8] sm:$0xff] %vm1693_vm3, %v1690_v57  ;;  %v1595_v31 = vmul.f32 %v2186_v7, %v1563_v37 }
 0x159   : > { %1701 = vst.msk [vmem:[%s2493_s25 + $0x38] sm:$0xff] %vm1693_vm3, %v1668_v33  ;;  %v1573_v36 = vmul.f32 %v2188_v40, %v1541_v38 }
 0x15a   : > { %v1691_v54 = vadd.f32 %v1659_v42, %v1595_v31 }
 0x15b   : > { %v2190_v9 = vpop.eup %2189  ;;  %v1669_v29 = vadd.f32 %v1637_v46, %v1573_v36 }
 0x15c   : > { %v2192_v11 = vpop.eup %2191  ;;  %1724 = vst.msk [vmem:[%s2493_s25 + $0xf0] sm:$0xff] %vm1693_vm3, %v1691_v54  ;;  %v1596_v56 = vmul.f32 %v2190_v9, %v1564_v48 }
 0x15d   : > { %1702 = vst.msk [vmem:[%s2493_s25 + $0x40] sm:$0xff] %vm1693_vm3, %v1669_v29  ;;  %v1574_v20 = vmul.f32 %v2192_v11, %v1542_v5 }
 0x15e   : > { %v1692_v26 = vadd.f32 %v1660_v43, %v1596_v56 }
 0x15f   : > { %v1670_v18 = vadd.f32 %v1638_v50, %v1574_v20 }
 0x160   : > { %1725 = vst.msk [vmem:[%s2493_s25 + $0xf8] sm:$0xff] %vm1693_vm3, %v1692_v26 }
 0x161   : > { %1703 = vst.msk [vmem:[%s2493_s25 + $0x48] sm:$0xff] %vm1693_vm3, %v1670_v18 }
 0x162 PF: > { %s19_s30 = sadd.s32 1, %s2200_s30  }
 0x163   : > { %p16_p4 = scmp.ge.s32.totalorder %s19_s30, 4  }
 0x165   :  { %18 = sbr.rel (!%p16_p4) target bundleno = 1 (0x1), region = 101 }

// kernel: _forward_impl.32
= control target key start
LH: loop header
LB: loop body
LE: loop exit
PB: predicated region body
PF: predicated region fallthrough
CT: control target
= control target key end

     0   :  { %vm139_vm0 = vcmask 1043456   ;;  %vm114_vm1 = vcmask 588800   ;;  %s464_s1 = inlined_call_operand.vmem [shape: bf16[72,128], index: 1, kind: input, shape index: {}]   ;;  %s465_s0 = inlined_call_operand.vmem [shape: bf16[128,72], index: 0, kind: input, shape index: {}]   ;;  %s466_s2 = inlined_call_operand.vmem [shape: f32[1,128], index: 2, kind: input, shape index: {}]   ;;  %s467_s3 = inlined_call_operand.vmem [shape: f32[128,128], index: 3, kind: output, shape index: {}]  }
   0x1   :  { %v333_v0 = vld [vmem:[%s464_s1 + $0x20] ss:$0 sps:$4 sm:$0xff]   ;;  %v334_v1 = vld [vmem:[%s464_s1 + $0x18] sm:$0xff]   ;;  %v335_v3 = vld [vmem:[%s464_s1 + $0x10] sm:$0xff]  }
   0x2   :  { %331 = vmatprep.subr.msk.bf16.mxu0 %vm139_vm0, %v333_v0  ;;  %332 = vmatprep.subr.msk.bf16.mxu1 %vm139_vm0, %v333_v0  ;;  %v141_v2 = vsel %vm139_vm0, %v333_v0, 0  ;;  %v338_v4 = vld [vmem:[%s465_s0] sm:$0xff]   ;;  %v336_v6 = vld [vmem:[%s464_s1 + $0x8] sm:$0xff]   ;;  %v342_v10 = vld [vmem:[%s465_s0 + $0x10] sm:$0xff]  }
   0x3   :  { %296 = vmatpush3.bf16.msra.mxu0 %v141_v2  ;;  %326 = vmatpush3.bf16.msra.mxu1 %v141_v2  ;;  %v339_v5 = vld [vmem:[%s465_s0 + $0x20] sm:$0xff]   ;;  %v340_v8 = vld [vmem:[%s465_s0 + $0x8] sm:$0xff]   ;;  %v343_v11 = vld [vmem:[%s465_s0 + $0x30] sm:$0xff]  }
   0x4   :  { %297 = vmatprep.subr.bf16.mxu0 %v334_v1  ;;  %322 = vmatprep.subr.bf16.mxu1 %v334_v1  ;;  %v337_v7 = vld [vmem:[%s464_s1] sm:$0xff]   ;;  %v341_v9 = vld [vmem:[%s465_s0 + $0x28] sm:$0xff]   ;;  %v344_v12 = vld [vmem:[%s465_s0 + $0x18] sm:$0xff]  }
   0x5   :  { %305 = vmatprep.mubr.msk.bf16.mxu0 %vm114_vm1, %v338_v4  ;;  %313 = vmatprep.mubr.msk.bf16.mxu1 %vm114_vm1, %v339_v5  ;;  %v345_v13 = vld [vmem:[%s465_s0 + $0x38] sm:$0xff]   ;;  %v260_v14 = vld [vmem:[%s466_s2] ss:$0 sm:$0xff] }
   0x7   :  { %298 = vmatpush3.bf16.msra.mxu0 %v334_v1  ;;  %327 = vmatpush3.bf16.msra.mxu1 %v334_v1 }
   0x8   :  { %299 = vmatprep.subr.bf16.mxu0 %v335_v3  ;;  %323 = vmatprep.subr.bf16.mxu1 %v335_v3 }
   0xb   :  { %300 = vmatpush3.bf16.msra.mxu0 %v335_v3  ;;  %328 = vmatpush3.bf16.msra.mxu1 %v335_v3 }
   0xc   :  { %301 = vmatprep.subr.bf16.mxu0 %v336_v6  ;;  %324 = vmatprep.subr.bf16.mxu1 %v336_v6 }
   0xf   :  { %302 = vmatpush3.bf16.msra.mxu0 %v336_v6  ;;  %329 = vmatpush3.bf16.msra.mxu1 %v336_v6 }
  0x10   :  { %303 = vmatprep.subr.bf16.mxu0 %v337_v7  ;;  %325 = vmatprep.subr.bf16.mxu1 %v337_v7 }
  0x13   :  { %304 = vmatpush3.bf16.msra.mxu0 %v337_v7  ;;  %330 = vmatpush3.bf16.msra.mxu1 %v337_v7 }
  0x16   :  { %306 = vmatmul.mubr.msk.bf16.vlgmr.msra.gmra.mxu0 %vm114_vm1, %v340_v8  ;;  %314 = vmatmul.mubr.msk.bf16.vlgmr.msra.gmra.mxu1 %vm114_vm1, %v341_v9 }
  0x17   :  { %309 = vmatprep.mubr.msk.bf16.mxu0 %vm114_vm1, %v342_v10  ;;  %317 = vmatprep.mubr.msk.bf16.mxu1 %vm114_vm1, %v343_v11 }
  0x1e   :  { %310 = vmatmul.mubr.msk.bf16.gmra.mxu0 %vm114_vm1, %v344_v12  ;;  %318 = vmatmul.mubr.msk.bf16.gmra.mxu1 %vm114_vm1, %v345_v13 }
  0xd6   :  { %v307_v15 = vpop.f32.mrf.mxu0  ;;  %v315_v16 = vpop.f32.mrf.mxu1 }
  0xd7   :  { %v186_v17 = vadd.f32 %v307_v15, %v260_v14  ;;  %v218_v18 = vadd.f32 %v315_v16, %v260_v14 }
  0xd8   :  { %v177_v19 = vpop.f32.mrf.mxu0  ;;  %v209_v20 = vpop.f32.mrf.mxu1 }
  0xd9   :  { %242 = vst [vmem:[%s467_s3 + $0x10] sm:$0xff] %v186_v17  ;;  %250 = vst [vmem:[%s467_s3 + $0x50] sm:$0xff] %v218_v18  ;;  %v178_v21 = vadd.f32 %v260_v14, %v177_v19  ;;  %v210_v22 = vadd.f32 %v260_v14, %v209_v20 }
  0xda   :  { %v308_v23 = vpop.f32.mrf.mxu0  ;;  %v316_v24 = vpop.f32.mrf.mxu1 }
  0xdb   :  { %240 = vst [vmem:[%s467_s3] sm:$0xff] %v178_v21  ;;  %248 = vst [vmem:[%s467_s3 + $0x40] sm:$0xff] %v210_v22  ;;  %v189_v25 = vadd.f32 %v308_v23, %v260_v14  ;;  %v221_v26 = vadd.f32 %v316_v24, %v260_v14 }
  0xdc   :  { %v180_v27 = vpop.f32.mrf.mxu0  ;;  %v212_v28 = vpop.f32.mrf.mxu1 }
  0xdd   :  { %243 = vst [vmem:[%s467_s3 + $0x18] sm:$0xff] %v189_v25  ;;  %251 = vst [vmem:[%s467_s3 + $0x58] sm:$0xff] %v221_v26  ;;  %v181_v29 = vadd.f32 %v260_v14, %v180_v27  ;;  %v213_v30 = vadd.f32 %v260_v14, %v212_v28 }
  0xde   :  { %v311_v31 = vpop.f32.mrf.mxu0  ;;  %v319_v32 = vpop.f32.mrf.mxu1 }
  0xdf   :  { %241 = vst [vmem:[%s467_s3 + $0x8] sm:$0xff] %v181_v29  ;;  %249 = vst [vmem:[%s467_s3 + $0x48] sm:$0xff] %v213_v30  ;;  %v202_v33 = vadd.f32 %v311_v31, %v260_v14  ;;  %v234_v34 = vadd.f32 %v319_v32, %v260_v14 }
  0xe0   :  { %v193_v35 = vpop.f32.mrf.mxu0  ;;  %v225_v36 = vpop.f32.mrf.mxu1 }
  0xe1   :  { %246 = vst [vmem:[%s467_s3 + $0x30] sm:$0xff] %v202_v33  ;;  %254 = vst [vmem:[%s467_s3 + $0x70] sm:$0xff] %v234_v34  ;;  %v194_v37 = vadd.f32 %v260_v14, %v193_v35  ;;  %v226_v38 = vadd.f32 %v260_v14, %v225_v36 }
  0xe2   :  { %v312_v39 = vpop.f32.mrf.mxu0  ;;  %v320_v40 = vpop.f32.mrf.mxu1 }
  0xe3   :  { %244 = vst [vmem:[%s467_s3 + $0x20] sm:$0xff] %v194_v37  ;;  %252 = vst [vmem:[%s467_s3 + $0x60] sm:$0xff] %v226_v38  ;;  %v205_v41 = vadd.f32 %v312_v39, %v260_v14  ;;  %v237_v42 = vadd.f32 %v320_v40, %v260_v14 }
  0xe4   :  { %v196_v43 = vpop.f32.mrf.mxu0  ;;  %v228_v44 = vpop.f32.mrf.mxu1 }
  0xe5   :  { %247 = vst [vmem:[%s467_s3 + $0x38] sm:$0xff] %v205_v41  ;;  %255 = vst [vmem:[%s467_s3 + $0x78] sm:$0xff] %v237_v42  ;;  %v197_v45 = vadd.f32 %v260_v14, %v196_v43  ;;  %v229_v46 = vadd.f32 %v260_v14, %v228_v44 }
  0xe7   :  { %245 = vst [vmem:[%s467_s3 + $0x28] sm:$0xff] %v197_v45  ;;  %253 = vst [vmem:[%s467_s3 + $0x68] sm:$0xff] %v229_v46 }

// kernel: _forward_impl.33
= control target key start
LH: loop header
LB: loop body
LE: loop exit
PB: predicated region body
PF: predicated region fallthrough
CT: control target
= control target key end

     0   :  { %vm318_vm0 = vcmask 261120   ;;  %s1006_s1 = inlined_call_operand.vmem [shape: bf16[288,128], index: 1, kind: input, shape index: {}]   ;;  %s1007_s0 = inlined_call_operand.vmem [shape: bf16[128,288], index: 0, kind: input, shape index: {}]   ;;  %s1008_s2 = inlined_call_operand.vmem [shape: f32[1,128], index: 2, kind: input, shape index: {}]   ;;  %s1009_s3 = inlined_call_operand.vmem [shape: f32[128,128], index: 3, kind: output, shape index: {}]  }
   0x1   :  { %v718_v0 = vld [vmem:[%s1006_s1 + $0x78] sm:$0xff]   ;;  %v720_v2 = vld [vmem:[%s1006_s1 + $0x70] sm:$0xff]   ;;  %v722_v4 = vld [vmem:[%s1006_s1 + $0x68] sm:$0xff]  }
   0x2   :  { %v719_v1 = vld [vmem:[%s1006_s1 + $0x38] sm:$0xff]   ;;  %608 = vmatprep.subr.bf16.mxu0 %v718_v0  ;;  %702 = vmatprep.subr.bf16.mxu1 %v718_v0  ;;  %v721_v3 = vld [vmem:[%s1006_s1 + $0x30] sm:$0xff]   ;;  %v723_v5 = vld [vmem:[%s1006_s1 + $0x28] sm:$0xff]  }
   0x3   :  { %609 = vmatpush3.bf16.msra.mxu0 %v719_v1  ;;  %710 = vmatpush3.bf16.msra.mxu1 %v719_v1  ;;  %v724_v6 = vld [vmem:[%s1006_s1 + $0x60] sm:$0xff]   ;;  %v726_v8 = vld [vmem:[%s1006_s1 + $0x58] sm:$0xff]   ;;  %v728_v10 = vld [vmem:[%s1006_s1 + $0x50] sm:$0xff]  }
   0x4   :  { %610 = vmatprep.subr.bf16.mxu0 %v720_v2  ;;  %703 = vmatprep.subr.bf16.mxu1 %v720_v2  ;;  %v725_v7 = vld [vmem:[%s1006_s1 + $0x20] sm:$0xff]   ;;  %v727_v9 = vld [vmem:[%s1006_s1 + $0x18] sm:$0xff]   ;;  %v729_v13 = vld [vmem:[%s1006_s1 + $0x10] sm:$0xff]  }
   0x5   :  { %v736_v11 = vld [vmem:[%s1007_s0 + $0x4] ss:$12 sps:$4 sm:$0xff]   ;;  %v739_v12 = vld [vmem:[%s1007_s0 + $0x94] ss:$12 sps:$4 sm:$0xff]   ;;  %v730_v14 = vld [vmem:[%s1006_s1 + $0x48] sm:$0xff]  }
   0x6   :  { %375 = vmatprep.mubr.bf16.mxu0 %v736_v11  ;;  %423 = vmatprep.mubr.bf16.mxu1 %v739_v12  ;;  %v731_v15 = vld [vmem:[%s1006_s1 + $0x8] sm:$0xff]   ;;  %v732_v16 = vld [vmem:[%s1006_s1 + $0x40] sm:$0xff]   ;;  %v737_v20 = vld [vmem:[%s1007_s0 + $0x90] ss:$12 sps:$4 sm:$0xff]  }
   0x7   :  { %611 = vmatpush3.bf16.msra.mxu0 %v721_v3  ;;  %711 = vmatpush3.bf16.msra.mxu1 %v721_v3  ;;  %v733_v17 = vld [vmem:[%s1006_s1] sm:$0xff]   ;;  %v740_v19 = vld [vmem:[%s1006_s1 + $0x88] sm:$0xff]   ;;  %v751_v28 = vld [vmem:[%s1007_s0 + $0x30] ss:$12 sps:$4 sm:$0xff]  }
   0x8   :  { %612 = vmatprep.subr.bf16.mxu0 %v722_v4  ;;  %704 = vmatprep.subr.bf16.mxu1 %v722_v4  ;;  %v734_v18 = vld [vmem:[%s1007_s0] ss:$12 sps:$4 sm:$0xff]   ;;  %v741_v21 = vld [vmem:[%s1007_s0 + $0x1c] ss:$12 sps:$4 sm:$0xff]   ;;  %v745_v24 = vld [vmem:[%s1007_s0 + $0x18] ss:$12 sps:$4 sm:$0xff]  }
   0x9   :  { %v743_v22 = vld [vmem:[%s1007_s0 + $0xac] ss:$12 sps:$4 sm:$0xff]   ;;  %v747_v23 = vld [vmem:[%s1006_s1 + $0x80] sm:$0xff]   ;;  %v746_v25 = vld [vmem:[%s1007_s0 + $0xa8] ss:$12 sps:$4 sm:$0xff]  }
   0xa   :  { %v748_v26 = vld [vmem:[%s1007_s0 + $0x34] ss:$12 sps:$4 sm:$0xff]   ;;  %v753_v30 = vld [vmem:[%s1007_s0 + $0x4c] ss:$12 sps:$4 sm:$0xff]   ;;  %v757_v33 = vld [vmem:[%s1007_s0 + $0x50] ss:$12 sps:$4 sm:$0xff]  }
   0xb   :  { %613 = vmatpush3.bf16.msra.mxu0 %v723_v5  ;;  %712 = vmatpush3.bf16.msra.mxu1 %v723_v5  ;;  %v750_v27 = vld [vmem:[%s1007_s0 + $0x8] ss:$12 sps:$4 sm:$0xff]   ;;  %v752_v29 = vld [vmem:[%s1007_s0 + $0x20] ss:$12 sps:$4 sm:$0xff]   ;;  %v755_v31 = vld [vmem:[%s1007_s0 + $0x38] ss:$12 sps:$4 sm:$0xff]  }
   0xc   :  { %614 = vmatprep.subr.bf16.mxu0 %v724_v6  ;;  %705 = vmatprep.subr.bf16.mxu1 %v724_v6  ;;  %v756_v32 = vld [vmem:[%s1007_s0 + $0x48] ss:$12 sps:$4 sm:$0xff]   ;;  %v758_v34 = vld [vmem:[%s1007_s0 + $0x64] ss:$12 sps:$4 sm:$0xff]   ;;  %v761_v36 = vld [vmem:[%s1007_s0 + $0x60] ss:$12 sps:$4 sm:$0xff]  }
   0xd   :  { %v760_v35 = vld [vmem:[%s1007_s0 + $0x68] ss:$12 sps:$4 sm:$0xff]   ;;  %v762_v37 = vld [vmem:[%s1007_s0 + $0x80] ss:$12 sps:$4 sm:$0xff]   ;;  %v765_v39 = vld [vmem:[%s1007_s0 + $0x98] ss:$12 sps:$4 sm:$0xff]  }
   0xe   :  { %v763_v38 = vld [vmem:[%s1007_s0 + $0x7c] ss:$12 sps:$4 sm:$0xff]   ;;  %v766_v40 = vld [vmem:[%s1007_s0 + $0x78] ss:$12 sps:$4 sm:$0xff]   ;;  %v935_v60 = vld [vmem:[%s1008_s2] ss:$0 sm:$0xff] }
   0xf   :  { %615 = vmatpush3.bf16.msra.mxu0 %v725_v7  ;;  %713 = vmatpush3.bf16.msra.mxu1 %v725_v7  ;;  %v767_v41 = vld [vmem:[%s1007_s0 + $0xb0] ss:$12 sps:$4 sm:$0xff]  }
  0x10   :  { %616 = vmatprep.subr.bf16.mxu0 %v726_v8  ;;  %706 = vmatprep.subr.bf16.mxu1 %v726_v8 }
  0x13   :  { %617 = vmatpush3.bf16.msra.mxu0 %v727_v9  ;;  %714 = vmatpush3.bf16.msra.mxu1 %v727_v9 }
  0x14   :  { %618 = vmatprep.subr.bf16.mxu0 %v728_v10  ;;  %707 = vmatprep.subr.bf16.mxu1 %v728_v10 }
  0x17   :  { %619 = vmatpush3.bf16.msra.mxu0 %v729_v13  ;;  %715 = vmatpush3.bf16.msra.mxu1 %v729_v13 }
  0x18   :  { %620 = vmatprep.subr.bf16.mxu0 %v730_v14  ;;  %708 = vmatprep.subr.bf16.mxu1 %v730_v14 }
  0x1b   :  { %621 = vmatpush3.bf16.msra.mxu0 %v731_v15  ;;  %716 = vmatpush3.bf16.msra.mxu1 %v731_v15 }
  0x1c   :  { %622 = vmatprep.subr.bf16.mxu0 %v732_v16  ;;  %709 = vmatprep.subr.bf16.mxu1 %v732_v16 }
  0x1f   :  { %623 = vmatpush3.bf16.msra.mxu0 %v733_v17  ;;  %717 = vmatpush3.bf16.msra.mxu1 %v733_v17 }
  0x20   :  { %682 = vmatprep.subr.bf16.mxu1 %v740_v19 }
  0x22   :  { %376 = vmatmul.mubr.bf16.vlgmr.msra.gmra.mxu0 %v734_v18  ;;  %424 = vmatmul.mubr.bf16.vlgmr.msra.gmra.mxu1 %v737_v20 }
  0x23   :  { %683 = vmatpush3.bf16.msra.mxu1 %v740_v19  ;;  %383 = vmatprep.mubr.bf16.mxu0 %v741_v21 }
  0x24   :  { %431 = vmatprep.mubr.bf16.mxu1 %v743_v22  ;;  %684 = vmatprep.subr.bf16.mxu1 %v747_v23 }
  0x27   :  { %685 = vmatpush3.bf16.msra.mxu1 %v747_v23 }
  0x2a   :  { %384 = vmatmul.mubr.bf16.gmra.mxu0 %v745_v24  ;;  %432 = vmatmul.mubr.bf16.gmra.mxu1 %v746_v25 }
  0x2b   :  { %391 = vmatprep.mubr.bf16.mxu0 %v748_v26  ;;  %686 = vmatprep.mubr.msk.bf16.mxu1 %vm318_vm0, %v750_v27 }
  0x32   :  { %392 = vmatmul.mubr.bf16.gmra.mxu0 %v751_v28  ;;  %687 = vmatmul.mubr.msk.bf16.vlgmr.msra.gmra.mxu1 %vm318_vm0, %v752_v29 }
  0x33   :  { %399 = vmatprep.mubr.bf16.mxu0 %v753_v30  ;;  %690 = vmatprep.mubr.msk.bf16.mxu1 %vm318_vm0, %v755_v31 }
  0x3a   :  { %400 = vmatmul.mubr.bf16.gmra.mxu0 %v756_v32  ;;  %691 = vmatmul.mubr.msk.bf16.gmra.mxu1 %vm318_vm0, %v757_v33 }
  0x3b   :  { %407 = vmatprep.mubr.bf16.mxu0 %v758_v34  ;;  %694 = vmatprep.mubr.msk.bf16.mxu1 %vm318_vm0, %v760_v35 }
  0x42   :  { %408 = vmatmul.mubr.bf16.gmra.mxu0 %v761_v36  ;;  %695 = vmatmul.mubr.msk.bf16.gmra.mxu1 %vm318_vm0, %v762_v37 }
  0x43   :  { %415 = vmatprep.mubr.bf16.mxu0 %v763_v38  ;;  %698 = vmatprep.mubr.msk.bf16.mxu1 %vm318_vm0, %v765_v39 }
  0x4a   :  { %416 = vmatmul.mubr.bf16.gmra.mxu0 %v766_v40  ;;  %699 = vmatmul.mubr.msk.bf16.gmra.mxu1 %vm318_vm0, %v767_v41 }
  0xe2   :  { %v624_v42 = vpop.f32.mrf.mxu0  ;;  %v922_v43 = vpop.f32.mrf.mxu1 }
  0xe4   :  { %v625_v44 = vpop.f32.mrf.mxu0  ;;  %v924_v45 = vpop.f32.mrf.mxu1 }
  0xe5   :  { %v626_v57 = vadd.f32 %v625_v44, %v624_v42  ;;  %v662_v44 = vadd.f32 %v924_v45, %v922_v43 }
  0xe6   :  { %v627_v46 = vpop.f32.mrf.mxu0  ;;  %v926_v47 = vpop.f32.mrf.mxu1 }
  0xe7   :  { %v378_v3 = vadd.f32 %v626_v57, %v935_v60 }
  0xe8   :  { %v628_v48 = vpop.f32.mrf.mxu0  ;;  %v928_v49 = vpop.f32.mrf.mxu1 }
  0xe9   :  { %v629_v1 = vadd.f32 %v628_v48, %v627_v46 }
  0xea   :  { %v630_v50 = vpop.f32.mrf.mxu0  ;;  %v666_v51 = vpop.f32.mrf.mxu1 }
  0xeb   :  { %v381_v12 = vadd.f32 %v629_v1, %v935_v60 }
  0xec   :  { %v631_v52 = vpop.f32.mrf.mxu0  ;;  %v667_v53 = vpop.f32.mrf.mxu1 }
  0xed   :  { %v632_v54 = vadd.f32 %v631_v52, %v630_v50  ;;  %v668_v38 = vadd.f32 %v667_v53, %v666_v51 }
  0xee   :  { %v633_v55 = vpop.f32.mrf.mxu0  ;;  %v930_v56 = vpop.f32.mrf.mxu1 }
  0xef   :  { %v386_v62 = vadd.f32 %v632_v54, %v935_v60  ;;  %v434_v51 = vadd.f32 %v668_v38, %v935_v60 }
  0xf0   :  { %v634_v58 = vpop.f32.mrf.mxu0  ;;  %v670_v59 = vpop.f32.mrf.mxu1 }
  0xf1   :  { %v635_v61 = vadd.f32 %v634_v58, %v633_v55  ;;  %v671_v52 = vadd.f32 %v670_v59, %v930_v56  ;;  %v665_v58 = vadd.f32 %v928_v49, %v926_v47 }
  0xf2   :  { %v636_v63 = vpop.f32.mrf.mxu0  ;;  %v688_v0 = vpop.f32.mrf.mxu1 }
  0xf3   :  { %v483_v2 = vadd.f32 %v688_v0, %v386_v62  ;;  %v389_v7 = vadd.f32 %v635_v61, %v935_v60  ;;  %v426_v61 = vadd.f32 %v662_v44, %v935_v60  ;;  %v437_v47 = vadd.f32 %v671_v52, %v935_v60 }
  0xf4   :  { %v637_v4 = vpop.f32.mrf.mxu0  ;;  %v474_v5 = vpop.f32.mrf.mxu1 }
  0xf5   :  { %539 = vst [vmem:[%s1009_s3 + $0x10] sm:$0xff] %v483_v2  ;;  %v475_v6 = vadd.f32 %v474_v5, %v378_v3  ;;  %v638_v10 = vadd.f32 %v637_v4, %v636_v63  ;;  %v429_v4 = vadd.f32 %v665_v58, %v935_v60 }
  0xf6   :  { %v639_v8 = vpop.f32.mrf.mxu0  ;;  %v689_v9 = vpop.f32.mrf.mxu1 }
  0xf7   :  { %537 = vst [vmem:[%s1009_s3] sm:$0xff] %v475_v6  ;;  %v486_v11 = vadd.f32 %v689_v9, %v389_v7  ;;  %v394_v19 = vadd.f32 %v638_v10, %v935_v60 }
  0xf8   :  { %v640_v13 = vpop.f32.mrf.mxu0  ;;  %v477_v14 = vpop.f32.mrf.mxu1 }
  0xf9   :  { %540 = vst [vmem:[%s1009_s3 + $0x18] sm:$0xff] %v486_v11  ;;  %v478_v15 = vadd.f32 %v477_v14, %v381_v12  ;;  %v641_v18 = vadd.f32 %v640_v13, %v639_v8 }
  0xfa   :  { %v642_v16 = vpop.f32.mrf.mxu0  ;;  %v692_v17 = vpop.f32.mrf.mxu1 }
  0xfb   :  { %538 = vst [vmem:[%s1009_s3 + $0x8] sm:$0xff] %v478_v15  ;;  %v397_v27 = vadd.f32 %v641_v18, %v935_v60 }
  0xfc   :  { %v643_v20 = vpop.f32.mrf.mxu0  ;;  %v490_v21 = vpop.f32.mrf.mxu1 }
  0xfd   :  { %v644_v22 = vadd.f32 %v643_v20, %v642_v16  ;;  %v491_v23 = vadd.f32 %v490_v21, %v394_v19 }
  0xfe   :  { %v645_v24 = vpop.f32.mrf.mxu0  ;;  %v693_v25 = vpop.f32.mrf.mxu1 }
  0xff   :  { %v402_v26 = vadd.f32 %v644_v22, %v935_v60  ;;  %541 = vst [vmem:[%s1009_s3 + $0x20] sm:$0xff] %v491_v23 }
 0x100   :  { %v646_v28 = vpop.f32.mrf.mxu0  ;;  %v493_v29 = vpop.f32.mrf.mxu1 }
 0x101   :  { %v499_v30 = vadd.f32 %v692_v17, %v402_v26  ;;  %v647_v31 = vadd.f32 %v646_v28, %v645_v24  ;;  %v494_v32 = vadd.f32 %v493_v29, %v397_v27 }
 0x102   :  { %v648_v33 = vpop.f32.mrf.mxu0  ;;  %v696_v34 = vpop.f32.mrf.mxu1 }
 0x103   :  { %543 = vst [vmem:[%s1009_s3 + $0x30] sm:$0xff] %v499_v30  ;;  %v405_v35 = vadd.f32 %v647_v31, %v935_v60  ;;  %542 = vst [vmem:[%s1009_s3 + $0x28] sm:$0xff] %v494_v32 }
 0x104   :  { %v649_v36 = vpop.f32.mrf.mxu0  ;;  %v506_v37 = vpop.f32.mrf.mxu1 }
 0x105   :  { %v502_v39 = vadd.f32 %v693_v25, %v405_v35  ;;  %v650_v40 = vadd.f32 %v649_v36, %v648_v33 }
 0x106   :  { %v651_v41 = vpop.f32.mrf.mxu0  ;;  %v697_v42 = vpop.f32.mrf.mxu1 }
 0x107   :  { %544 = vst [vmem:[%s1009_s3 + $0x38] sm:$0xff] %v502_v39  ;;  %v410_v46 = vadd.f32 %v650_v40, %v935_v60 }
 0x108   :  { %v652_v48 = vpop.f32.mrf.mxu0  ;;  %v509_v50 = vpop.f32.mrf.mxu1 }
 0x109   :  { %v507_v54 = vadd.f32 %v506_v37, %v410_v46  ;;  %v653_v55 = vadd.f32 %v652_v48, %v651_v41 }
 0x10a   :  { %v654_v53 = vpop.f32.mrf.mxu0  ;;  %v700_v57 = vpop.f32.mrf.mxu1 }
 0x10b   :  { %545 = vst [vmem:[%s1009_s3 + $0x40] sm:$0xff] %v507_v54  ;;  %v413_v43 = vadd.f32 %v653_v55, %v935_v60  ;;  %v531_v45 = vadd.f32 %v700_v57, %v434_v51 }
 0x10c   :  { %v655_v62 = vpop.f32.mrf.mxu0  ;;  %v522_v56 = vpop.f32.mrf.mxu1 }
 0x10d   :  { %v510_v59 = vadd.f32 %v509_v50, %v413_v43  ;;  %551 = vst [vmem:[%s1009_s3 + $0x70] sm:$0xff] %v531_v45  ;;  %v656_v63 = vadd.f32 %v655_v62, %v654_v53  ;;  %v523_v0 = vadd.f32 %v522_v56, %v426_v61 }
 0x10e   :  { %v657_v49 = vpop.f32.mrf.mxu0  ;;  %v701_v1 = vpop.f32.mrf.mxu1 }
 0x10f   :  { %546 = vst [vmem:[%s1009_s3 + $0x48] sm:$0xff] %v510_v59  ;;  %v418_v2 = vadd.f32 %v656_v63, %v935_v60  ;;  %549 = vst [vmem:[%s1009_s3 + $0x60] sm:$0xff] %v523_v0  ;;  %v534_v3 = vadd.f32 %v701_v1, %v437_v47 }
 0x110   :  { %v658_v5 = vpop.f32.mrf.mxu0  ;;  %v525_v6 = vpop.f32.mrf.mxu1 }
 0x111   :  { %v515_v7 = vadd.f32 %v696_v34, %v418_v2  ;;  %552 = vst [vmem:[%s1009_s3 + $0x78] sm:$0xff] %v534_v3  ;;  %v659_v8 = vadd.f32 %v658_v5, %v657_v49  ;;  %v526_v9 = vadd.f32 %v525_v6, %v429_v4 }
 0x113   :  { %547 = vst [vmem:[%s1009_s3 + $0x50] sm:$0xff] %v515_v7  ;;  %v421_v10 = vadd.f32 %v659_v8, %v935_v60  ;;  %550 = vst [vmem:[%s1009_s3 + $0x68] sm:$0xff] %v526_v9 }
 0x115   :  { %v518_v11 = vadd.f32 %v697_v42, %v421_v10 }
 0x117   :  { %548 = vst [vmem:[%s1009_s3 + $0x58] sm:$0xff] %v518_v11 }

// kernel: _forward_impl.34
= control target key start
LH: loop header
LB: loop body
LE: loop exit
PB: predicated region body
PF: predicated region fallthrough
CT: control target
= control target key end

     0   :  { %v790_v0 = vmov 0   ;;  %vm187_vm0 = vcmask 130048   ;;  %s791_s21 = smov 120   ;;  %vm501_vm1 = vcmask 60416   ;;  %vm582_vm2 = vcmask 64512   ;;  %s1118_s2 = inlined_call_operand.vmem [shape: bf16[144,128], index: 2, kind: input, shape index: {}]   ;;  %s1119_s0 = inlined_call_operand.vmem [shape: bf16[128,144], index: 0, kind: input, shape index: {}]   ;;  %s1120_s3 = inlined_call_operand.vmem [shape: f32[1,128], index: 3, kind: input, shape index: {}]   ;;  %s1121_s1 = inlined_call_operand.vmem [shape: f32[128,8], index: 1, kind: input, shape index: {}]   ;;  %s1122_s4 = inlined_call_operand.vmem [shape: bf16[128,8], index: 4, kind: output, shape index: {0}]   ;;  %s1123_s5 = inlined_call_operand.vmem [shape: f32[128,8], index: 5, kind: output, shape index: {1}]  }
   0x1   :  { %212 = vmatprep.subr.bf16.mxu0 %v790_v0  ;;  %673 = vmatprep.subr.bf16.mxu1 %v790_v0  ;;  %v693_v1 = vld [vmem:[%s1118_s2 + $0x38] sm:$0xff]   ;;  %v694_v2 = vld [vmem:[%s1118_s2 + $0x30] sm:$0xff]   ;;  %v695_v3 = vld [vmem:[%s1118_s2 + $0x28] sm:$0xff]  }
   0x2   :  { %213 = vmatpush1.bf16.msra.mxu0 %v693_v1  ;;  %682 = vmatpush1.bf16.msra.mxu1 %v693_v1  ;;  %v696_v4 = vld [vmem:[%s1118_s2 + $0x20] sm:$0xff]   ;;  %v697_v7 = vld [vmem:[%s1118_s2 + $0x18] sm:$0xff]   ;;  %v698_v8 = vld [vmem:[%s1118_s2 + $0x10] sm:$0xff]  }
   0x3   :  { %214 = vmatprep.subr.bf16.mxu0 %v790_v0  ;;  %674 = vmatprep.subr.bf16.mxu1 %v790_v0  ;;  %v704_v5 = vld [vmem:[%s1119_s0 + $0x4] ss:$8 sps:$4 sm:$0xff]   ;;  %v702_v12 = vld [vmem:[%s1119_s0] ss:$8 sps:$4 sm:$0xff]   ;;  %v708_v14 = vld [vmem:[%s1119_s0 + $0x14] ss:$8 sps:$4 sm:$0xff]  }
   0x4   :  { %v707_v6 = vld [vmem:[%s1119_s0 + $0x44] ss:$8 sps:$4 sm:$0xff]   ;;  %633 = vmatprep.mubr.msk.bf16.mxu0 %vm187_vm0, %v704_v5  ;;  %v705_v13 = vld [vmem:[%s1119_s0 + $0x40] ss:$8 sps:$4 sm:$0xff]   ;;  %v710_v15 = vld [vmem:[%s1119_s0 + $0x54] ss:$8 sps:$4 sm:$0xff]  }
   0x5   :  { %637 = vmatprep.mubr.msk.bf16.mxu1 %vm187_vm0, %v707_v6  ;;  %v699_v9 = vld [vmem:[%s1118_s2 + $0x8] sm:$0xff]   ;;  %v700_v10 = vld [vmem:[%s1118_s2] sm:$0xff]   ;;  %v712_v16 = vld [vmem:[%s1119_s0 + $0x10] ss:$8 sps:$4 sm:$0xff]  }
   0x6   :  { %215 = vmatpush1.bf16.msra.mxu0 %v694_v2  ;;  %683 = vmatpush1.bf16.msra.mxu1 %v694_v2  ;;  %v701_v11 = vld [vmem:[%s1118_s2 + $0x40] sm:$0xff]   ;;  %v713_v17 = vld [vmem:[%s1119_s0 + $0x50] ss:$8 sps:$4 sm:$0xff]   ;;  %v720_v22 = vld [vmem:[%s1119_s0 + $0x34] ss:$8 sps:$4 sm:$0xff]  }
   0x7   :  { %216 = vmatprep.subr.bf16.mxu0 %v790_v0  ;;  %675 = vmatprep.subr.bf16.mxu1 %v790_v0  ;;  %v714_v18 = vld [vmem:[%s1119_s0 + $0x24] ss:$8 sps:$4 sm:$0xff]   ;;  %v718_v20 = vld [vmem:[%s1119_s0 + $0x20] ss:$8 sps:$4 sm:$0xff]   ;;  %v722_v23 = vld [vmem:[%s1119_s0 + $0x74] ss:$8 sps:$4 sm:$0xff]  }
   0x8   :  { %v716_v19 = vld [vmem:[%s1119_s0 + $0x64] ss:$8 sps:$4 sm:$0xff]   ;;  %v719_v21 = vld [vmem:[%s1119_s0 + $0x60] ss:$8 sps:$4 sm:$0xff]   ;;  %v724_v24 = vld [vmem:[%s1119_s0 + $0x30] ss:$8 sps:$4 sm:$0xff]  }
   0x9   :  { %v725_v25 = vld [vmem:[%s1119_s0 + $0x70] ss:$8 sps:$4 sm:$0xff]   ;;  %v908_v26 = vld [vmem:[%s1120_s3] ss:$0 sm:$0xff] }
   0xa   :  { %217 = vmatpush1.bf16.msra.mxu0 %v695_v3  ;;  %684 = vmatpush1.bf16.msra.mxu1 %v695_v3 }
   0xb   :  { %218 = vmatprep.subr.bf16.mxu0 %v790_v0  ;;  %676 = vmatprep.subr.bf16.mxu1 %v790_v0 }
   0xe   :  { %219 = vmatpush1.bf16.msra.mxu0 %v696_v4  ;;  %685 = vmatpush1.bf16.msra.mxu1 %v696_v4 }
   0xf   :  { %220 = vmatprep.subr.bf16.mxu0 %v790_v0  ;;  %677 = vmatprep.subr.bf16.mxu1 %v790_v0 }
  0x12   :  { %221 = vmatpush1.bf16.msra.mxu0 %v697_v7  ;;  %686 = vmatpush1.bf16.msra.mxu1 %v697_v7 }
  0x13   :  { %222 = vmatprep.subr.bf16.mxu0 %v790_v0  ;;  %678 = vmatprep.subr.bf16.mxu1 %v790_v0 }
  0x16   :  { %223 = vmatpush1.bf16.msra.mxu0 %v698_v8  ;;  %687 = vmatpush1.bf16.msra.mxu1 %v698_v8 }
  0x17   :  { %224 = vmatprep.subr.bf16.mxu0 %v790_v0  ;;  %679 = vmatprep.subr.bf16.mxu1 %v790_v0 }
  0x1a   :  { %225 = vmatpush1.bf16.msra.mxu0 %v699_v9  ;;  %688 = vmatpush1.bf16.msra.mxu1 %v699_v9 }
  0x1b   :  { %226 = vmatprep.subr.bf16.mxu0 %v790_v0  ;;  %680 = vmatprep.subr.bf16.mxu1 %v790_v0 }
  0x1e   :  { %227 = vmatpush1.bf16.msra.mxu0 %v700_v10  ;;  %689 = vmatpush1.bf16.msra.mxu1 %v700_v10 }
  0x1f   :  { %242 = vmatprep.subr.bf16.mxu0 %v790_v0  ;;  %681 = vmatprep.subr.bf16.mxu1 %v790_v0 }
  0x22   :  { %243 = vmatpush2.bf16.msra.mxu0 %v701_v11  ;;  %690 = vmatpush2.bf16.msra.mxu1 %v701_v11 }
  0x25   :  { %245 = vmatmul.mubr.bf16.vlgmr.msra.gmra.mxu0 %v702_v12  ;;  %277 = vmatmul.mubr.bf16.vlgmr.msra.gmra.mxu1 %v705_v13 }
  0x26   :  { %634 = vmatprep.mubr.msk.bf16.mxu0 %vm187_vm0, %v708_v14  ;;  %638 = vmatprep.mubr.msk.bf16.mxu1 %vm187_vm0, %v710_v15 }
  0x2d   :  { %253 = vmatmul.mubr.bf16.gmra.mxu0 %v712_v16  ;;  %285 = vmatmul.mubr.bf16.gmra.mxu1 %v713_v17 }
  0x2e   :  { %635 = vmatprep.mubr.msk.bf16.mxu0 %vm187_vm0, %v714_v18  ;;  %639 = vmatprep.mubr.msk.bf16.mxu1 %vm187_vm0, %v716_v19 }
  0x35   :  { %261 = vmatmul.mubr.bf16.gmra.mxu0 %v718_v20  ;;  %293 = vmatmul.mubr.bf16.gmra.mxu1 %v719_v21 }
  0x36   :  { %636 = vmatprep.mubr.msk.bf16.mxu0 %vm187_vm0, %v720_v22  ;;  %640 = vmatprep.mubr.msk.bf16.mxu1 %vm187_vm0, %v722_v23 }
  0x3d   :  { %269 = vmatmul.mubr.bf16.gmra.mxu0 %v724_v24  ;;  %301 = vmatmul.mubr.bf16.gmra.mxu1 %v725_v25 }
  0xe5   :  { %v246_v27 = vpop.f32.mrf.mxu0  ;;  %v278_v28 = vpop.f32.mrf.mxu1 }
  0xe6   :  { %v247_v29 = vadd.f32 %v908_v26, %v246_v27  ;;  %v279_v30 = vadd.f32 %v908_v26, %v278_v28 }
  0xe7   :  { %v248_v31 = vpop.f32.mrf.mxu0  ;;  %v280_v32 = vpop.f32.mrf.mxu1 }
  0xe8   :  { %v309_v33 = vsub.f32 0.0, %v247_v29  ;;  %v317_v34 = vsub.f32 0.0, %v279_v30 }
  0xe9   :  { %v249_v35 = vpop.f32.mrf.mxu0  ;;  %v281_v36 = vpop.f32.mrf.mxu1 }
  0xea   :  { %v325_v37 = vmul.f32 1.442695, %v309_v33  ;;  %v341_v38 = vmul.f32 1.442695, %v317_v34  ;;  %v250_v39 = vadd.f32 %v908_v26, %v249_v35  ;;  %v282_v40 = vadd.f32 %v908_v26, %v281_v36 }
  0xeb   :  { %v251_v41 = vpop.f32.mrf.mxu0  ;;  %v283_v42 = vpop.f32.mrf.mxu1 }
  0xec   :  { %726 = vpow2.f32 %v325_v37  ;;  %v310_v43 = vsub.f32 0.0, %v250_v39  ;;  %v318_v44 = vsub.f32 0.0, %v282_v40 }
  0xed   :  { %728 = vpow2.f32 %v341_v38  ;;  %v254_v45 = vpop.f32.mrf.mxu0  ;;  %v286_v46 = vpop.f32.mrf.mxu1 }
  0xee   :  { %v327_v47 = vmul.f32 1.442695, %v310_v43  ;;  %v343_v48 = vmul.f32 1.442695, %v318_v44  ;;  %v255_v49 = vadd.f32 %v908_v26, %v254_v45  ;;  %v287_v50 = vadd.f32 %v908_v26, %v286_v46 }
  0xef   :  { %v256_v51 = vpop.f32.mrf.mxu0  ;;  %v288_v52 = vpop.f32.mrf.mxu1 }
  0xf0   :  { %730 = vpow2.f32 %v327_v47  ;;  %v311_v53 = vsub.f32 0.0, %v255_v49  ;;  %v319_v54 = vsub.f32 0.0, %v287_v50 }
  0xf1   :  { %732 = vpow2.f32 %v343_v48  ;;  %v257_v55 = vpop.f32.mrf.mxu0  ;;  %v289_v56 = vpop.f32.mrf.mxu1 }
  0xf2   :  { %v329_v57 = vmul.f32 1.442695, %v311_v53  ;;  %v345_v58 = vmul.f32 1.442695, %v319_v54  ;;  %v258_v59 = vadd.f32 %v908_v26, %v257_v55  ;;  %v290_v60 = vadd.f32 %v908_v26, %v289_v56 }
  0xf3   :  { %v259_v61 = vpop.f32.mrf.mxu0  ;;  %v291_v62 = vpop.f32.mrf.mxu1 }
  0xf4   :  { %734 = vpow2.f32 %v329_v57  ;;  %v312_v63 = vsub.f32 0.0, %v258_v59  ;;  %v320_v0 = vsub.f32 0.0, %v290_v60 }
  0xf5   :  { %736 = vpow2.f32 %v345_v58  ;;  %v262_v1 = vpop.f32.mrf.mxu0  ;;  %v294_v2 = vpop.f32.mrf.mxu1  ;;  %v405_v58 = vld [vmem:[%s1121_s1] sm:$0xff] }
  0xf6   :  { %v331_v3 = vmul.f32 1.442695, %v312_v63  ;;  %v347_v4 = vmul.f32 1.442695, %v320_v0  ;;  %v263_v5 = vadd.f32 %v908_v26, %v262_v1  ;;  %v295_v6 = vadd.f32 %v908_v26, %v294_v2  ;;  %v406_v2 = vld [vmem:[%s1121_s1 + $0x8] sm:$0xff] }
  0xf7   :  { %v264_v7 = vpop.f32.mrf.mxu0  ;;  %v296_v8 = vpop.f32.mrf.mxu1 }
  0xf8   :  { %738 = vpow2.f32 %v331_v3  ;;  %v313_v9 = vsub.f32 0.0, %v263_v5  ;;  %v321_v10 = vsub.f32 0.0, %v295_v6  ;;  %v414_v5 = vld [vmem:[%s1121_s1 + $0x48] sm:$0xff] }
  0xf9   :  { %v727_v11 = vpop.eup %726  ;;  %740 = vpow2.f32 %v347_v4  ;;  %v265_v12 = vpop.f32.mrf.mxu0 }
  0xfa   :  { %v297_v13 = vpop.f32.mrf.mxu1  ;;  %v729_v14 = vpop.eup %728  ;;  %v357_v15 = vadd.f32 1.0, %v727_v11  ;;  %v333_v16 = vmul.f32 1.442695, %v313_v9  ;;  %v266_v17 = vadd.f32 %v908_v26, %v265_v12  ;;  %v349_v19 = vmul.f32 1.442695, %v321_v10 }
  0xfb   :  { %v365_v18 = vadd.f32 1.0, %v729_v14  ;;  %v298_v20 = vadd.f32 %v908_v26, %v297_v13  ;;  %v267_v21 = vpop.f32.mrf.mxu0  ;;  %v407_v14 = vld [vmem:[%s1121_s1 + $0x10] sm:$0xff] }
  0xfc   :  { %v299_v22 = vpop.f32.mrf.mxu1  ;;  %742 = vrcp.f32 %v357_v15  ;;  %v314_v23 = vsub.f32 0.0, %v266_v17  ;;  %v415_v17 = vld [vmem:[%s1121_s1 + $0x50] sm:$0xff] }
  0xfd   :  { %v731_v24 = vpop.eup %730  ;;  %744 = vrcp.f32 %v365_v18  ;;  %v322_v25 = vsub.f32 0.0, %v298_v20  ;;  %v270_v27 = vpop.f32.mrf.mxu0 }
  0xfe   :  { %v302_v28 = vpop.f32.mrf.mxu1  ;;  %v733_v29 = vpop.eup %732  ;;  %v358_v30 = vadd.f32 1.0, %v731_v24  ;;  %746 = vpow2.f32 %v333_v16  ;;  %v335_v31 = vmul.f32 1.442695, %v314_v23  ;;  %v271_v32 = vadd.f32 %v908_v26, %v270_v27  ;;  %v408_v27 = vld [vmem:[%s1121_s1 + $0x18] sm:$0xff] }
  0xff   :  { %v366_v33 = vadd.f32 1.0, %v733_v29  ;;  %748 = vpow2.f32 %v349_v19  ;;  %v351_v34 = vmul.f32 1.442695, %v322_v25  ;;  %v303_v35 = vadd.f32 %v908_v26, %v302_v28  ;;  %v272_v36 = vpop.f32.mrf.mxu0 }
 0x100   :  { %v304_v37 = vpop.f32.mrf.mxu1  ;;  %750 = vrcp.f32 %v358_v30  ;;  %v315_v38 = vsub.f32 0.0, %v271_v32  ;;  %v416_v30 = vld [vmem:[%s1121_s1 + $0x58] sm:$0xff] }
 0x101   :  { %v735_v39 = vpop.eup %734  ;;  %752 = vrcp.f32 %v366_v33  ;;  %v323_v40 = vsub.f32 0.0, %v303_v35  ;;  %v273_v41 = vpop.f32.mrf.mxu0 }
 0x102   :  { %v305_v42 = vpop.f32.mrf.mxu1  ;;  %v737_v43 = vpop.eup %736  ;;  %v359_v44 = vadd.f32 1.0, %v735_v39  ;;  %754 = vpow2.f32 %v335_v31  ;;  %v337_v45 = vmul.f32 1.442695, %v315_v38  ;;  %v274_v46 = vadd.f32 %v908_v26, %v273_v41 }
 0x103   :  { %v367_v47 = vadd.f32 1.0, %v737_v43  ;;  %756 = vpow2.f32 %v351_v34  ;;  %v353_v48 = vmul.f32 1.442695, %v323_v40  ;;  %v306_v49 = vadd.f32 %v908_v26, %v305_v42  ;;  %v275_v50 = vpop.f32.mrf.mxu0  ;;  %v413_v26 = vld [vmem:[%s1121_s1 + $0x40] sm:$0xff] }
 0x104   :  { %v307_v51 = vpop.f32.mrf.mxu1  ;;  %758 = vrcp.f32 %v359_v44  ;;  %v316_v52 = vsub.f32 0.0, %v274_v46  ;;  %v409_v43 = vld [vmem:[%s1121_s1 + $0x20] sm:$0xff]  ;;  %v410_v50 = vld [vmem:[%s1121_s1 + $0x28] sm:$0xff] }
 0x105   :  { %v739_v53 = vpop.eup %738  ;;  %760 = vrcp.f32 %v367_v47  ;;  %v324_v54 = vsub.f32 0.0, %v306_v49 }
 0x106   :  { %v741_v55 = vpop.eup %740  ;;  %v360_v56 = vadd.f32 1.0, %v739_v53  ;;  %762 = vpow2.f32 %v337_v45  ;;  %v339_v57 = vmul.f32 1.442695, %v316_v52  ;;  %v417_v45 = vld [vmem:[%s1121_s1 + $0x60] sm:$0xff]  ;;  %v418_v52 = vld [vmem:[%s1121_s1 + $0x68] sm:$0xff] }
 0x107   :  { %v368_v59 = vadd.f32 1.0, %v741_v55  ;;  %764 = vpow2.f32 %v353_v48  ;;  %v355_v60 = vmul.f32 1.442695, %v324_v54 }
 0x108   :  { %766 = vrcp.f32 %v360_v56 }
 0x109   :  { %v743_v61 = vpop.eup %742  ;;  %768 = vrcp.f32 %v368_v59 }
 0x10a   :  { %v745_v62 = vpop.eup %744  ;;  %v421_v63 = vmul.f32 %v743_v61, %v405_v58  ;;  %770 = vpow2.f32 %v339_v57  ;;  %534 = vrot.lane.b32.xlu0 %v743_v61, %s791_s21  ;;  %v411_v58 = vld [vmem:[%s1121_s1 + $0x30] sm:$0xff] }
 0x10b   :  { %v747_v0 = vpop.eup %746  ;;  %v429_v1 = vmul.f32 %v745_v62, %v413_v26  ;;  %772 = vpow2.f32 %v355_v60  ;;  %v419_v60 = vld [vmem:[%s1121_s1 + $0x70] sm:$0xff] }
 0x10c   :  { %v749_v3 = vpop.eup %748  ;;  %v657_v4 = vpack.c.bf16 %v421_v63, %v421_v63  ;;  %v361_v6 = vadd.f32 1.0, %v747_v0 }
 0x10d   :  { %v751_v7 = vpop.eup %750  ;;  %v665_v8 = vpack.c.bf16 %v429_v1, %v429_v1  ;;  %v369_v9 = vadd.f32 1.0, %v749_v3  ;;  %v412_v1 = vld [vmem:[%s1121_s1 + $0x38] sm:$0xff] }
 0x10e   :  { %v753_v10 = vpop.eup %752  ;;  %502 = vst.msk [vmem:[%s1122_s4] sm:$0xf] %vm501_vm1, %v657_v4  ;;  %v422_v11 = vmul.f32 %v751_v7, %v406_v2  ;;  %774 = vrcp.f32 %v361_v6  ;;  %550 = vrot.lane.b32.xlu0 %v745_v62, %s791_s21  ;;  %v420_v3 = vld [vmem:[%s1121_s1 + $0x78] sm:$0xff] }
 0x10f   :  { %v755_v12 = vpop.eup %754  ;;  %510 = vst.msk [vmem:[%s1122_s4 + $0x20] sm:$0xf] %vm501_vm1, %v665_v8  ;;  %v430_v13 = vmul.f32 %v753_v10, %v414_v5  ;;  %776 = vrcp.f32 %v369_v9  ;;  %552 = vrot.lane.b32.xlu1 %v753_v10, %s791_s21 }
 0x110   :  { %v757_v15 = vpop.eup %756  ;;  %v658_v16 = vpack.c.bf16 %v422_v11, %v422_v11  ;;  %v362_v18 = vadd.f32 1.0, %v755_v12 }
 0x111   :  { %v759_v19 = vpop.eup %758  ;;  %v666_v20 = vpack.c.bf16 %v430_v13, %v430_v13  ;;  %v370_v21 = vadd.f32 1.0, %v757_v15 }
 0x112   :  { %v761_v22 = vpop.eup %760  ;;  %503 = vst.msk [vmem:[%s1122_s4 + $0x4] sm:$0xf] %vm501_vm1, %v658_v16  ;;  %v423_v23 = vmul.f32 %v759_v19, %v407_v14  ;;  %778 = vrcp.f32 %v362_v18  ;;  %536 = vrot.lane.b32.xlu0 %v751_v7, %s791_s21 }
 0x113   :  { %v763_v24 = vpop.eup %762  ;;  %511 = vst.msk [vmem:[%s1122_s4 + $0x24] sm:$0xf] %vm501_vm1, %v666_v20  ;;  %v431_v25 = vmul.f32 %v761_v22, %v415_v17  ;;  %780 = vrcp.f32 %v370_v21  ;;  %538 = vrot.lane.b32.xlu1 %v759_v19, %s791_s21 }
 0x114   :  { %v765_v28 = vpop.eup %764  ;;  %v659_v29 = vpack.c.bf16 %v423_v23, %v423_v23  ;;  %v363_v31 = vadd.f32 1.0, %v763_v24 }
 0x115   :  { %v767_v32 = vpop.eup %766  ;;  %v667_v33 = vpack.c.bf16 %v431_v25, %v431_v25  ;;  %v371_v34 = vadd.f32 1.0, %v765_v28 }
 0x116   :  { %v769_v35 = vpop.eup %768  ;;  %504 = vst.msk [vmem:[%s1122_s4 + $0x8] sm:$0xf] %vm501_vm1, %v659_v29  ;;  %v424_v36 = vmul.f32 %v767_v32, %v408_v27  ;;  %782 = vrcp.f32 %v363_v31  ;;  %554 = vrot.lane.b32.xlu0 %v761_v22, %s791_s21 }
 0x117   :  { %v771_v37 = vpop.eup %770  ;;  %512 = vst.msk [vmem:[%s1122_s4 + $0x28] sm:$0xf] %vm501_vm1, %v667_v33  ;;  %v432_v38 = vmul.f32 %v769_v35, %v416_v30  ;;  %784 = vrcp.f32 %v371_v34  ;;  %540 = vrot.lane.b32.xlu1 %v767_v32, %s791_s21 }
 0x118   :  { %v773_v39 = vpop.eup %772  ;;  %v660_v40 = vpack.c.bf16 %v424_v36, %v424_v36  ;;  %v364_v41 = vadd.f32 1.0, %v771_v37 }
 0x119   :  { %v668_v42 = vpack.c.bf16 %v432_v38, %v432_v38  ;;  %v372_v44 = vadd.f32 1.0, %v773_v39 }
 0x11a   :  { %505 = vst.msk [vmem:[%s1122_s4 + $0xc] sm:$0xf] %vm501_vm1, %v660_v40  ;;  %786 = vrcp.f32 %v364_v41 }
 0x11b   :  { %v775_v46 = vpop.eup %774  ;;  %513 = vst.msk [vmem:[%s1122_s4 + $0x2c] sm:$0xf] %vm501_vm1, %v668_v42  ;;  %788 = vrcp.f32 %v372_v44  ;;  %556 = vrot.lane.b32.xlu1 %v769_v35, %s791_s21 }
 0x11c   :  { %v777_v47 = vpop.eup %776  ;;  %v425_v48 = vmul.f32 %v775_v46, %v409_v43  ;;  %542 = vrot.lane.b32.xlu0 %v775_v46, %s791_s21 }
 0x11d   :  { %v433_v49 = vmul.f32 %v777_v47, %v417_v45 }
 0x11e   :  { %v661_v51 = vpack.c.bf16 %v425_v48, %v425_v48 }
 0x11f   :  { %v779_v53 = vpop.eup %778  ;;  %v669_v54 = vpack.c.bf16 %v433_v49, %v433_v49 }
 0x120   :  { %v781_v55 = vpop.eup %780  ;;  %506 = vst.msk [vmem:[%s1122_s4 + $0x10] sm:$0xf] %vm501_vm1, %v661_v51  ;;  %v426_v56 = vmul.f32 %v779_v53, %v410_v50  ;;  %544 = vrot.lane.b32.xlu1 %v779_v53, %s791_s21  ;;  %558 = vrot.lane.b32.xlu0 %v777_v47, %s791_s21 }
 0x121   :  { %514 = vst.msk [vmem:[%s1122_s4 + $0x30] sm:$0xf] %vm501_vm1, %v669_v54  ;;  %v434_v57 = vmul.f32 %v781_v55, %v418_v52 }
 0x122   :  { %v662_v59 = vpack.c.bf16 %v426_v56, %v426_v56 }
 0x123   :  { %v783_v26 = vpop.eup %782  ;;  %v670_v61 = vpack.c.bf16 %v434_v57, %v434_v57 }
 0x124   :  { %v785_v62 = vpop.eup %784  ;;  %507 = vst.msk [vmem:[%s1122_s4 + $0x14] sm:$0xf] %vm501_vm1, %v662_v59  ;;  %v427_v63 = vmul.f32 %v783_v26, %v411_v58  ;;  %560 = vrot.lane.b32.xlu1 %v781_v55, %s791_s21  ;;  %546 = vrot.lane.b32.xlu0 %v783_v26, %s791_s21 }
 0x125   :  { %515 = vst.msk [vmem:[%s1122_s4 + $0x34] sm:$0xf] %vm501_vm1, %v670_v61  ;;  %v435_v0 = vmul.f32 %v785_v62, %v419_v60 }
 0x126   :  { %v663_v2 = vpack.c.bf16 %v427_v63, %v427_v63 }
 0x127   :  { %v787_v4 = vpop.eup %786  ;;  %v671_v5 = vpack.c.bf16 %v435_v0, %v435_v0 }
 0x128   :  { %v789_v6 = vpop.eup %788  ;;  %508 = vst.msk [vmem:[%s1122_s4 + $0x18] sm:$0xf] %vm501_vm1, %v663_v2  ;;  %v428_v7 = vmul.f32 %v787_v4, %v412_v1  ;;  %548 = vrot.lane.b32.xlu1 %v787_v4, %s791_s21  ;;  %562 = vrot.lane.b32.xlu0 %v785_v62, %s791_s21 }
 0x129   :  { %516 = vst.msk [vmem:[%s1122_s4 + $0x38] sm:$0xf] %vm501_vm1, %v671_v5  ;;  %v436_v8 = vmul.f32 %v789_v6, %v420_v3 }
 0x12a   :  { %v664_v9 = vpack.c.bf16 %v428_v7, %v428_v7 }
 0x12b   :  { %v672_v10 = vpack.c.bf16 %v436_v8, %v436_v8 }
 0x12c   :  { %509 = vst.msk [vmem:[%s1122_s4 + $0x1c] sm:$0xf] %vm501_vm1, %v664_v9  ;;  %564 = vrot.lane.b32.xlu1 %v789_v6, %s791_s21 }
 0x12d   :  { %517 = vst.msk [vmem:[%s1122_s4 + $0x3c] sm:$0xf] %vm501_vm1, %v672_v10 }
 0x17c   :  { %v535_v11 = vpop.permute.xlu0 %534 }
 0x17d   :  { %583 = vst.msk [vmem:[%s1123_s5] sm:$0xff] %vm582_vm2, %v535_v11 }
 0x180   :  { %v551_v12 = vpop.permute.xlu0 %550 }
 0x181   :  { %v553_v13 = vpop.permute.xlu1 %552  ;;  %591 = vst.msk [vmem:[%s1123_s5 + $0x40] sm:$0xff] %vm582_vm2, %v551_v12 }
 0x182   :  { %592 = vst.msk [vmem:[%s1123_s5 + $0x48] sm:$0xff] %vm582_vm2, %v553_v13 }
 0x184   :  { %v537_v14 = vpop.permute.xlu0 %536 }
 0x185   :  { %v539_v15 = vpop.permute.xlu1 %538  ;;  %584 = vst.msk [vmem:[%s1123_s5 + $0x8] sm:$0xff] %vm582_vm2, %v537_v14 }
 0x186   :  { %585 = vst.msk [vmem:[%s1123_s5 + $0x10] sm:$0xff] %vm582_vm2, %v539_v15 }
 0x188   :  { %v555_v16 = vpop.permute.xlu0 %554 }
 0x189   :  { %v541_v17 = vpop.permute.xlu1 %540  ;;  %593 = vst.msk [vmem:[%s1123_s5 + $0x50] sm:$0xff] %vm582_vm2, %v555_v16 }
 0x18a   :  { %586 = vst.msk [vmem:[%s1123_s5 + $0x18] sm:$0xff] %vm582_vm2, %v541_v17 }
 0x18d   :  { %v557_v18 = vpop.permute.xlu1 %556 }
 0x18e   :  { %594 = vst.msk [vmem:[%s1123_s5 + $0x58] sm:$0xff] %vm582_vm2, %v557_v18  ;;  %v543_v19 = vpop.permute.xlu0 %542 }
 0x18f   :  { %587 = vst.msk [vmem:[%s1123_s5 + $0x20] sm:$0xff] %vm582_vm2, %v543_v19 }
 0x192   :  { %v545_v20 = vpop.permute.xlu1 %544  ;;  %v559_v21 = vpop.permute.xlu0 %558 }
 0x193   :  { %588 = vst.msk [vmem:[%s1123_s5 + $0x28] sm:$0xff] %vm582_vm2, %v545_v20  ;;  %595 = vst.msk [vmem:[%s1123_s5 + $0x60] sm:$0xff] %vm582_vm2, %v559_v21 }
 0x196   :  { %v561_v22 = vpop.permute.xlu1 %560  ;;  %v547_v23 = vpop.permute.xlu0 %546 }
 0x197   :  { %596 = vst.msk [vmem:[%s1123_s5 + $0x68] sm:$0xff] %vm582_vm2, %v561_v22  ;;  %589 = vst.msk [vmem:[%s1123_s5 + $0x30] sm:$0xff] %vm582_vm2, %v547_v23 }
 0x19a   :  { %v549_v24 = vpop.permute.xlu1 %548  ;;  %v563_v25 = vpop.permute.xlu0 %562 }
 0x19b   :  { %590 = vst.msk [vmem:[%s1123_s5 + $0x38] sm:$0xff] %vm582_vm2, %v549_v24  ;;  %597 = vst.msk [vmem:[%s1123_s5 + $0x70] sm:$0xff] %vm582_vm2, %v563_v25 }
 0x19e   :  { %v565_v27 = vpop.permute.xlu1 %564 }
 0x19f   :  { %598 = vst.msk [vmem:[%s1123_s5 + $0x78] sm:$0xff] %vm582_vm2, %v565_v27 }

// kernel: _forward_impl.38
= control target key start
LH: loop header
LB: loop body
LE: loop exit
PB: predicated region body
PF: predicated region fallthrough
CT: control target
= control target key end

     0   :  { %vm104_vm0 = vcmask 1043456   ;;  %vm79_vm1 = vcmask 64512   ;;  %s387_s1 = inlined_call_operand.vmem [shape: bf16[8,128], index: 1, kind: input, shape index: {}]   ;;  %s388_s0 = inlined_call_operand.vmem [shape: bf16[128,8], index: 0, kind: input, shape index: {}]   ;;  %s389_s2 = inlined_call_operand.vmem [shape: f32[1,128], index: 2, kind: input, shape index: {}]   ;;  %s390_s3 = inlined_call_operand.vmem [shape: f32[128,128], index: 3, kind: output, shape index: {}]  }
   0x1   :  { %v31_v0 = vld [vmem:[%s387_s1] sm:$0xf]  ;;  %v275_v4 = vld [vmem:[%s388_s0 + $0x8] sm:$0xff]   ;;  %v277_v6 = vld [vmem:[%s388_s0 + $0x10] sm:$0xff]  }
   0x2   :  { %271 = vmatprep.subr.msk.bf16.mxu0 %vm104_vm0, %v31_v0  ;;  %272 = vmatprep.subr.msk.bf16.mxu1 %vm104_vm0, %v31_v0  ;;  %v106_v1 = vsel %vm104_vm0, %v31_v0, 0  ;;  %v273_v2 = vld [vmem:[%s388_s0] sm:$0xff]   ;;  %v276_v5 = vld [vmem:[%s388_s0 + $0x28] sm:$0xff]   ;;  %v278_v7 = vld [vmem:[%s388_s0 + $0x30] sm:$0xff]  }
   0x3   :  { %252 = vmatpush3.bf16.msra.mxu0 %v106_v1  ;;  %270 = vmatpush3.bf16.msra.mxu1 %v106_v1  ;;  %v274_v3 = vld [vmem:[%s388_s0 + $0x20] sm:$0xff]   ;;  %v279_v8 = vld [vmem:[%s388_s0 + $0x18] sm:$0xff]  }
   0x4   :  { %253 = vmatprep.mubr.msk.bf16.mxu0 %vm79_vm1, %v273_v2  ;;  %261 = vmatprep.mubr.msk.bf16.mxu1 %vm79_vm1, %v274_v3  ;;  %v280_v9 = vld [vmem:[%s388_s0 + $0x38] sm:$0xff]   ;;  %v225_v10 = vld [vmem:[%s389_s2] ss:$0 sm:$0xff] }
   0x6   :  { %254 = vmatmul.mubr.msk.bf16.vlgmr.msra.gmra.mxu0 %vm79_vm1, %v275_v4  ;;  %262 = vmatmul.mubr.msk.bf16.vlgmr.msra.gmra.mxu1 %vm79_vm1, %v276_v5 }
   0x7   :  { %257 = vmatprep.mubr.msk.bf16.mxu0 %vm79_vm1, %v277_v6  ;;  %265 = vmatprep.mubr.msk.bf16.mxu1 %vm79_vm1, %v278_v7 }
   0xe   :  { %258 = vmatmul.mubr.msk.bf16.gmra.mxu0 %vm79_vm1, %v279_v8  ;;  %266 = vmatmul.mubr.msk.bf16.gmra.mxu1 %vm79_vm1, %v280_v9 }
  0xc6   :  { %v255_v11 = vpop.f32.mrf.mxu0  ;;  %v263_v13 = vpop.f32.mrf.mxu1 }
  0xc7   :  { %v151_v12 = vadd.f32 %v255_v11, %v225_v10  ;;  %v183_v14 = vadd.f32 %v263_v13, %v225_v10 }
  0xc8   :  { %v142_v15 = vpop.f32.mrf.mxu0  ;;  %v174_v17 = vpop.f32.mrf.mxu1 }
  0xc9   :  { %207 = vst [vmem:[%s390_s3 + $0x10] sm:$0xff] %v151_v12  ;;  %v143_v16 = vadd.f32 %v225_v10, %v142_v15  ;;  %215 = vst [vmem:[%s390_s3 + $0x50] sm:$0xff] %v183_v14  ;;  %v175_v18 = vadd.f32 %v225_v10, %v174_v17 }
  0xca   :  { %v256_v19 = vpop.f32.mrf.mxu0  ;;  %v264_v21 = vpop.f32.mrf.mxu1 }
  0xcb   :  { %205 = vst [vmem:[%s390_s3] sm:$0xff] %v143_v16  ;;  %v154_v20 = vadd.f32 %v256_v19, %v225_v10  ;;  %213 = vst [vmem:[%s390_s3 + $0x40] sm:$0xff] %v175_v18  ;;  %v186_v22 = vadd.f32 %v264_v21, %v225_v10 }
  0xcc   :  { %v145_v23 = vpop.f32.mrf.mxu0  ;;  %v177_v25 = vpop.f32.mrf.mxu1 }
  0xcd   :  { %208 = vst [vmem:[%s390_s3 + $0x18] sm:$0xff] %v154_v20  ;;  %v146_v24 = vadd.f32 %v225_v10, %v145_v23  ;;  %216 = vst [vmem:[%s390_s3 + $0x58] sm:$0xff] %v186_v22  ;;  %v178_v26 = vadd.f32 %v225_v10, %v177_v25 }
  0xce   :  { %v259_v27 = vpop.f32.mrf.mxu0  ;;  %v267_v29 = vpop.f32.mrf.mxu1 }
  0xcf   :  { %206 = vst [vmem:[%s390_s3 + $0x8] sm:$0xff] %v146_v24  ;;  %v167_v28 = vadd.f32 %v259_v27, %v225_v10  ;;  %214 = vst [vmem:[%s390_s3 + $0x48] sm:$0xff] %v178_v26  ;;  %v199_v30 = vadd.f32 %v267_v29, %v225_v10 }
  0xd0   :  { %v158_v31 = vpop.f32.mrf.mxu0  ;;  %v190_v33 = vpop.f32.mrf.mxu1 }
  0xd1   :  { %211 = vst [vmem:[%s390_s3 + $0x30] sm:$0xff] %v167_v28  ;;  %v159_v32 = vadd.f32 %v225_v10, %v158_v31  ;;  %219 = vst [vmem:[%s390_s3 + $0x70] sm:$0xff] %v199_v30  ;;  %v191_v34 = vadd.f32 %v225_v10, %v190_v33 }
  0xd2   :  { %v260_v35 = vpop.f32.mrf.mxu0  ;;  %v268_v37 = vpop.f32.mrf.mxu1 }
  0xd3   :  { %209 = vst [vmem:[%s390_s3 + $0x20] sm:$0xff] %v159_v32  ;;  %v170_v36 = vadd.f32 %v260_v35, %v225_v10  ;;  %217 = vst [vmem:[%s390_s3 + $0x60] sm:$0xff] %v191_v34  ;;  %v202_v38 = vadd.f32 %v268_v37, %v225_v10 }
  0xd4   :  { %v161_v39 = vpop.f32.mrf.mxu0  ;;  %v193_v41 = vpop.f32.mrf.mxu1 }
  0xd5   :  { %212 = vst [vmem:[%s390_s3 + $0x38] sm:$0xff] %v170_v36  ;;  %v162_v40 = vadd.f32 %v225_v10, %v161_v39  ;;  %220 = vst [vmem:[%s390_s3 + $0x78] sm:$0xff] %v202_v38  ;;  %v194_v42 = vadd.f32 %v225_v10, %v193_v41 }
  0xd7   :  { %210 = vst [vmem:[%s390_s3 + $0x28] sm:$0xff] %v162_v40  ;;  %218 = vst [vmem:[%s390_s3 + $0x68] sm:$0xff] %v194_v42 }

// kernel: _forward_impl.35
= control target key start
LH: loop header
LB: loop body
LE: loop exit
PB: predicated region body
PF: predicated region fallthrough
CT: control target
= control target key end

     0   :  { %vm184_vm0 = vcmask 1043456   ;;  %v961_v0 = vmov 0   ;;  %vm159_vm1 = vcmask 588800   ;;  %vm411_vm2 = vcmask 130048   ;;  %s1467_s7 = inlined_call_operand.vmem [shape: bf16[72,128], index: 7, kind: input, shape index: {}]   ;;  %s1468_s6 = inlined_call_operand.vmem [shape: bf16[144,128], index: 6, kind: input, shape index: {}]   ;;  %s1469_s1 = inlined_call_operand.vmem [shape: bf16[128,72], index: 1, kind: input, shape index: {}]   ;;  %s1470_s0 = inlined_call_operand.vmem [shape: bf16[128,144], index: 0, kind: input, shape index: {}]   ;;  %s1471_s4 = inlined_call_operand.vmem [shape: f32[128,8], index: 4, kind: input, shape index: {}, may-alias: {2,4,5}]   ;;  %s1472_s8 = inlined_call_operand.vmem [shape: f32[1,128], index: 8, kind: input, shape index: {}]   ;;  %s1473_s5 = inlined_call_operand.vmem [shape: f32[128,8], index: 5, kind: input, shape index: {}, may-alias: {2,4,5}]   ;;  %s1474_s3 = inlined_call_operand.vmem [shape: f32[128,8], index: 3, kind: input, shape index: {}]   ;;  %s1475_s2 = inlined_call_operand.vmem [shape: f32[128,8], index: 2, kind: input, shape index: {}, may-alias: {2,4,5}]   ;;  %s1476_s9 = inlined_call_operand.vmem [shape: f32[128,8], index: 9, kind: output, shape index: {}]  }
   0x1   :  { %863 = vmatprep.subr.bf16.mxu1 %v961_v0  ;;  %v883_v1 = vld [vmem:[%s1467_s7 + $0x20] ss:$0 sps:$4 sm:$0xff]   ;;  %v884_v2 = vld [vmem:[%s1468_s6 + $0x38] sm:$0xff]   ;;  %v886_v5 = vld [vmem:[%s1468_s6 + $0x30] sm:$0xff]   ;;  %vm748_vm3 = vcmask 64512  }
   0x2   :  { %881 = vmatprep.subr.msk.bf16.mxu0 %vm184_vm0, %v883_v1  ;;  %v186_v3 = vsel %vm184_vm0, %v883_v1, 0  ;;  %v885_v4 = vld [vmem:[%s1467_s7 + $0x18] sm:$0xff]   ;;  %872 = vmatpush1.bf16.msra.mxu1 %v884_v2  ;;  %v887_v6 = vld [vmem:[%s1467_s7 + $0x10] sm:$0xff]   ;;  %v888_v7 = vld [vmem:[%s1468_s6 + $0x28] sm:$0xff]  }
   0x3   :  { %838 = vmatpush3.bf16.msra.mxu0 %v186_v3  ;;  %864 = vmatprep.subr.bf16.mxu1 %v961_v0  ;;  %v889_v8 = vld [vmem:[%s1467_s7 + $0x8] sm:$0xff]   ;;  %v893_v9 = vld [vmem:[%s1469_s1] sm:$0xff]   ;;  %v892_v12 = vld [vmem:[%s1468_s6 + $0x18] sm:$0xff]  }
   0x4   :  { %839 = vmatprep.subr.bf16.mxu0 %v885_v4  ;;  %v890_v10 = vld [vmem:[%s1468_s6 + $0x20] sm:$0xff]   ;;  %847 = vmatprep.mubr.msk.bf16.mxu0 %vm159_vm1, %v893_v9  ;;  %v895_v13 = vld [vmem:[%s1469_s1 + $0x8] sm:$0xff]   ;;  %v894_v15 = vld [vmem:[%s1468_s6 + $0x10] sm:$0xff]  }
   0x5   :  { %v891_v11 = vld [vmem:[%s1467_s7] sm:$0xff]   ;;  %v898_v16 = vld [vmem:[%s1469_s1 + $0x10] sm:$0xff]   ;;  %v896_v17 = vld [vmem:[%s1468_s6 + $0x8] sm:$0xff]  }
   0x6   :  { %873 = vmatpush1.bf16.msra.mxu1 %v886_v5  ;;  %v903_v14 = vld [vmem:[%s1470_s0 + $0x24] ss:$8 sps:$4 sm:$0xff]   ;;  %v899_v18 = vld [vmem:[%s1469_s1 + $0x18] sm:$0xff]   ;;  %v901_v22 = vld [vmem:[%s1470_s0 + $0x20] ss:$8 sps:$4 sm:$0xff]  }
   0x7   :  { %840 = vmatpush3.bf16.msra.mxu0 %v885_v4  ;;  %865 = vmatprep.subr.bf16.mxu1 %v961_v0  ;;  %v897_v19 = vld [vmem:[%s1468_s6] sm:$0xff]   ;;  %v905_v23 = vld [vmem:[%s1469_s1 + $0x28] sm:$0xff]   ;;  %v906_v24 = vld [vmem:[%s1470_s0 + $0x34] ss:$8 sps:$4 sm:$0xff]  }
   0x8   :  { %841 = vmatprep.subr.bf16.mxu0 %v887_v6  ;;  %817 = vmatprep.mubr.msk.bf16.mxu1 %vm411_vm2, %v903_v14  ;;  %v904_v20 = vld [vmem:[%s1469_s1 + $0x20] sm:$0xff]   ;;  %v909_v25 = vld [vmem:[%s1469_s1 + $0x30] sm:$0xff]   ;;  %v910_v27 = vld [vmem:[%s1469_s1 + $0x38] sm:$0xff]  }
   0x9   :  { %v900_v21 = vld [vmem:[%s1468_s6 + $0x40] sm:$0xff]   ;;  %v908_v26 = vld [vmem:[%s1470_s0 + $0x30] ss:$8 sps:$4 sm:$0xff]   ;;  %v917_v31 = vld [vmem:[%s1470_s0 + $0x54] ss:$8 sps:$4 sm:$0xff]  }
   0xa   :  { %874 = vmatpush1.bf16.msra.mxu1 %v888_v7  ;;  %v911_v28 = vld [vmem:[%s1470_s0 + $0x44] ss:$8 sps:$4 sm:$0xff]   ;;  %v913_v30 = vld [vmem:[%s1470_s0 + $0x40] ss:$8 sps:$4 sm:$0xff]   ;;  %v920_v33 = vld [vmem:[%s1470_s0 + $0x14] ss:$8 sps:$4 sm:$0xff]  }
   0xb   :  { %842 = vmatpush3.bf16.msra.mxu0 %v887_v6  ;;  %866 = vmatprep.subr.bf16.mxu1 %v961_v0  ;;  %v916_v29 = vld [vmem:[%s1470_s0 + $0x4] ss:$8 sps:$4 sm:$0xff]   ;;  %v914_v32 = vld [vmem:[%s1470_s0] ss:$8 sps:$4 sm:$0xff]   ;;  %v919_v34 = vld [vmem:[%s1470_s0 + $0x50] ss:$8 sps:$4 sm:$0xff]  }
   0xc   :  { %843 = vmatprep.subr.bf16.mxu0 %v889_v8  ;;  %v923_v35 = vld [vmem:[%s1470_s0 + $0x64] ss:$8 sps:$4 sm:$0xff]   ;;  %v922_v36 = vld [vmem:[%s1470_s0 + $0x10] ss:$8 sps:$4 sm:$0xff]   ;;  %v925_v37 = vld [vmem:[%s1470_s0 + $0x60] ss:$8 sps:$4 sm:$0xff]  }
   0xd   :  { %v926_v38 = vld [vmem:[%s1470_s0 + $0x74] ss:$8 sps:$4 sm:$0xff]   ;;  %v928_v39 = vld [vmem:[%s1470_s0 + $0x70] ss:$8 sps:$4 sm:$0xff]   ;;  %v560_v47 = vld [vmem:[%s1471_s4 + $0x20] sm:$0xff] }
   0xe   :  { %875 = vmatpush1.bf16.msra.mxu1 %v890_v10  ;;  %v1174_v50 = vld [vmem:[%s1472_s8] ss:$0 sm:$0xff]  ;;  %v576_v53 = vadd.f32 1.0, %v560_v47  ;;  %v561_v55 = vld [vmem:[%s1471_s4 + $0x28] sm:$0xff]  ;;  %v562_v1 = vld [vmem:[%s1471_s4 + $0x30] sm:$0xff] }
   0xf   :  { %844 = vmatpush3.bf16.msra.mxu0 %v889_v8  ;;  %867 = vmatprep.subr.bf16.mxu1 %v961_v0  ;;  %v608_v58 = vld [vmem:[%s1473_s5 + $0x20] sm:$0xff]  ;;  %v577_v63 = vadd.f32 1.0, %v561_v55 }
  0x10   :  { %845 = vmatprep.subr.bf16.mxu0 %v891_v11 }
  0x12   :  { %876 = vmatpush1.bf16.msra.mxu1 %v892_v12 }
  0x13   :  { %846 = vmatpush3.bf16.msra.mxu0 %v891_v11  ;;  %868 = vmatprep.subr.bf16.mxu1 %v961_v0 }
  0x14   :  { %436 = vmatprep.subr.bf16.mxu0 %v961_v0 }
  0x16   :  { %848 = vmatmul.mubr.msk.bf16.vlgmr.msra.gmra.mxu0 %vm159_vm1, %v895_v13  ;;  %877 = vmatpush1.bf16.msra.mxu1 %v894_v15 }
  0x17   :  { %437 = vmatpush1.bf16.msra.mxu0 %v884_v2  ;;  %869 = vmatprep.subr.bf16.mxu1 %v961_v0 }
  0x18   :  { %438 = vmatprep.subr.bf16.mxu0 %v961_v0  ;;  %851 = vmatprep.mubr.msk.bf16.mxu0 %vm159_vm1, %v898_v16  ;;  %v610_v16 = vld [vmem:[%s1473_s5 + $0x30] sm:$0xff] }
  0x1a   :  { %878 = vmatpush1.bf16.msra.mxu1 %v896_v17 }
  0x1b   :  { %439 = vmatpush1.bf16.msra.mxu0 %v886_v5  ;;  %870 = vmatprep.subr.bf16.mxu1 %v961_v0  ;;  %v609_v5 = vld [vmem:[%s1473_s5 + $0x28] sm:$0xff] }
  0x1c   :  { %440 = vmatprep.subr.bf16.mxu0 %v961_v0 }
  0x1e   :  { %852 = vmatmul.mubr.msk.bf16.gmra.mxu0 %vm159_vm1, %v899_v18  ;;  %879 = vmatpush1.bf16.msra.mxu1 %v897_v19 }
  0x1f   :  { %441 = vmatpush1.bf16.msra.mxu0 %v888_v7  ;;  %871 = vmatprep.subr.bf16.mxu1 %v961_v0 }
  0x20   :  { %442 = vmatprep.subr.bf16.mxu0 %v961_v0  ;;  %855 = vmatprep.mubr.msk.bf16.mxu0 %vm159_vm1, %v904_v20 }
  0x22   :  { %880 = vmatpush2.bf16.msra.mxu1 %v900_v21 }
  0x23   :  { %443 = vmatpush1.bf16.msra.mxu0 %v890_v10  ;;  %v578_v10 = vadd.f32 1.0, %v562_v1 }
  0x24   :  { %444 = vmatprep.subr.bf16.mxu0 %v961_v0 }
  0x25   :  { %485 = vmatmul.mubr.bf16.vlgmr.msra.gmra.mxu1 %v901_v22 }
  0x26   :  { %856 = vmatmul.mubr.msk.bf16.gmra.mxu0 %vm159_vm1, %v905_v23  ;;  %818 = vmatprep.mubr.msk.bf16.mxu1 %vm411_vm2, %v906_v24  ;;  %v564_v23 = vld [vmem:[%s1471_s4 + $0x40] sm:$0xff] }
  0x27   :  { %445 = vmatpush1.bf16.msra.mxu0 %v892_v12  ;;  %859 = vmatprep.mubr.msk.bf16.mxu0 %vm159_vm1, %v909_v25  ;;  %v563_v12 = vld [vmem:[%s1471_s4 + $0x38] sm:$0xff] }
  0x28   :  { %446 = vmatprep.subr.bf16.mxu0 %v961_v0 }
  0x2b   :  { %447 = vmatpush1.bf16.msra.mxu0 %v894_v15 }
  0x2c   :  { %448 = vmatprep.subr.bf16.mxu0 %v961_v0 }
  0x2d   :  { %493 = vmatmul.mubr.bf16.gmra.mxu1 %v908_v26  ;;  %v656_v26 = vld [vmem:[%s1474_s3 + $0x20] sm:$0xff] }
  0x2e   :  { %860 = vmatmul.mubr.msk.bf16.gmra.mxu0 %vm159_vm1, %v910_v27  ;;  %819 = vmatprep.mubr.msk.bf16.mxu1 %vm411_vm2, %v911_v28  ;;  %v611_v27 = vld [vmem:[%s1473_s5 + $0x38] sm:$0xff] }
  0x2f   :  { %449 = vmatpush1.bf16.msra.mxu0 %v896_v17  ;;  %815 = vmatprep.mubr.msk.bf16.mxu0 %vm411_vm2, %v916_v29 }
  0x30   :  { %450 = vmatprep.subr.bf16.mxu0 %v961_v0 }
  0x33   :  { %451 = vmatpush1.bf16.msra.mxu0 %v897_v19 }
  0x34   :  { %466 = vmatprep.subr.bf16.mxu0 %v961_v0 }
  0x35   :  { %501 = vmatmul.mubr.bf16.gmra.mxu1 %v913_v30  ;;  %v704_v30 = vld [vmem:[%s1475_s2 + $0x20] sm:$0xff] }
  0x36   :  { %820 = vmatprep.mubr.msk.bf16.mxu1 %vm411_vm2, %v917_v31 }
  0x37   :  { %467 = vmatpush2.bf16.msra.mxu0 %v900_v21  ;;  %v579_v21 = vadd.f32 1.0, %v563_v12 }
  0x3a   :  { %469 = vmatmul.mubr.bf16.vlgmr.msra.gmra.mxu0 %v914_v32 }
  0x3b   :  { %816 = vmatprep.mubr.msk.bf16.mxu0 %vm411_vm2, %v920_v33  ;;  %v580_v33 = vadd.f32 1.0, %v564_v23 }
  0x3d   :  { %509 = vmatmul.mubr.bf16.gmra.mxu1 %v919_v34  ;;  %v565_v34 = vld [vmem:[%s1471_s4 + $0x48] sm:$0xff] }
  0x3e   :  { %821 = vmatprep.mubr.msk.bf16.mxu1 %vm411_vm2, %v923_v35  ;;  %v556_v35 = vld [vmem:[%s1471_s4] sm:$0xff] }
  0x42   :  { %477 = vmatmul.mubr.bf16.gmra.mxu0 %v922_v36 }
  0x45   :  { %517 = vmatmul.mubr.bf16.gmra.mxu1 %v925_v37  ;;  %v672_v37 = vsub.f32 1.0, %v656_v26 }
  0x46   :  { %822 = vmatprep.mubr.msk.bf16.mxu1 %vm411_vm2, %v926_v38  ;;  %v657_v38 = vld [vmem:[%s1474_s3 + $0x28] sm:$0xff] }
  0x4d   :  { %525 = vmatmul.mubr.bf16.gmra.mxu1 %v928_v39 }
  0xd6   :  { %v1160_v40 = vpop.f32.mrf.mxu0 }
  0xd8   :  { %v1162_v41 = vpop.f32.mrf.mxu0 }
  0xda   :  { %v1164_v42 = vpop.f32.mrf.mxu0 }
  0xdc   :  { %v1166_v43 = vpop.f32.mrf.mxu0 }
  0xde   :  { %v853_v44 = vpop.f32.mrf.mxu0 }
  0xe0   :  { %v238_v45 = vpop.f32.mrf.mxu0 }
  0xe2   :  { %v854_v46 = vpop.f32.mrf.mxu0 }
  0xe4   :  { %v241_v48 = vpop.f32.mrf.mxu0 }
  0xe5   :  { %v486_v49 = vpop.f32.mrf.mxu1 }
  0xe6   :  { %v1176_v51 = vpop.f32.mrf.mxu0  ;;  %v487_v52 = vadd.f32 %v486_v49, %v238_v45  ;;  %v720_v45 = vmul.f32 %v704_v30, %v656_v26 }
  0xe7   :  { %v488_v54 = vpop.f32.mrf.mxu1 }
  0xe8   :  { %v254_v56 = vpop.f32.mrf.mxu0  ;;  %v544_v57 = vadd.f32 %v1174_v50, %v487_v52  ;;  %v572_v52 = vadd.f32 1.0, %v556_v35 }
  0xe9   :  { %v489_v59 = vpop.f32.mrf.mxu1 }
  0xea   :  { %v1185_v60 = vpop.f32.mrf.mxu0  ;;  %v592_v61 = vmul.f32 %v576_v53, %v544_v57  ;;  %v490_v62 = vadd.f32 %v489_v59, %v241_v48  ;;  %v581_v48 = vadd.f32 1.0, %v565_v34  ;;  %v705_v53 = vld [vmem:[%s1475_s2 + $0x28] sm:$0xff]  ;;  %v566_v57 = vld [vmem:[%s1471_s4 + $0x50] sm:$0xff]  ;;  %v673_v59 = vsub.f32 1.0, %v657_v38 }
  0xeb   :  { %v491_v0 = vpop.f32.mrf.mxu1 }
  0xec   :  { %v257_v2 = vpop.f32.mrf.mxu0  ;;  %v624_v3 = vadd.f32 %v608_v58, %v592_v61  ;;  %v545_v4 = vadd.f32 %v1174_v50, %v490_v62  ;;  %v658_v0 = vld [vmem:[%s1474_s3 + $0x30] sm:$0xff] }
  0xed   :  { %v494_v6 = vpop.f32.mrf.mxu1 }
  0xee   :  { %v1194_v7 = vpop.f32.mrf.mxu0  ;;  %929 = vtanh.f32 %v624_v3  ;;  %v593_v8 = vmul.f32 %v577_v63, %v545_v4  ;;  %v495_v9 = vadd.f32 %v853_v44, %v494_v6  ;;  %v721_v4 = vmul.f32 %v705_v53, %v657_v38  ;;  %v613_v6 = vld [vmem:[%s1473_s5 + $0x48] sm:$0xff]  ;;  %v707_v38 = vld [vmem:[%s1475_s2 + $0x38] sm:$0xff] }
  0xef   :  { %v496_v11 = vpop.f32.mrf.mxu1 }
  0xf0   :  { %v1199_v13 = vpop.f32.mrf.mxu0  ;;  %v625_v14 = vadd.f32 %v609_v5, %v593_v8  ;;  %v546_v15 = vadd.f32 %v1174_v50, %v495_v9  ;;  %v706_v5 = vld [vmem:[%s1475_s2 + $0x30] sm:$0xff]  ;;  %v604_v8 = vld [vmem:[%s1473_s5] sm:$0xff] }
  0xf1   :  { %v497_v17 = vpop.f32.mrf.mxu1 }
  0xf2   :  { %v1205_v18 = vpop.f32.mrf.mxu0  ;;  %931 = vtanh.f32 %v625_v14  ;;  %v594_v19 = vmul.f32 %v578_v10, %v546_v15  ;;  %v498_v20 = vadd.f32 %v854_v46, %v497_v17  ;;  %v612_v46 = vld [vmem:[%s1473_s5 + $0x40] sm:$0xff]  ;;  %v582_v10 = vadd.f32 1.0, %v566_v57  ;;  %v558_v17 = vld [vmem:[%s1471_s4 + $0x10] sm:$0xff]  ;;  %v559_v57 = vld [vmem:[%s1471_s4 + $0x18] sm:$0xff] }
  0xf3   :  { %v499_v22 = vpop.f32.mrf.mxu1 }
  0xf4   :  { %v626_v24 = vadd.f32 %v610_v16, %v594_v19  ;;  %v547_v25 = vadd.f32 %v1174_v50, %v498_v20  ;;  %v1217_v29 = vpop.f32.mrf.mxu0  ;;  %v567_v16 = vld [vmem:[%s1471_s4 + $0x58] sm:$0xff]  ;;  %v674_v20 = vsub.f32 1.0, %v658_v0 }
  0xf5   :  { %v502_v28 = vpop.f32.mrf.mxu1  ;;  %v583_v34 = vadd.f32 1.0, %v567_v16 }
  0xf6   :  { %933 = vtanh.f32 %v626_v24  ;;  %v595_v31 = vmul.f32 %v579_v21, %v547_v25  ;;  %v503_v32 = vadd.f32 %v502_v28, %v254_v56 }
  0xf7   :  { %v504_v36 = vpop.f32.mrf.mxu1 }
  0xf8   :  { %v627_v39 = vadd.f32 %v611_v27, %v595_v31  ;;  %v548_v44 = vadd.f32 %v1174_v50, %v503_v32  ;;  %v722_v27 = vmul.f32 %v706_v5, %v658_v0  ;;  %v659_v31 = vld [vmem:[%s1474_s3 + $0x38] sm:$0xff]  ;;  %v574_v36 = vadd.f32 1.0, %v558_v17 }
  0xf9   :  { %v505_v47 = vpop.f32.mrf.mxu1 }
  0xfa   :  { %v470_v49 = vpop.f32.mrf.mxu0  ;;  %935 = vtanh.f32 %v627_v39  ;;  %v596_v54 = vmul.f32 %v580_v33, %v548_v44  ;;  %v506_v55 = vadd.f32 %v505_v47, %v257_v2  ;;  %v605_v39 = vld [vmem:[%s1473_s5 + $0x8] sm:$0xff] }
  0xfb   :  { %v471_v56 = vadd.f32 %v470_v49, %v1162_v41  ;;  %v930_v58 = vpop.eup %929  ;;  %v507_v61 = vpop.f32.mrf.mxu1  ;;  %v557_v41 = vld [vmem:[%s1471_s4 + $0x8] sm:$0xff] }
  0xfc   :  { %v472_v62 = vpop.f32.mrf.mxu0  ;;  %v688_v63 = vmul.f32 %v930_v58, %v672_v37  ;;  %v628_v1 = vadd.f32 %v612_v46, %v596_v54  ;;  %v549_v3 = vadd.f32 %v1174_v50, %v506_v55  ;;  %v573_v23 = vadd.f32 1.0, %v557_v41  ;;  %v568_v46 = vld [vmem:[%s1471_s4 + $0x60] sm:$0xff] }
  0xfd   :  { %v540_v2 = vadd.f32 %v1174_v50, %v471_v56  ;;  %v510_v9 = vpop.f32.mrf.mxu1  ;;  %v675_v55 = vsub.f32 1.0, %v659_v31  ;;  %v723_v58 = vmul.f32 %v707_v38, %v659_v31  ;;  %v615_v62 = vld [vmem:[%s1473_s5 + $0x58] sm:$0xff]  ;;  %v708_v41 = vld [vmem:[%s1475_s2 + $0x40] sm:$0xff] }
  0xfe   :  { %v473_v11 = vpop.f32.mrf.mxu0  ;;  %v736_v12 = vadd.f32 %v720_v45, %v688_v63  ;;  %937 = vtanh.f32 %v628_v1  ;;  %v597_v14 = vmul.f32 %v581_v48, %v549_v3  ;;  %v511_v21 = vadd.f32 %v1176_v51, %v510_v9  ;;  %v606_v63 = vld [vmem:[%s1473_s5 + $0x10] sm:$0xff] }
  0xff   :  { %v588_v15 = vmul.f32 %v572_v52, %v540_v2  ;;  %v932_v19 = vpop.eup %931  ;;  %v474_v22 = vadd.f32 %v473_v11, %v1166_v43  ;;  %v512_v24 = vpop.f32.mrf.mxu1  ;;  %v614_v43 = vld [vmem:[%s1473_s5 + $0x50] sm:$0xff]  ;;  %v584_v1 = vadd.f32 1.0, %v568_v46  ;;  %v575_v11 = vadd.f32 1.0, %v559_v57 }
 0x100   :  { %v475_v25 = vpop.f32.mrf.mxu0  ;;  %753 = vst.msk [vmem:[%s1476_s9 + $0x20] sm:$0xff] %vm748_vm3, %v736_v12  ;;  %v689_v26 = vmul.f32 %v932_v19, %v673_v59  ;;  %v629_v28 = vadd.f32 %v613_v6, %v597_v14  ;;  %v550_v51 = vadd.f32 %v1174_v50, %v511_v21  ;;  %v569_v14 = vld [vmem:[%s1471_s4 + $0x68] sm:$0xff]  ;;  %v616_v21 = vld [vmem:[%s1473_s5 + $0x60] sm:$0xff] }
 0x101   :  { %v620_v30 = vadd.f32 %v604_v8, %v588_v15  ;;  %v541_v32 = vadd.f32 %v1174_v50, %v474_v22  ;;  %v513_v33 = vpop.f32.mrf.mxu1  ;;  %v709_v25 = vld [vmem:[%s1475_s2 + $0x48] sm:$0xff] }
 0x102   :  { %v478_v35 = vpop.f32.mrf.mxu0  ;;  %v737_v37 = vadd.f32 %v721_v4, %v689_v26  ;;  %939 = vtanh.f32 %v629_v28  ;;  %v514_v44 = vadd.f32 %v1185_v60, %v513_v33  ;;  %v598_v48 = vmul.f32 %v582_v10, %v550_v51  ;;  %v652_v26 = vld [vmem:[%s1474_s3] sm:$0xff]  ;;  %v570_v33 = vld [vmem:[%s1471_s4 + $0x70] sm:$0xff] }
 0x103   :  { %v479_v45 = vadd.f32 %v1160_v40, %v478_v35  ;;  %v934_v47 = vpop.eup %933  ;;  %941 = vtanh.f32 %v620_v30  ;;  %v589_v49 = vmul.f32 %v573_v23, %v541_v32  ;;  %v515_v52 = vpop.f32.mrf.mxu1  ;;  %v660_v40 = vld [vmem:[%s1474_s3 + $0x40] sm:$0xff]  ;;  %v585_v30 = vadd.f32 1.0, %v569_v14 }
 0x104   :  { %v480_v53 = vpop.f32.mrf.mxu0  ;;  %754 = vst.msk [vmem:[%s1476_s9 + $0x28] sm:$0xff] %vm748_vm3, %v737_v37  ;;  %v690_v54 = vmul.f32 %v934_v47, %v674_v20  ;;  %v551_v60 = vadd.f32 %v1174_v50, %v514_v44  ;;  %v630_v59 = vadd.f32 %v614_v43, %v598_v48  ;;  %v676_v9 = vsub.f32 1.0, %v660_v40  ;;  %v662_v48 = vld [vmem:[%s1474_s3 + $0x50] sm:$0xff] }
 0x105   :  { %v542_v56 = vadd.f32 %v1174_v50, %v479_v45  ;;  %v621_v61 = vadd.f32 %v605_v39, %v589_v49  ;;  %v518_v0 = vpop.f32.mrf.mxu1  ;;  %v724_v19 = vmul.f32 %v708_v41, %v660_v40  ;;  %v668_v38 = vsub.f32 1.0, %v652_v26  ;;  %v617_v45 = vld [vmem:[%s1473_s5 + $0x68] sm:$0xff] }
 0x106   :  { %v481_v3 = vpop.f32.mrf.mxu0  ;;  %v738_v2 = vadd.f32 %v722_v27, %v690_v54  ;;  %v599_v4 = vmul.f32 %v583_v34, %v551_v60  ;;  %v519_v6 = vadd.f32 %v518_v0, %v1199_v13  ;;  %943 = vtanh.f32 %v630_v59  ;;  %v607_v27 = vld [vmem:[%s1473_s5 + $0x18] sm:$0xff]  ;;  %v653_v49 = vld [vmem:[%s1474_s3 + $0x8] sm:$0xff] }
 0x107   :  { %v590_v5 = vmul.f32 %v574_v36, %v542_v56  ;;  %v936_v8 = vpop.eup %935  ;;  %v482_v10 = vadd.f32 %v1164_v42, %v481_v3  ;;  %v520_v12 = vpop.f32.mrf.mxu1  ;;  %945 = vtanh.f32 %v621_v61  ;;  %v661_v42 = vld [vmem:[%s1474_s3 + $0x48] sm:$0xff]  ;;  %v586_v54 = vadd.f32 1.0, %v570_v33  ;;  %v663_v3 = vld [vmem:[%s1474_s3 + $0x58] sm:$0xff] }
 0x108   :  { %v483_v15 = vpop.f32.mrf.mxu0  ;;  %755 = vst.msk [vmem:[%s1476_s9 + $0x30] sm:$0xff] %vm748_vm3, %v738_v2  ;;  %v691_v16 = vmul.f32 %v936_v8, %v675_v55  ;;  %v631_v13 = vadd.f32 %v615_v62, %v599_v4  ;;  %v552_v20 = vadd.f32 %v1174_v50, %v519_v6  ;;  %v677_v35 = vsub.f32 1.0, %v661_v42  ;;  %v571_v55 = vld [vmem:[%s1471_s4 + $0x78] sm:$0xff]  ;;  %v618_v2 = vld [vmem:[%s1473_s5 + $0x70] sm:$0xff] }
 0x109   :  { %v622_v17 = vadd.f32 %v606_v63, %v590_v5  ;;  %v543_v22 = vadd.f32 %v1174_v50, %v482_v10  ;;  %v521_v23 = vpop.f32.mrf.mxu1  ;;  %v725_v37 = vmul.f32 %v709_v25, %v661_v42  ;;  %v678_v63 = vsub.f32 1.0, %v662_v48  ;;  %v654_v6 = vld [vmem:[%s1474_s3 + $0x10] sm:$0xff]  ;;  %v711_v12 = vld [vmem:[%s1475_s2 + $0x58] sm:$0xff]  ;;  %v664_v25 = vld [vmem:[%s1474_s3 + $0x60] sm:$0xff] }
 0x10a   :  { %v739_v24 = vadd.f32 %v723_v58, %v691_v16  ;;  %947 = vtanh.f32 %v631_v13  ;;  %v522_v28 = vadd.f32 %v521_v23, %v1217_v29  ;;  %v600_v51 = vmul.f32 %v584_v1, %v552_v20  ;;  %v700_v29 = vld [vmem:[%s1475_s2] sm:$0xff]  ;;  %v701_v1 = vld [vmem:[%s1475_s2 + $0x8] sm:$0xff] }
 0x10b   :  { %v938_v31 = vpop.eup %937  ;;  %949 = vtanh.f32 %v622_v17  ;;  %v591_v43 = vmul.f32 %v575_v11, %v543_v22  ;;  %v523_v32 = vpop.f32.mrf.mxu1  ;;  %v716_v60 = vmul.f32 %v700_v29, %v652_v26  ;;  %v669_v0 = vsub.f32 1.0, %v653_v49  ;;  %v702_v17 = vld [vmem:[%s1475_s2 + $0x10] sm:$0xff]  ;;  %v619_v22 = vld [vmem:[%s1473_s5 + $0x78] sm:$0xff] }
 0x10c   :  { %756 = vst.msk [vmem:[%s1476_s9 + $0x38] sm:$0xff] %vm748_vm3, %v739_v24  ;;  %v692_v34 = vmul.f32 %v938_v31, %v676_v9  ;;  %v553_v36 = vadd.f32 %v1174_v50, %v522_v28  ;;  %v632_v39 = vadd.f32 %v616_v21, %v600_v51  ;;  %v587_v4 = vadd.f32 1.0, %v571_v55  ;;  %v712_v32 = vld [vmem:[%s1475_s2 + $0x60] sm:$0xff]  ;;  %v703_v29 = vld [vmem:[%s1475_s2 + $0x18] sm:$0xff] }
 0x10d   :  { %v623_v44 = vadd.f32 %v607_v27, %v591_v43  ;;  %v526_v46 = vpop.f32.mrf.mxu1  ;;  %v717_v16 = vmul.f32 %v701_v1, %v653_v49  ;;  %v679_v13 = vsub.f32 1.0, %v663_v3  ;;  %v670_v21 = vsub.f32 1.0, %v654_v6 }
 0x10e   :  { %v740_v47 = vadd.f32 %v724_v19, %v692_v34  ;;  %v601_v52 = vmul.f32 %v585_v30, %v553_v36  ;;  %v527_v53 = vadd.f32 %v1194_v7, %v526_v46  ;;  %951 = vtanh.f32 %v632_v39  ;;  %v710_v7 = vld [vmem:[%s1475_s2 + $0x50] sm:$0xff]  ;;  %v655_v30 = vld [vmem:[%s1474_s3 + $0x18] sm:$0xff]  ;;  %v665_v36 = vld [vmem:[%s1474_s3 + $0x68] sm:$0xff] }
 0x10f   :  { %v940_v40 = vpop.eup %939  ;;  %v528_v56 = vpop.f32.mrf.mxu1  ;;  %953 = vtanh.f32 %v623_v44  ;;  %v726_v11 = vmul.f32 %v710_v7, %v662_v48  ;;  %v727_v24 = vmul.f32 %v711_v12, %v663_v3  ;;  %v718_v28 = vmul.f32 %v702_v17, %v654_v6 }
 0x110   :  { %v942_v57 = vpop.eup %941  ;;  %757 = vst.msk [vmem:[%s1476_s9 + $0x40] sm:$0xff] %vm748_vm3, %v740_v47  ;;  %v693_v58 = vmul.f32 %v940_v40, %v677_v35  ;;  %v633_v59 = vadd.f32 %v617_v45, %v601_v52  ;;  %v554_v61 = vadd.f32 %v1174_v50, %v527_v53  ;;  %v680_v35 = vsub.f32 1.0, %v664_v25  ;;  %v713_v45 = vld [vmem:[%s1475_s2 + $0x68] sm:$0xff]  ;;  %v666_v53 = vld [vmem:[%s1474_s3 + $0x70] sm:$0xff] }
 0x111   :  { %v684_v62 = vmul.f32 %v942_v57, %v668_v38  ;;  %v529_v41 = vpop.f32.mrf.mxu1  ;;  %v671_v38 = vsub.f32 1.0, %v655_v30  ;;  %v728_v44 = vmul.f32 %v712_v32, %v664_v25  ;;  %v719_v47 = vmul.f32 %v703_v29, %v655_v30  ;;  %v714_v56 = vld [vmem:[%s1475_s2 + $0x70] sm:$0xff] }
 0x112   :  { %v741_v5 = vadd.f32 %v725_v37, %v693_v58  ;;  %955 = vtanh.f32 %v633_v59  ;;  %v602_v8 = vmul.f32 %v586_v54, %v554_v61  ;;  %v530_v9 = vadd.f32 %v1205_v18, %v529_v41  ;;  %v667_v59 = vld [vmem:[%s1474_s3 + $0x78] sm:$0xff] }
 0x113   :  { %v732_v10 = vadd.f32 %v716_v60, %v684_v62  ;;  %v531_v14 = vpop.f32.mrf.mxu1  ;;  %v944_v15 = vpop.eup %943  ;;  %v681_v48 = vsub.f32 1.0, %v665_v36  ;;  %v729_v55 = vmul.f32 %v713_v45, %v665_v36  ;;  %v682_v7 = vsub.f32 1.0, %v666_v53 }
 0x114   :  { %758 = vst.msk [vmem:[%s1476_s9 + $0x48] sm:$0xff] %vm748_vm3, %v741_v5  ;;  %v634_v18 = vadd.f32 %v618_v2, %v602_v8  ;;  %v555_v19 = vadd.f32 %v1174_v50, %v530_v9  ;;  %v946_v42 = vpop.eup %945  ;;  %v694_v20 = vmul.f32 %v944_v15, %v678_v63  ;;  %v730_v62 = vmul.f32 %v714_v56, %v666_v53 }
 0x115   :  { %749 = vst.msk [vmem:[%s1476_s9] sm:$0xff] %vm748_vm3, %v732_v10  ;;  %v685_v23 = vmul.f32 %v946_v42, %v669_v0  ;;  %v715_v0 = vld [vmem:[%s1475_s2 + $0x78] sm:$0xff]  ;;  %v683_v3 = vsub.f32 1.0, %v667_v59 }
 0x116   :  { %957 = vtanh.f32 %v634_v18  ;;  %v603_v50 = vmul.f32 %v587_v4, %v555_v19  ;;  %v742_v27 = vadd.f32 %v726_v11, %v694_v20  ;;  %v731_v41 = vmul.f32 %v715_v0, %v667_v59 }
 0x117   :  { %v948_v26 = vpop.eup %947  ;;  %v733_v51 = vadd.f32 %v717_v16, %v685_v23 }
 0x118   :  { %v950_v31 = vpop.eup %949  ;;  %v695_v43 = vmul.f32 %v948_v26, %v679_v13  ;;  %v635_v33 = vadd.f32 %v619_v22, %v603_v50  ;;  %759 = vst.msk [vmem:[%s1476_s9 + $0x50] sm:$0xff] %vm748_vm3, %v742_v27 }
 0x119   :  { %v686_v34 = vmul.f32 %v950_v31, %v670_v21  ;;  %750 = vst.msk [vmem:[%s1476_s9 + $0x8] sm:$0xff] %vm748_vm3, %v733_v51 }
 0x11a   :  { %v743_v37 = vadd.f32 %v727_v24, %v695_v43  ;;  %959 = vtanh.f32 %v635_v33 }
 0x11b   :  { %v734_v39 = vadd.f32 %v718_v28, %v686_v34  ;;  %v952_v46 = vpop.eup %951 }
 0x11c   :  { %760 = vst.msk [vmem:[%s1476_s9 + $0x58] sm:$0xff] %vm748_vm3, %v743_v37  ;;  %v954_v49 = vpop.eup %953  ;;  %v696_v52 = vmul.f32 %v952_v46, %v680_v35 }
 0x11d   :  { %751 = vst.msk [vmem:[%s1476_s9 + $0x10] sm:$0xff] %vm748_vm3, %v734_v39  ;;  %v687_v54 = vmul.f32 %v954_v49, %v671_v38 }
 0x11e   :  { %v744_v60 = vadd.f32 %v728_v44, %v696_v52 }
 0x11f   :  { %v956_v40 = vpop.eup %955  ;;  %v735_v57 = vadd.f32 %v719_v47, %v687_v54 }
 0x120   :  { %v697_v58 = vmul.f32 %v956_v40, %v681_v48  ;;  %761 = vst.msk [vmem:[%s1476_s9 + $0x60] sm:$0xff] %vm748_vm3, %v744_v60 }
 0x121   :  { %752 = vst.msk [vmem:[%s1476_s9 + $0x18] sm:$0xff] %vm748_vm3, %v735_v57 }
 0x122   :  { %v745_v61 = vadd.f32 %v729_v55, %v697_v58 }
 0x123   :  { %v958_v63 = vpop.eup %957 }
 0x124   :  { %762 = vst.msk [vmem:[%s1476_s9 + $0x68] sm:$0xff] %vm748_vm3, %v745_v61  ;;  %v698_v1 = vmul.f32 %v958_v63, %v682_v7 }
 0x126   :  { %v746_v2 = vadd.f32 %v730_v62, %v698_v1 }
 0x127   :  { %v960_v4 = vpop.eup %959 }
 0x128   :  { %763 = vst.msk [vmem:[%s1476_s9 + $0x70] sm:$0xff] %vm748_vm3, %v746_v2  ;;  %v699_v5 = vmul.f32 %v960_v4, %v683_v3 }
 0x12a   :  { %v747_v6 = vadd.f32 %v731_v41, %v699_v5 }
 0x12c   :  { %764 = vst.msk [vmem:[%s1476_s9 + $0x78] sm:$0xff] %vm748_vm3, %v747_v6 }

</bundles_post_ra>
